<compile_context>
chip_gen: v5e
topology: v5e:2x2
jax: 0.10.0
libtpu: 0.0.40
codegen_flags: <defaults>
</compile_context>

<pallas_src>
import numpy as np
import jax
import jax.numpy as jnp
from jax import lax
from jax.experimental import pallas as pl
from jax.experimental.pallas import tpu as pltpu

_BN_EPS = 1e-5
_B_TILE_MAX = 64          # images per grid step; fits comfortably in VMEM on
                          # v5e/v6e/v7x (per-step working set ~8-10 MiB).


def _round_up(n, m):
    return ((n + m - 1) // m) * m


# ----------------------------------------------------------------------------
# Fused kernel: one grid step processes B images end to end
# ----------------------------------------------------------------------------

def _net1_kernel(x_ref, t1_ref, b1_ref, t2_ref, b2_ref,
                 f1_ref, fc1b_ref, fc2w_ref, fc2b_ref, o_ref):
    f32 = jnp.float32
    B = x_ref.shape[1]
    x = x_ref[...]                                        # (28, B, 28)

    # ---- conv1: 5 row-Toeplitz MXU matmuls, M = 24*B, lanes = (j, cout) ----
    c1 = jnp.dot(x[0:24].reshape(24 * B, 28), t1_ref[0],
                 preferred_element_type=f32)
    for di in range(1, 5):
        c1 = c1 + jnp.dot(x[di:di + 24].reshape(24 * B, 28), t1_ref[di],
                          preferred_element_type=f32)
    c1 = c1 + b1_ref[...]                                 # (24*B, 240)

    # ---- 2x2 max-pool + |x| (= relu(x) + relu(-x)) ----
    c1r = c1.reshape(12, 2, B, 240)                       # free leading split
    mh = jnp.maximum(c1r[:, 0], c1r[:, 1])                # (12, B, 240) row pool
    # column partners are 10 lanes apart; valid pooled lanes are q = 20*j' + c
    p1 = jnp.abs(jnp.maximum(mh[:, :, :230], mh[:, :, 10:]))   # (12, B, 230)

    # ---- conv2: 5 row-Toeplitz MXU matmuls, M = 8*B, K = 230 ----
    c2 = jnp.dot(p1[0:8].reshape(8 * B, 230), t2_ref[0],
                 preferred_element_type=f32)
    for di in range(1, 5):
        c2 = c2 + jnp.dot(p1[di:di + 8].reshape(8 * B, 230), t2_ref[di],
                          preferred_element_type=f32)
    c2 = c2 + b2_ref[...]                                 # (8*B, 160)
    # TODO(synk): Dropout2d / F.dropout are identity here (eval-mode semantics).

    # ---- 2x2 max-pool + relu ----
    c2r = c2.reshape(4, 2, B, 160)
    m2 = jnp.maximum(c2r[:, 0], c2r[:, 1])                # (4, B, 160)
    p2 = jnp.maximum(jnp.maximum(m2[:, :, :140], m2[:, :, 20:]), 0.0)  # (4,B,140)

    # ---- fc1 (eval-mode BN + torch flatten order pre-folded into f1) + relu ----
    hid = jnp.dot(p2[0], f1_ref[0], preferred_element_type=f32)
    for m in range(1, 4):
        hid = hid + jnp.dot(p2[m], f1_ref[m], preferred_element_type=f32)
    hid = jnp.maximum(hid + fc1b_ref[...], 0.0)           # (B, 50)

    # ---- fc2 + softmax (exact normalization) ----
    logits = (jnp.dot(hid, fc2w_ref[...], preferred_element_type=f32)
              + fc2b_ref[...])                            # (B, 10)
    mx = jnp.max(logits, axis=-1, keepdims=True)
    e = jnp.exp(logits - mx)
    o_ref[...] = e / jnp.sum(e, axis=-1, keepdims=True)


# ----------------------------------------------------------------------------
# Wrapper: batch-tiled pallas_call
# ----------------------------------------------------------------------------

@jax.jit
def net1_forward(x_nchw, kp):
    """x_nchw: (N, 1, 28, 28) float32 -> (N, 10) softmax probabilities."""
    N = x_nchw.shape[0]
    bt = min(_B_TILE_MAX, _round_up(N, 8))                # batch tile (mult. of 8)
    n_pad = _round_up(N, bt)

    # kernel layout: (H, batch, W); padded images are zeros (results sliced off)
    xk = jnp.transpose(x_nchw.reshape(N, 28, 28).astype(jnp.float32), (1, 0, 2))
    if n_pad != N:
        xk = jnp.pad(xk, ((0, 0), (0, n_pad - N), (0, 0)))

    out = pl.pallas_call(
        _net1_kernel,
        out_shape=jax.ShapeDtypeStruct((n_pad, 10), jnp.float32),
        grid=(n_pad // bt,),
        in_specs=[
            pl.BlockSpec((28, bt, 28), lambda i: (0, i, 0)),    # images
            pl.BlockSpec((5, 28, 240), lambda i: (0, 0, 0)),    # conv1 Toeplitz
            pl.BlockSpec((1, 240), lambda i: (0, 0)),           # conv1 bias lanes
            pl.BlockSpec((5, 230, 160), lambda i: (0, 0, 0)),   # conv2 Toeplitz
            pl.BlockSpec((1, 160), lambda i: (0, 0)),           # conv2 bias lanes
            pl.BlockSpec((4, 140, 50), lambda i: (0, 0, 0)),    # fc1 (BN folded)
            pl.BlockSpec((1, 50), lambda i: (0, 0)),            # fc1 bias (folded)
            pl.BlockSpec((50, 10), lambda i: (0, 0)),           # fc2 weight
            pl.BlockSpec((1, 10), lambda i: (0, 0)),            # fc2 bias
        ],
        out_specs=pl.BlockSpec((bt, 10), lambda i: (i, 0)),
        compiler_params=pltpu.CompilerParams(
            dimension_semantics=("parallel",),
            vmem_limit_bytes=32 * 1024 * 1024),
    )(xk, kp["t1"], kp["b1"], kp["t2"], kp["b2"],
      kp["f1"], kp["fc1_b"], kp["fc2_w"], kp["fc2_b"])
    return out[:N]


# ----------------------------------------------------------------------------
# Parameters: torch-layout init + one-time conversion to kernel layout
# ----------------------------------------------------------------------------

def init_torch_params(key):
    """Random params in PyTorch's native layouts (Conv OIHW, Linear (out, in))."""
    ks = jax.random.split(key, 12)

    def rnd(k, shape, scale):
        return scale * jax.random.normal(k, shape, dtype=jnp.float32)

    return {
        "conv1_w": rnd(ks[0], (10, 1, 5, 5), 0.2),
        "conv1_b": rnd(ks[1], (10,), 0.1),
        "conv2_w": rnd(ks[2], (20, 10, 5, 5), 0.06),
        "conv2_b": rnd(ks[3], (20,), 0.1),
        "fc1_w":   rnd(ks[4], (50, 320), 0.05),
        "fc1_b":   rnd(ks[5], (50,), 0.1),
        "fc2_w":   rnd(ks[6], (10, 50), 0.1),
        "fc2_b":   rnd(ks[7], (10,), 0.1),
        # eval-mode BatchNorm2d(20): non-trivial running stats / affine on purpose
        "bn_gamma": 1.0 + rnd(ks[8], (20,), 0.1),
        "bn_beta":  rnd(ks[9], (20,), 0.1),
        "bn_mean":  rnd(ks[10], (20,), 0.1),
        "bn_var":   jnp.abs(1.0 + rnd(ks[11], (20,), 0.1)),
    }


def prepare_kernel_params(tp):
    """One-time host-side conversion into the fused-kernel layout.

    * t1[di][w, j*10+c]        = conv1_w[c, 0, di, w-j]          (row-Toeplitz)
    * t2[di][20*j'+c, 20*j2+k] = conv2_w[k, c, di, j'-j2]        (row-Toeplitz over
                                  the un-compacted pooled lanes; by-product lanes
                                  get zero weight)
    * f1[i2'][40*j2'+k, r]     = fc1_w[r, k*16+i2'*4+j2'] * bn_scale[k]
      fc1_b_fold[r]            = fc1_b[r] + sum_f fc1_w[r, f] * bn_shift[f//16]
      (folds eval-mode BN and torch's channel-major .view(-1, 320) flatten)
    """
    f32 = np.float32
    w1 = np.asarray(tp["conv1_w"], f32)       # (10, 1, 5, 5)
    w2 = np.asarray(tp["conv2_w"], f32)       # (20, 10, 5, 5)
    fc1_w = np.asarray(tp["fc1_w"], f32)      # (50, 320)
    fc2_w = np.asarray(tp["fc2_w"], f32)      # (10, 50)
    scale = np.asarray(tp["bn_gamma"], f32) / np.sqrt(
        np.asarray(tp["bn_var"], f32) + _BN_EPS)
    shift = np.asarray(tp["bn_beta"], f32) - np.asarray(tp["bn_mean"], f32) * scale

    t1 = np.zeros((5, 28, 240), f32)
    for di in range(5):
        for j in range(24):
            for dj in range(5):
                t1[di, j + dj, j * 10:(j + 1) * 10] = w1[:, 0, di, dj]
    b1 = np.tile(np.asarray(tp["conv1_b"], f32), 24).reshape(1, 240)

    t2 = np.zeros((5, 230, 160), f32)
    for di in range(5):
        for j2 in range(8):
            for dj in range(5):
                q0 = 20 * (j2 + dj)
                for c in range(10):
                    t2[di, q0 + c, 20 * j2:20 * j2 + 20] = w2[:, c, di, dj]
    b2 = np.tile(np.asarray(tp["conv2_b"], f32), 8).reshape(1, 160)

    scale_f = np.repeat(scale, 16)            # feature index f -> channel f // 16
    shift_f = np.repeat(shift, 16)
    fc1_wf = fc1_w * scale_f[None, :]
    fc1_bf = np.asarray(tp["fc1_b"], f32) + fc1_w @ shift_f
    f1 = np.zeros((4, 140, 50), f32)
    for m in range(4):            # pooled row i2'
        for jp in range(4):       # pooled col j2'
            feats = np.arange(20) * 16 + m * 4 + jp     # torch flatten order
            f1[m, 40 * jp:40 * jp + 20, :] = fc1_wf[:, feats].T

    return {
        "t1": jnp.asarray(t1), "b1": jnp.asarray(b1),
        "t2": jnp.asarray(t2), "b2": jnp.asarray(b2),
        "f1": jnp.asarray(f1),
        "fc1_b": jnp.asarray(fc1_bf.reshape(1, 50)),
        "fc2_w": jnp.asarray(fc2_w.T),
        "fc2_b": jnp.asarray(np.asarray(tp["fc2_b"], f32).reshape(1, 10)),
    }


# ----------------------------------------------------------------------------
# Pure-XLA reference (eval-mode semantics) for correctness checking
# ----------------------------------------------------------------------------

def net1_reference(x_nchw, tp):
    x = lax.conv_general_dilated(x_nchw, tp["conv1_w"], (1, 1), "VALID",
                                 dimension_numbers=("NCHW", "OIHW", "NCHW"))
    x = x + tp["conv1_b"][None, :, None, None]
    x = lax.reduce_window(x, -jnp.inf, lax.max, (1, 1, 2, 2), (1, 1, 2, 2), "VALID")
    x = jnp.abs(x)                                       # relu(x) + relu(-x)
    x = lax.conv_general_dilated(x, tp["conv2_w"], (1, 1), "VALID",
                                 dimension_numbers=("NCHW", "OIHW", "NCHW"))
    x = x + tp["conv2_b"][None, :, None, None]
    x = lax.reduce_window(x, -jnp.inf, lax.max, (1, 1, 2, 2), (1, 1, 2, 2), "VALID")
    x = jnp.maximum(x, 0.0)
    scale = tp["bn_gamma"] / jnp.sqrt(tp["bn_var"] + _BN_EPS)
    shift = tp["bn_beta"] - tp["bn_mean"] * scale
    x = x * scale[None, :, None, None] + shift[None, :, None, None]
    x = x.reshape(x.shape[0], 320)
    x = jnp.maximum(x @ tp["fc1_w"].T + tp["fc1_b"], 0.0)
    x = x @ tp["fc2_w"].T + tp["fc2_b"]
    return jax.nn.softmax(x, axis=-1)


if __name__ == "__main__":
    key = jax.random.PRNGKey(0)
    pkey, xkey1, xkey2 = jax.random.split(key, 3)
    torch_params = init_torch_params(pkey)
    kernel_params = prepare_kernel_params(torch_params)

    # MNIST-style input implied by the module's .view(-1, 320): (N, 1, 28, 28).
    x_small = jax.random.normal(xkey1, (2, 1, 28, 28), dtype=jnp.float32)
    out_small = jax.block_until_ready(net1_forward(x_small, kernel_params))
    assert out_small.shape == (2, 10)
    ref_small = jax.block_until_ready(net1_reference(x_small, torch_params))
    err = float(jnp.max(jnp.abs(out_small - ref_small)))
    assert err < 1e-2, f"kernel vs XLA reference mismatch (N=2): {err}"
    assert bool(jnp.all(jnp.abs(jnp.sum(out_small, axis=1) - 1.0) < 1e-4))

    # Larger batch: exercises batch padding and a multi-step "parallel" grid.
    x_big = jax.random.normal(xkey2, (70, 1, 28, 28), dtype=jnp.float32)
    out_big = jax.block_until_ready(net1_forward(x_big, kernel_params))
    ref_big = jax.block_until_ready(net1_reference(x_big, torch_params))
    err_big = float(jnp.max(jnp.abs(out_big - ref_big)))
    assert err_big < 1e-2, f"kernel vs XLA reference mismatch (N=70): {err_big}"

    print("KERNEL_OK")
</pallas_src>

<mosaic_0001>
module attributes {stable_mosaic.version = 11 : i64} {
  func.func @_net1_kernel(%arg0: i32, %arg1: memref<28x8x28xf32, #tpu.memory_space<vmem>>, %arg2: memref<5x28x240xf32, #tpu.memory_space<vmem>>, %arg3: memref<1x240xf32, #tpu.memory_space<vmem>>, %arg4: memref<5x230x160xf32, #tpu.memory_space<vmem>>, %arg5: memref<1x160xf32, #tpu.memory_space<vmem>>, %arg6: memref<4x140x50xf32, #tpu.memory_space<vmem>>, %arg7: memref<1x50xf32, #tpu.memory_space<vmem>>, %arg8: memref<50x10xf32, #tpu.memory_space<vmem>>, %arg9: memref<1x10xf32, #tpu.memory_space<vmem>>, %arg10: memref<8x10xf32, #tpu.memory_space<vmem>>) attributes {dimension_semantics = [#tpu.dimension_semantics<parallel>], iteration_bounds = array<i64: 1>, scalar_prefetch = 0 : i64, scratch_operands = 0 : i64, tpu.core_type = #tpu.core_type<tc>, window_params = [{transform_indices = @transform_0, window_bounds = array<i64: 28, 8, 28>}, {pipeline_mode = #tpu.pipeline_mode<synchronous>, transform_indices = @transform_1, window_bounds = array<i64: 5, 28, 240>}, {pipeline_mode = #tpu.pipeline_mode<synchronous>, transform_indices = @transform_2, window_bounds = array<i64: 1, 240>}, {pipeline_mode = #tpu.pipeline_mode<synchronous>, transform_indices = @transform_3, window_bounds = array<i64: 5, 230, 160>}, {pipeline_mode = #tpu.pipeline_mode<synchronous>, transform_indices = @transform_4, window_bounds = array<i64: 1, 160>}, {pipeline_mode = #tpu.pipeline_mode<synchronous>, transform_indices = @transform_5, window_bounds = array<i64: 4, 140, 50>}, {pipeline_mode = #tpu.pipeline_mode<synchronous>, transform_indices = @transform_6, window_bounds = array<i64: 1, 50>}, {pipeline_mode = #tpu.pipeline_mode<synchronous>, transform_indices = @transform_7, window_bounds = array<i64: 50, 10>}, {pipeline_mode = #tpu.pipeline_mode<synchronous>, transform_indices = @transform_8, window_bounds = array<i64: 1, 10>}, {transform_indices = @transform_9, window_bounds = array<i64: 8, 10>}]} {
    %c0 = arith.constant 0 : index
    %c0_0 = arith.constant 0 : index
    %c0_1 = arith.constant 0 : index
    %0 = vector.load %arg1[%c0, %c0_0, %c0_1] : memref<28x8x28xf32, #tpu.memory_space<vmem>>, vector<28x8x28xf32>
    %1 = vector.extract_strided_slice %0 {offsets = [0, 0, 0], sizes = [24, 8, 28], strides = [1, 1, 1]} : vector<28x8x28xf32> to vector<24x8x28xf32>
    %2 = vector.shape_cast %1 : vector<24x8x28xf32> to vector<192x28xf32>
    %c0_2 = arith.constant 0 : index
    %c0_3 = arith.constant 0 : index
    %c0_4 = arith.constant 0 : index
    %3 = vector.load %arg2[%c0_2, %c0_3, %c0_4] : memref<5x28x240xf32, #tpu.memory_space<vmem>>, vector<1x28x240xf32>
    %4 = vector.shape_cast %3 : vector<1x28x240xf32> to vector<28x240xf32>
    %cst = arith.constant dense<0.000000e+00> : vector<192x240xf32>
    %5 = tpu.matmul %2, %4, %cst {dimension_numbers = #tpu.dot_dimension_numbers<[1], [0], [0], [1], [0, 0, 1, 1], [], []>} : vector<192x28xf32>, vector<28x240xf32>, vector<192x240xf32> -> vector<192x240xf32>
    %6 = vector.extract_strided_slice %0 {offsets = [1, 0, 0], sizes = [24, 8, 28], strides = [1, 1, 1]} : vector<28x8x28xf32> to vector<24x8x28xf32>
    %7 = vector.shape_cast %6 : vector<24x8x28xf32> to vector<192x28xf32>
    %c1 = arith.constant 1 : index
    %c0_5 = arith.constant 0 : index
    %c0_6 = arith.constant 0 : index
    %8 = vector.load %arg2[%c1, %c0_5, %c0_6] : memref<5x28x240xf32, #tpu.memory_space<vmem>>, vector<1x28x240xf32>
    %9 = vector.shape_cast %8 : vector<1x28x240xf32> to vector<28x240xf32>
    %cst_7 = arith.constant dense<0.000000e+00> : vector<192x240xf32>
    %10 = tpu.matmul %7, %9, %cst_7 {dimension_numbers = #tpu.dot_dimension_numbers<[1], [0], [0], [1], [0, 0, 1, 1], [], []>} : vector<192x28xf32>, vector<28x240xf32>, vector<192x240xf32> -> vector<192x240xf32>
    %11 = arith.addf %5, %10 : vector<192x240xf32>
    %12 = vector.extract_strided_slice %0 {offsets = [2, 0, 0], sizes = [24, 8, 28], strides = [1, 1, 1]} : vector<28x8x28xf32> to vector<24x8x28xf32>
    %13 = vector.shape_cast %12 : vector<24x8x28xf32> to vector<192x28xf32>
    %c2 = arith.constant 2 : index
    %c0_8 = arith.constant 0 : index
    %c0_9 = arith.constant 0 : index
    %14 = vector.load %arg2[%c2, %c0_8, %c0_9] : memref<5x28x240xf32, #tpu.memory_space<vmem>>, vector<1x28x240xf32>
    %15 = vector.shape_cast %14 : vector<1x28x240xf32> to vector<28x240xf32>
    %cst_10 = arith.constant dense<0.000000e+00> : vector<192x240xf32>
    %16 = tpu.matmul %13, %15, %cst_10 {dimension_numbers = #tpu.dot_dimension_numbers<[1], [0], [0], [1], [0, 0, 1, 1], [], []>} : vector<192x28xf32>, vector<28x240xf32>, vector<192x240xf32> -> vector<192x240xf32>
    %17 = arith.addf %11, %16 : vector<192x240xf32>
    %18 = vector.extract_strided_slice %0 {offsets = [3, 0, 0], sizes = [24, 8, 28], strides = [1, 1, 1]} : vector<28x8x28xf32> to vector<24x8x28xf32>
    %19 = vector.shape_cast %18 : vector<24x8x28xf32> to vector<192x28xf32>
    %c3 = arith.constant 3 : index
    %c0_11 = arith.constant 0 : index
    %c0_12 = arith.constant 0 : index
    %20 = vector.load %arg2[%c3, %c0_11, %c0_12] : memref<5x28x240xf32, #tpu.memory_space<vmem>>, vector<1x28x240xf32>
    %21 = vector.shape_cast %20 : vector<1x28x240xf32> to vector<28x240xf32>
    %cst_13 = arith.constant dense<0.000000e+00> : vector<192x240xf32>
    %22 = tpu.matmul %19, %21, %cst_13 {dimension_numbers = #tpu.dot_dimension_numbers<[1], [0], [0], [1], [0, 0, 1, 1], [], []>} : vector<192x28xf32>, vector<28x240xf32>, vector<192x240xf32> -> vector<192x240xf32>
    %23 = arith.addf %17, %22 : vector<192x240xf32>
    %24 = vector.extract_strided_slice %0 {offsets = [4, 0, 0], sizes = [24, 8, 28], strides = [1, 1, 1]} : vector<28x8x28xf32> to vector<24x8x28xf32>
    %25 = vector.shape_cast %24 : vector<24x8x28xf32> to vector<192x28xf32>
    %c4 = arith.constant 4 : index
    %c0_14 = arith.constant 0 : index
    %c0_15 = arith.constant 0 : index
    %26 = vector.load %arg2[%c4, %c0_14, %c0_15] : memref<5x28x240xf32, #tpu.memory_space<vmem>>, vector<1x28x240xf32>
    %27 = vector.shape_cast %26 : vector<1x28x240xf32> to vector<28x240xf32>
    %cst_16 = arith.constant dense<0.000000e+00> : vector<192x240xf32>
    %28 = tpu.matmul %25, %27, %cst_16 {dimension_numbers = #tpu.dot_dimension_numbers<[1], [0], [0], [1], [0, 0, 1, 1], [], []>} : vector<192x28xf32>, vector<28x240xf32>, vector<192x240xf32> -> vector<192x240xf32>
    %29 = arith.addf %23, %28 : vector<192x240xf32>
    %c0_17 = arith.constant 0 : index
    %c0_18 = arith.constant 0 : index
    %30 = vector.load %arg3[%c0_17, %c0_18] : memref<1x240xf32, #tpu.memory_space<vmem>>, vector<1x240xf32>
    %31 = vector.broadcast %30 : vector<1x240xf32> to vector<192x240xf32>
    %32 = arith.addf %29, %31 : vector<192x240xf32>
    %33 = vector.shape_cast %32 : vector<192x240xf32> to vector<12x2x8x240xf32>
    %34 = vector.extract_strided_slice %33 {offsets = [0, 0, 0, 0], sizes = [12, 1, 8, 240], strides = [1, 1, 1, 1]} : vector<12x2x8x240xf32> to vector<12x1x8x240xf32>
    %35 = vector.shape_cast %34 : vector<12x1x8x240xf32> to vector<12x8x240xf32>
    %36 = vector.extract_strided_slice %33 {offsets = [0, 1, 0, 0], sizes = [12, 1, 8, 240], strides = [1, 1, 1, 1]} : vector<12x2x8x240xf32> to vector<12x1x8x240xf32>
    %37 = vector.shape_cast %36 : vector<12x1x8x240xf32> to vector<12x8x240xf32>
    %38 = arith.maximumf %35, %37 : vector<12x8x240xf32>
    %39 = vector.extract_strided_slice %38 {offsets = [0, 0, 0], sizes = [12, 8, 230], strides = [1, 1, 1]} : vector<12x8x240xf32> to vector<12x8x230xf32>
    %40 = vector.extract_strided_slice %38 {offsets = [0, 0, 10], sizes = [12, 8, 230], strides = [1, 1, 1]} : vector<12x8x240xf32> to vector<12x8x230xf32>
    %41 = arith.maximumf %39, %40 : vector<12x8x230xf32>
    %42 = math.absf %41 : vector<12x8x230xf32>
    %43 = vector.extract_strided_slice %42 {offsets = [0, 0, 0], sizes = [8, 8, 230], strides = [1, 1, 1]} : vector<12x8x230xf32> to vector<8x8x230xf32>
    %44 = vector.shape_cast %43 : vector<8x8x230xf32> to vector<64x230xf32>
    %c0_19 = arith.constant 0 : index
    %c0_20 = arith.constant 0 : index
    %c0_21 = arith.constant 0 : index
    %45 = vector.load %arg4[%c0_19, %c0_20, %c0_21] : memref<5x230x160xf32, #tpu.memory_space<vmem>>, vector<1x230x160xf32>
    %46 = vector.shape_cast %45 : vector<1x230x160xf32> to vector<230x160xf32>
    %cst_22 = arith.constant dense<0.000000e+00> : vector<64x160xf32>
    %47 = tpu.matmul %44, %46, %cst_22 {dimension_numbers = #tpu.dot_dimension_numbers<[1], [0], [0], [1], [0, 0, 1, 1], [], []>} : vector<64x230xf32>, vector<230x160xf32>, vector<64x160xf32> -> vector<64x160xf32>
    %48 = vector.extract_strided_slice %42 {offsets = [1, 0, 0], sizes = [8, 8, 230], strides = [1, 1, 1]} : vector<12x8x230xf32> to vector<8x8x230xf32>
    %49 = vector.shape_cast %48 : vector<8x8x230xf32> to vector<64x230xf32>
    %c1_23 = arith.constant 1 : index
    %c0_24 = arith.constant 0 : index
    %c0_25 = arith.constant 0 : index
    %50 = vector.load %arg4[%c1_23, %c0_24, %c0_25] : memref<5x230x160xf32, #tpu.memory_space<vmem>>, vector<1x230x160xf32>
    %51 = vector.shape_cast %50 : vector<1x230x160xf32> to vector<230x160xf32>
    %cst_26 = arith.constant dense<0.000000e+00> : vector<64x160xf32>
    %52 = tpu.matmul %49, %51, %cst_26 {dimension_numbers = #tpu.dot_dimension_numbers<[1], [0], [0], [1], [0, 0, 1, 1], [], []>} : vector<64x230xf32>, vector<230x160xf32>, vector<64x160xf32> -> vector<64x160xf32>
    %53 = arith.addf %47, %52 : vector<64x160xf32>
    %54 = vector.extract_strided_slice %42 {offsets = [2, 0, 0], sizes = [8, 8, 230], strides = [1, 1, 1]} : vector<12x8x230xf32> to vector<8x8x230xf32>
    %55 = vector.shape_cast %54 : vector<8x8x230xf32> to vector<64x230xf32>
    %c2_27 = arith.constant 2 : index
    %c0_28 = arith.constant 0 : index
    %c0_29 = arith.constant 0 : index
    %56 = vector.load %arg4[%c2_27, %c0_28, %c0_29] : memref<5x230x160xf32, #tpu.memory_space<vmem>>, vector<1x230x160xf32>
    %57 = vector.shape_cast %56 : vector<1x230x160xf32> to vector<230x160xf32>
    %cst_30 = arith.constant dense<0.000000e+00> : vector<64x160xf32>
    %58 = tpu.matmul %55, %57, %cst_30 {dimension_numbers = #tpu.dot_dimension_numbers<[1], [0], [0], [1], [0, 0, 1, 1], [], []>} : vector<64x230xf32>, vector<230x160xf32>, vector<64x160xf32> -> vector<64x160xf32>
    %59 = arith.addf %53, %58 : vector<64x160xf32>
    %60 = vector.extract_strided_slice %42 {offsets = [3, 0, 0], sizes = [8, 8, 230], strides = [1, 1, 1]} : vector<12x8x230xf32> to vector<8x8x230xf32>
    %61 = vector.shape_cast %60 : vector<8x8x230xf32> to vector<64x230xf32>
    %c3_31 = arith.constant 3 : index
    %c0_32 = arith.constant 0 : index
    %c0_33 = arith.constant 0 : index
    %62 = vector.load %arg4[%c3_31, %c0_32, %c0_33] : memref<5x230x160xf32, #tpu.memory_space<vmem>>, vector<1x230x160xf32>
    %63 = vector.shape_cast %62 : vector<1x230x160xf32> to vector<230x160xf32>
    %cst_34 = arith.constant dense<0.000000e+00> : vector<64x160xf32>
    %64 = tpu.matmul %61, %63, %cst_34 {dimension_numbers = #tpu.dot_dimension_numbers<[1], [0], [0], [1], [0, 0, 1, 1], [], []>} : vector<64x230xf32>, vector<230x160xf32>, vector<64x160xf32> -> vector<64x160xf32>
    %65 = arith.addf %59, %64 : vector<64x160xf32>
    %66 = vector.extract_strided_slice %42 {offsets = [4, 0, 0], sizes = [8, 8, 230], strides = [1, 1, 1]} : vector<12x8x230xf32> to vector<8x8x230xf32>
    %67 = vector.shape_cast %66 : vector<8x8x230xf32> to vector<64x230xf32>
    %c4_35 = arith.constant 4 : index
    %c0_36 = arith.constant 0 : index
    %c0_37 = arith.constant 0 : index
    %68 = vector.load %arg4[%c4_35, %c0_36, %c0_37] : memref<5x230x160xf32, #tpu.memory_space<vmem>>, vector<1x230x160xf32>
    %69 = vector.shape_cast %68 : vector<1x230x160xf32> to vector<230x160xf32>
    %cst_38 = arith.constant dense<0.000000e+00> : vector<64x160xf32>
    %70 = tpu.matmul %67, %69, %cst_38 {dimension_numbers = #tpu.dot_dimension_numbers<[1], [0], [0], [1], [0, 0, 1, 1], [], []>} : vector<64x230xf32>, vector<230x160xf32>, vector<64x160xf32> -> vector<64x160xf32>
    %71 = arith.addf %65, %70 : vector<64x160xf32>
    %c0_39 = arith.constant 0 : index
    %c0_40 = arith.constant 0 : index
    %72 = vector.load %arg5[%c0_39, %c0_40] : memref<1x160xf32, #tpu.memory_space<vmem>>, vector<1x160xf32>
    %73 = vector.broadcast %72 : vector<1x160xf32> to vector<64x160xf32>
    %74 = arith.addf %71, %73 : vector<64x160xf32>
    %75 = vector.shape_cast %74 : vector<64x160xf32> to vector<4x2x8x160xf32>
    %76 = vector.extract_strided_slice %75 {offsets = [0, 0, 0, 0], sizes = [4, 1, 8, 160], strides = [1, 1, 1, 1]} : vector<4x2x8x160xf32> to vector<4x1x8x160xf32>
    %77 = vector.shape_cast %76 : vector<4x1x8x160xf32> to vector<4x8x160xf32>
    %78 = vector.extract_strided_slice %75 {offsets = [0, 1, 0, 0], sizes = [4, 1, 8, 160], strides = [1, 1, 1, 1]} : vector<4x2x8x160xf32> to vector<4x1x8x160xf32>
    %79 = vector.shape_cast %78 : vector<4x1x8x160xf32> to vector<4x8x160xf32>
    %80 = arith.maximumf %77, %79 : vector<4x8x160xf32>
    %81 = vector.extract_strided_slice %80 {offsets = [0, 0, 0], sizes = [4, 8, 140], strides = [1, 1, 1]} : vector<4x8x160xf32> to vector<4x8x140xf32>
    %82 = vector.extract_strided_slice %80 {offsets = [0, 0, 20], sizes = [4, 8, 140], strides = [1, 1, 1]} : vector<4x8x160xf32> to vector<4x8x140xf32>
    %83 = arith.maximumf %81, %82 : vector<4x8x140xf32>
    %cst_41 = arith.constant 0.000000e+00 : f32
    %84 = vector.broadcast %cst_41 : f32 to vector<4x8x140xf32>
    %85 = arith.maximumf %83, %84 : vector<4x8x140xf32>
    %86 = vector.extract_strided_slice %85 {offsets = [0, 0, 0], sizes = [1, 8, 140], strides = [1, 1, 1]} : vector<4x8x140xf32> to vector<1x8x140xf32>
    %87 = vector.shape_cast %86 : vector<1x8x140xf32> to vector<8x140xf32>
    %c0_42 = arith.constant 0 : index
    %c0_43 = arith.constant 0 : index
    %c0_44 = arith.constant 0 : index
    %88 = vector.load %arg6[%c0_42, %c0_43, %c0_44] : memref<4x140x50xf32, #tpu.memory_space<vmem>>, vector<1x140x50xf32>
    %89 = vector.shape_cast %88 : vector<1x140x50xf32> to vector<140x50xf32>
    %cst_45 = arith.constant dense<0.000000e+00> : vector<8x50xf32>
    %90 = tpu.matmul %87, %89, %cst_45 {dimension_numbers = #tpu.dot_dimension_numbers<[1], [0], [0], [1], [0, 0, 1, 1], [], []>} : vector<8x140xf32>, vector<140x50xf32>, vector<8x50xf32> -> vector<8x50xf32>
    %91 = vector.extract_strided_slice %85 {offsets = [1, 0, 0], sizes = [1, 8, 140], strides = [1, 1, 1]} : vector<4x8x140xf32> to vector<1x8x140xf32>
    %92 = vector.shape_cast %91 : vector<1x8x140xf32> to vector<8x140xf32>
    %c1_46 = arith.constant 1 : index
    %c0_47 = arith.constant 0 : index
    %c0_48 = arith.constant 0 : index
    %93 = vector.load %arg6[%c1_46, %c0_47, %c0_48] : memref<4x140x50xf32, #tpu.memory_space<vmem>>, vector<1x140x50xf32>
    %94 = vector.shape_cast %93 : vector<1x140x50xf32> to vector<140x50xf32>
    %cst_49 = arith.constant dense<0.000000e+00> : vector<8x50xf32>
    %95 = tpu.matmul %92, %94, %cst_49 {dimension_numbers = #tpu.dot_dimension_numbers<[1], [0], [0], [1], [0, 0, 1, 1], [], []>} : vector<8x140xf32>, vector<140x50xf32>, vector<8x50xf32> -> vector<8x50xf32>
    %96 = arith.addf %90, %95 : vector<8x50xf32>
    %97 = vector.extract_strided_slice %85 {offsets = [2, 0, 0], sizes = [1, 8, 140], strides = [1, 1, 1]} : vector<4x8x140xf32> to vector<1x8x140xf32>
    %98 = vector.shape_cast %97 : vector<1x8x140xf32> to vector<8x140xf32>
    %c2_50 = arith.constant 2 : index
    %c0_51 = arith.constant 0 : index
    %c0_52 = arith.constant 0 : index
    %99 = vector.load %arg6[%c2_50, %c0_51, %c0_52] : memref<4x140x50xf32, #tpu.memory_space<vmem>>, vector<1x140x50xf32>
    %100 = vector.shape_cast %99 : vector<1x140x50xf32> to vector<140x50xf32>
    %cst_53 = arith.constant dense<0.000000e+00> : vector<8x50xf32>
    %101 = tpu.matmul %98, %100, %cst_53 {dimension_numbers = #tpu.dot_dimension_numbers<[1], [0], [0], [1], [0, 0, 1, 1], [], []>} : vector<8x140xf32>, vector<140x50xf32>, vector<8x50xf32> -> vector<8x50xf32>
    %102 = arith.addf %96, %101 : vector<8x50xf32>
    %103 = vector.extract_strided_slice %85 {offsets = [3, 0, 0], sizes = [1, 8, 140], strides = [1, 1, 1]} : vector<4x8x140xf32> to vector<1x8x140xf32>
    %104 = vector.shape_cast %103 : vector<1x8x140xf32> to vector<8x140xf32>
    %c3_54 = arith.constant 3 : index
    %c0_55 = arith.constant 0 : index
    %c0_56 = arith.constant 0 : index
    %105 = vector.load %arg6[%c3_54, %c0_55, %c0_56] : memref<4x140x50xf32, #tpu.memory_space<vmem>>, vector<1x140x50xf32>
    %106 = vector.shape_cast %105 : vector<1x140x50xf32> to vector<140x50xf32>
    %cst_57 = arith.constant dense<0.000000e+00> : vector<8x50xf32>
    %107 = tpu.matmul %104, %106, %cst_57 {dimension_numbers = #tpu.dot_dimension_numbers<[1], [0], [0], [1], [0, 0, 1, 1], [], []>} : vector<8x140xf32>, vector<140x50xf32>, vector<8x50xf32> -> vector<8x50xf32>
    %108 = arith.addf %102, %107 : vector<8x50xf32>
    %c0_58 = arith.constant 0 : index
    %c0_59 = arith.constant 0 : index
    %109 = vector.load %arg7[%c0_58, %c0_59] : memref<1x50xf32, #tpu.memory_space<vmem>>, vector<1x50xf32>
    %110 = vector.broadcast %109 : vector<1x50xf32> to vector<8x50xf32>
    %111 = arith.addf %108, %110 : vector<8x50xf32>
    %cst_60 = arith.constant 0.000000e+00 : f32
    %112 = vector.broadcast %cst_60 : f32 to vector<8x50xf32>
    %113 = arith.maximumf %111, %112 : vector<8x50xf32>
    %c0_61 = arith.constant 0 : index
    %c0_62 = arith.constant 0 : index
    %114 = vector.load %arg8[%c0_61, %c0_62] : memref<50x10xf32, #tpu.memory_space<vmem>>, vector<50x10xf32>
    %cst_63 = arith.constant dense<0.000000e+00> : vector<8x10xf32>
    %115 = tpu.matmul %113, %114, %cst_63 {dimension_numbers = #tpu.dot_dimension_numbers<[1], [0], [0], [1], [0, 0, 1, 1], [], []>} : vector<8x50xf32>, vector<50x10xf32>, vector<8x10xf32> -> vector<8x10xf32>
    %c0_64 = arith.constant 0 : index
    %c0_65 = arith.constant 0 : index
    %116 = vector.load %arg9[%c0_64, %c0_65] : memref<1x10xf32, #tpu.memory_space<vmem>>, vector<1x10xf32>
    %117 = vector.broadcast %116 : vector<1x10xf32> to vector<8x10xf32>
    %118 = arith.addf %115, %117 : vector<8x10xf32>
    %cst_66 = arith.constant dense<0xFF800000> : vector<8xf32>
    %119 = vector.multi_reduction <maximumf>, %118, %cst_66 [1] : vector<8x10xf32> to vector<8xf32>
    %120 = vector.shape_cast %119 : vector<8xf32> to vector<8x1xf32>
    %121 = vector.broadcast %120 : vector<8x1xf32> to vector<8x10xf32>
    %122 = arith.subf %118, %121 : vector<8x10xf32>
    %123 = math.exp %122 : vector<8x10xf32>
    %cst_67 = arith.constant dense<0.000000e+00> : vector<8xf32>
    %124 = vector.multi_reduction <add>, %123, %cst_67 [1] : vector<8x10xf32> to vector<8xf32>
    %125 = vector.shape_cast %124 : vector<8xf32> to vector<8x1xf32>
    %126 = vector.broadcast %125 : vector<8x1xf32> to vector<8x10xf32>
    %127 = arith.divf %123, %126 : vector<8x10xf32>
    %c0_68 = arith.constant 0 : index
    %c0_69 = arith.constant 0 : index
    %128 = vector.load %arg10[%c0_68, %c0_69] : memref<8x10xf32, #tpu.memory_space<vmem>>, vector<8x10xf32>
    tpu.vector_store %arg10[%c0_68, %c0_69], %127 {strides = array<i32>} : memref<8x10xf32, #tpu.memory_space<vmem>>, vector<8x10xf32>,
    return
  }
  func.func @transform_0(%arg0: i32) -> (i32, i32, i32) {
    %c0_i32 = arith.constant 0 : i32
    %c0_i32_0 = arith.constant 0 : i32
    %c0_i32_1 = arith.constant 0 : i32
    return %c0_i32, %arg0, %c0_i32_0 : i32, i32, i32
  }
  func.func @transform_1(%arg0: i32) -> (i32, i32, i32) {
    %c0_i32 = arith.constant 0 : i32
    %c0_i32_0 = arith.constant 0 : i32
    %c0_i32_1 = arith.constant 0 : i32
    %c0_i32_2 = arith.constant 0 : i32
    return %c0_i32, %c0_i32_0, %c0_i32_1 : i32, i32, i32
  }
  func.func @transform_2(%arg0: i32) -> (i32, i32) {
    %c0_i32 = arith.constant 0 : i32
    %c0_i32_0 = arith.constant 0 : i32
    %c0_i32_1 = arith.constant 0 : i32
    return %c0_i32, %c0_i32_0 : i32, i32
  }
  func.func @transform_3(%arg0: i32) -> (i32, i32, i32) {
    %c0_i32 = arith.constant 0 : i32
    %c0_i32_0 = arith.constant 0 : i32
    %c0_i32_1 = arith.constant 0 : i32
    %c0_i32_2 = arith.constant 0 : i32
    return %c0_i32, %c0_i32_0, %c0_i32_1 : i32, i32, i32
  }
  func.func @transform_4(%arg0: i32) -> (i32, i32) {
    %c0_i32 = arith.constant 0 : i32
    %c0_i32_0 = arith.constant 0 : i32
    %c0_i32_1 = arith.constant 0 : i32
    return %c0_i32, %c0_i32_0 : i32, i32
  }
  func.func @transform_5(%arg0: i32) -> (i32, i32, i32) {
    %c0_i32 = arith.constant 0 : i32
    %c0_i32_0 = arith.constant 0 : i32
    %c0_i32_1 = arith.constant 0 : i32
    %c0_i32_2 = arith.constant 0 : i32
    return %c0_i32, %c0_i32_0, %c0_i32_1 : i32, i32, i32
  }
  func.func @transform_6(%arg0: i32) -> (i32, i32) {
    %c0_i32 = arith.constant 0 : i32
    %c0_i32_0 = arith.constant 0 : i32
    %c0_i32_1 = arith.constant 0 : i32
    return %c0_i32, %c0_i32_0 : i32, i32
  }
  func.func @transform_7(%arg0: i32) -> (i32, i32) {
    %c0_i32 = arith.constant 0 : i32
    %c0_i32_0 = arith.constant 0 : i32
    %c0_i32_1 = arith.constant 0 : i32
    return %c0_i32, %c0_i32_0 : i32, i32
  }
  func.func @transform_8(%arg0: i32) -> (i32, i32) {
    %c0_i32 = arith.constant 0 : i32
    %c0_i32_0 = arith.constant 0 : i32
    %c0_i32_1 = arith.constant 0 : i32
    return %c0_i32, %c0_i32_0 : i32, i32
  }
  func.func @transform_9(%arg0: i32) -> (i32, i32) {
    %c0_i32 = arith.constant 0 : i32
    %c0_i32_0 = arith.constant 0 : i32
    return %arg0, %c0_i32 : i32, i32
  }
}

</mosaic_0001>

<bundles_post_ra>
// kernel: net1_forward.1
= control target key start
LH: loop header
LB: loop body
LE: loop exit
PB: predicated region body
PF: predicated region fallthrough
CT: control target
= control target key end

     0   :  { %vm150_vm0 = vcmask 1043456   ;;  %vm77_vm1 = vcmask 228352   ;;  %vm1631_vm2 = vcmask 1045504   ;;  %s3820_s10 = smov 118   ;;  %vm1404_vm3 = vcmask 965632   ;;  %s6885_s1 = inlined_call_operand.vmem [shape: f32[5,28,240], index: 1, kind: input, shape index: {}]   ;;  %s6886_s0 = inlined_call_operand.vmem [shape: f32[28,8,28], index: 0, kind: input, shape index: {}]   ;;  %s6887_s3 = inlined_call_operand.vmem [shape: f32[5,230,160], index: 3, kind: input, shape index: {}]   ;;  %s6888_s2 = inlined_call_operand.vmem [shape: f32[1,240], index: 2, kind: input, shape index: {}]   ;;  %s6889_s4 = inlined_call_operand.vmem [shape: f32[1,160], index: 4, kind: input, shape index: {}]   ;;  %s6890_s5 = inlined_call_operand.vmem [shape: f32[4,140,50], index: 5, kind: input, shape index: {}]   ;;  %s6891_s6 = inlined_call_operand.vmem [shape: f32[1,50], index: 6, kind: input, shape index: {}]   ;;  %s6892_s8 = inlined_call_operand.vmem [shape: f32[1,10], index: 8, kind: input, shape index: {}]   ;;  %s6893_s7 = inlined_call_operand.vmem [shape: f32[50,10], index: 7, kind: input, shape index: {}]   ;;  %s6894_s9 = inlined_call_operand.vmem [shape: f32[8,10], index: 9, kind: output, shape index: {}]  }
   0x1   :  { %v3145_v0 = vld [vmem:[%s6885_s1 + $0x70] sm:$0xf]  ;;  %v3146_v1 = vld [vmem:[%s6885_s1 + $0x78] sm:$0xf]  ;;  %v3143_v3 = vld [vmem:[%s6885_s1 + $0x60] sm:$0xff]  ;;  %vm1606_vm4 = vcmask 834560  }
   0x2   :  { %v67_v2 = vld [vmem:[%s6885_s1 + $0x38] sm:$0xf]  ;;  %3147 = vmatpush.msk.msra.mxu0 %vm150_vm0, %v3145_v0  ;;  %3807 = vmatpush.msk.msra.mxu2 %vm150_vm0, %v3145_v0  ;;  %v3144_v4 = vld [vmem:[%s6885_s1 + $0x68] sm:$0xff]  ;;  %v3141_v6 = vld [vmem:[%s6885_s1 + $0x50] sm:$0xff]  ;;  %vm2839_vm5 = vcmask 97280   ;;  %vm2773_vm6 = vcmask 883712  }
   0x3   :  { %v65_v5 = vld [vmem:[%s6885_s1 + $0x28] sm:$0xff]  ;;  %3172 = vmatpush.msk.msra.mxu1 %vm150_vm0, %v3146_v1  ;;  %3222 = vmatpush.msk.msra.mxu3 %vm150_vm0, %v67_v2  ;;  %v3142_v7 = vld [vmem:[%s6885_s1 + $0x58] sm:$0xff]  ;;  %v3139_v9 = vld [vmem:[%s6885_s1 + $0x40] sm:$0xff]  ;;  %vm3085_vm7 = vcmask 1041408   ;;  %vm3081_vm8 = vcmask 408576   ;;  %vm3109_vm9 = vcmask 80896  }
   0x4   :  { %170 = vmatpush.msra.mxu0 %v3143_v3  ;;  %3808 = vmatpush.msra.mxu2 %v3143_v3  ;;  %v63_v8 = vld [vmem:[%s6885_s1 + $0x18] sm:$0xff]  ;;  %v3140_v10 = vld [vmem:[%s6885_s1 + $0x48] sm:$0xff]  ;;  %v3918_v13 = vld [vmem:[%s6886_s0 + $0xc0] sm:$0xff] }
   0x5   :  { %259 = vmatpush.msra.mxu1 %v3144_v4  ;;  %446 = vmatpush.msra.mxu3 %v65_v5  ;;  %v61_v11 = vld [vmem:[%s6885_s1 + $0x8] sm:$0xff]  ;;  %v32_v14 = vld [vmem:[%s6886_s0] sm:$0xff]  ;;  %v3254_v15 = vld [vmem:[%s6885_s1 + $0xb8] sm:$0xf] }
   0x6   :  { %171 = vmatpush.msra.mxu0 %v3141_v6  ;;  %3809 = vmatpush.msra.mxu2 %v3141_v6  ;;  %v33_v12 = vld [vmem:[%s6886_s0 + $0x8] sm:$0xff]  ;;  %v66_v16 = vld [vmem:[%s6885_s1 + $0x30] sm:$0xf]  ;;  %v64_v18 = vld [vmem:[%s6885_s1 + $0x20] sm:$0xff] }
   0x7   :  { %260 = vmatpush.msra.mxu1 %v3142_v7  ;;  %447 = vmatpush.msra.mxu3 %v63_v8  ;;  %v3253_v17 = vld [vmem:[%s6885_s1 + $0xb0] sm:$0xf]  ;;  %v60_v20 = vld [vmem:[%s6885_s1] sm:$0xff]  ;;  %v3963_v22 = vld [vmem:[%s6886_s0 + $0x18] sm:$0xff] }
   0x8   :  { %172 = vmatpush.msra.mxu0 %v3139_v9  ;;  %3810 = vmatpush.msra.mxu2 %v3139_v9  ;;  %v62_v19 = vld [vmem:[%s6885_s1 + $0x10] sm:$0xff]  ;;  %v3252_v23 = vld [vmem:[%s6885_s1 + $0xa8] sm:$0xff]  ;;  %v3978_v24 = vld [vmem:[%s6886_s0 + $0x20] sm:$0xff] }
   0x9   :  { %261 = vmatpush.msra.mxu1 %v3140_v10  ;;  %448 = vmatpush.msra.mxu3 %v61_v11  ;;  %v3952_v21 = vld [vmem:[%s6886_s0 + $0x10] sm:$0xff]  ;;  %v3251_v25 = vld [vmem:[%s6885_s1 + $0xa0] sm:$0xff]  ;;  %v3994_v26 = vld [vmem:[%s6886_s0 + $0x28] sm:$0xff] }
   0xa   :  { %3148 = vmatmul.msk.f32.vlgmr.msra.gmra.mxu0 %vm77_vm1, %v33_v12  ;;  %3171 = vmatmul.msk.f32.vlgmr.msra.gmra.mxu2 %vm77_vm1, %v3918_v13  ;;  %v4007_v27 = vld [vmem:[%s6886_s0 + $0x30] sm:$0xff]  ;;  %v4020_v28 = vld [vmem:[%s6886_s0 + $0x38] sm:$0xff]  ;;  %v4033_v29 = vld [vmem:[%s6886_s0 + $0x40] sm:$0xff] }
   0xb   :  { %3173 = vmatmul.msk.f32.vlgmr.msra.gmra.mxu1 %vm77_vm1, %v33_v12  ;;  %3223 = vmatmul.msk.f32.vlgmr.msra.gmra.mxu3 %vm77_vm1, %v32_v14  ;;  %v4046_v30 = vld [vmem:[%s6886_s0 + $0x48] sm:$0xff]  ;;  %v3250_v31 = vld [vmem:[%s6885_s1 + $0x98] sm:$0xff]  ;;  %v4062_v32 = vld [vmem:[%s6886_s0 + $0x50] sm:$0xff] }
   0xc   :  { %3280 = vmatpush.msk.msrb.mxu1 %vm150_vm0, %v3254_v15  ;;  %3197 = vmatpush.msk.msrb.mxu2 %vm150_vm0, %v66_v16  ;;  %v3249_v33 = vld [vmem:[%s6885_s1 + $0x90] sm:$0xff]  ;;  %v4078_v34 = vld [vmem:[%s6886_s0 + $0x58] sm:$0xff]  ;;  %v4091_v35 = vld [vmem:[%s6886_s0 + $0x60] sm:$0xff] }
   0xd   :  { %3255 = vmatpush.msk.msrb.mxu0 %vm150_vm0, %v3253_v17  ;;  %v4104_v36 = vld [vmem:[%s6886_s0 + $0x68] sm:$0xff]  ;;  %v4117_v37 = vld [vmem:[%s6886_s0 + $0x70] sm:$0xff]  ;;  %v4130_v38 = vld [vmem:[%s6886_s0 + $0x78] sm:$0xff] }
   0xe   :  { %357 = vmatpush.msrb.mxu2 %v64_v18  ;;  %642 = vmatpush.msrb.mxu1 %v3252_v23  ;;  %v3248_v39 = vld [vmem:[%s6885_s1 + $0x88] sm:$0xff]  ;;  %v4146_v40 = vld [vmem:[%s6886_s0 + $0x80] sm:$0xff]  ;;  %v4179_v49 = vld [vmem:[%s6886_s0 + $0x90] sm:$0xff] }
   0xf   :  { %553 = vmatpush.msrb.mxu0 %v3251_v25  ;;  %v3247_v41 = vld [vmem:[%s6885_s1 + $0x80] sm:$0xff]  ;;  %v4162_v43 = vld [vmem:[%s6886_s0 + $0x88] sm:$0xff]  ;;  %v4194_v55 = vld [vmem:[%s6886_s0 + $0x98] sm:$0xff] }
  0x10   :  { %358 = vmatpush.msrb.mxu2 %v62_v19  ;;  %643 = vmatpush.msrb.mxu1 %v3250_v31  ;;  %v4211_v62 = vld [vmem:[%s6886_s0 + $0xa0] sm:$0xff]  ;;  %v3312_v1 = vld [vmem:[%s6885_s1 + $0xf8] sm:$0xf]  ;;  %v3310_v3 = vld [vmem:[%s6885_s1 + $0xe8] sm:$0xff] }
  0x11   :  { %554 = vmatpush.msrb.mxu0 %v3249_v33  ;;  %3338 = vmatpush.msk.msrb.mxu3 %vm150_vm0, %v3312_v1  ;;  %v4235_v7 = vld [vmem:[%s6886_s0 + $0xa8] sm:$0xff]  ;;  %v3308_v10 = vld [vmem:[%s6885_s1 + $0xd8] sm:$0xff]  ;;  %v3309_v16 = vld [vmem:[%s6885_s1 + $0xe0] sm:$0xff] }
  0x12   :  { %359 = vmatpush.msrb.mxu2 %v60_v20  ;;  %3149 = vmatmul.msk.f32.gmra.mxu0 %vm77_vm1, %v3952_v21  ;;  %v3306_v11 = vld [vmem:[%s6885_s1 + $0xc8] sm:$0xff]  ;;  %v4269_v20 = vld [vmem:[%s6886_s0 + $0xb0] sm:$0xff]  ;;  %v3305_v33 = vld [vmem:[%s6885_s1 + $0xc0] sm:$0xff] }
  0x13   :  { %3174 = vmatmul.msk.f32.gmra.mxu1 %vm77_vm1, %v3952_v21  ;;  %3198 = vmatmul.msk.f32.vlgmr.msrb.gmra.mxu2 %vm77_vm1, %v32_v14  ;;  %v3370_v14 = vld [vmem:[%s6885_s1 + $0x138] sm:$0xf]  ;;  %v3307_v31 = vld [vmem:[%s6885_s1 + $0xd0] sm:$0xff] }
  0x14   :  { %3224 = vmatmul.msk.f32.gmra.mxu3 %vm77_vm1, %v33_v12  ;;  %644 = vmatpush.msrb.mxu1 %v3248_v39  ;;  %v3369_v39 = vld [vmem:[%s6885_s1 + $0x130] sm:$0xf] }
  0x15   :  { %555 = vmatpush.msrb.mxu0 %v3247_v41  ;;  %886 = vmatpush.msrb.mxu3 %v3310_v3 }
  0x16   :  { %3396 = vmatpush.msk.msra.mxu1 %vm150_vm0, %v3370_v14 }
  0x17   :  { %887 = vmatpush.msrb.mxu3 %v3308_v10  ;;  %3371 = vmatpush.msk.msra.mxu0 %vm150_vm0, %v3369_v39 }
  0x19   :  { %888 = vmatpush.msrb.mxu3 %v3306_v11 }
  0x1a   :  { %3150 = vmatmul.msk.f32.gmra.mxu0 %vm77_vm1, %v3963_v22 }
  0x1b   :  { %3175 = vmatmul.msk.f32.gmra.mxu1 %vm77_vm1, %v3963_v22  ;;  %3199 = vmatmul.msk.f32.gmra.mxu2 %vm77_vm1, %v33_v12  ;;  %v3311_v12 = vld [vmem:[%s6885_s1 + $0xf0] sm:$0xf] }
  0x1c   :  { %3225 = vmatmul.msk.f32.gmra.mxu3 %vm77_vm1, %v3952_v21  ;;  %3313 = vmatpush.msk.msra.mxu2 %vm150_vm0, %v3311_v12 }
  0x1e   :  { %797 = vmatpush.msra.mxu2 %v3309_v16 }
  0x20   :  { %798 = vmatpush.msra.mxu2 %v3307_v31 }
  0x22   :  { %3151 = vmatmul.msk.f32.gmra.mxu0 %vm77_vm1, %v3978_v24  ;;  %799 = vmatpush.msra.mxu2 %v3305_v33 }
  0x23   :  { %3176 = vmatmul.msk.f32.gmra.mxu1 %vm77_vm1, %v3978_v24  ;;  %3200 = vmatmul.msk.f32.gmra.mxu2 %vm77_vm1, %v3952_v21 }
  0x24   :  { %3226 = vmatmul.msk.f32.gmra.mxu3 %vm77_vm1, %v3963_v22 }
  0x2a   :  { %3152 = vmatmul.msk.f32.gmra.mxu0 %vm77_vm1, %v3994_v26 }
  0x2b   :  { %3177 = vmatmul.msk.f32.gmra.mxu1 %vm77_vm1, %v3994_v26  ;;  %3201 = vmatmul.msk.f32.gmra.mxu2 %vm77_vm1, %v3963_v22 }
  0x2c   :  { %3227 = vmatmul.msk.f32.gmra.mxu3 %vm77_vm1, %v3978_v24 }
  0x32   :  { %3153 = vmatmul.msk.f32.gmra.mxu0 %vm77_vm1, %v4007_v27 }
  0x33   :  { %3178 = vmatmul.msk.f32.gmra.mxu1 %vm77_vm1, %v4007_v27  ;;  %3202 = vmatmul.msk.f32.gmra.mxu2 %vm77_vm1, %v3978_v24 }
  0x34   :  { %3228 = vmatmul.msk.f32.gmra.mxu3 %vm77_vm1, %v3994_v26 }
  0x3a   :  { %3154 = vmatmul.msk.f32.gmra.mxu0 %vm77_vm1, %v4020_v28 }
  0x3b   :  { %3179 = vmatmul.msk.f32.gmra.mxu1 %vm77_vm1, %v4020_v28  ;;  %3203 = vmatmul.msk.f32.gmra.mxu2 %vm77_vm1, %v3994_v26 }
  0x3c   :  { %3229 = vmatmul.msk.f32.gmra.mxu3 %vm77_vm1, %v4007_v27 }
  0x42   :  { %3155 = vmatmul.msk.f32.gmra.mxu0 %vm77_vm1, %v4033_v29 }
  0x43   :  { %3180 = vmatmul.msk.f32.gmra.mxu1 %vm77_vm1, %v4033_v29  ;;  %3204 = vmatmul.msk.f32.gmra.mxu2 %vm77_vm1, %v4007_v27 }
  0x44   :  { %3230 = vmatmul.msk.f32.gmra.mxu3 %vm77_vm1, %v4020_v28 }
  0x4a   :  { %3156 = vmatmul.msk.f32.gmra.mxu0 %vm77_vm1, %v4046_v30 }
  0x4b   :  { %3181 = vmatmul.msk.f32.gmra.mxu1 %vm77_vm1, %v4046_v30  ;;  %3205 = vmatmul.msk.f32.gmra.mxu2 %vm77_vm1, %v4020_v28 }
  0x4c   :  { %3231 = vmatmul.msk.f32.gmra.mxu3 %vm77_vm1, %v4033_v29 }
  0x52   :  { %3157 = vmatmul.msk.f32.gmra.mxu0 %vm77_vm1, %v4062_v32 }
  0x53   :  { %3182 = vmatmul.msk.f32.gmra.mxu1 %vm77_vm1, %v4062_v32  ;;  %3206 = vmatmul.msk.f32.gmra.mxu2 %vm77_vm1, %v4033_v29 }
  0x54   :  { %3232 = vmatmul.msk.f32.gmra.mxu3 %vm77_vm1, %v4046_v30 }
  0x5a   :  { %3158 = vmatmul.msk.f32.gmra.mxu0 %vm77_vm1, %v4078_v34 }
  0x5b   :  { %3183 = vmatmul.msk.f32.gmra.mxu1 %vm77_vm1, %v4078_v34  ;;  %3207 = vmatmul.msk.f32.gmra.mxu2 %vm77_vm1, %v4046_v30 }
  0x5c   :  { %3233 = vmatmul.msk.f32.gmra.mxu3 %vm77_vm1, %v4062_v32 }
  0x62   :  { %3159 = vmatmul.msk.f32.gmra.mxu0 %vm77_vm1, %v4091_v35 }
  0x63   :  { %3184 = vmatmul.msk.f32.gmra.mxu1 %vm77_vm1, %v4091_v35  ;;  %3208 = vmatmul.msk.f32.gmra.mxu2 %vm77_vm1, %v4062_v32 }
  0x64   :  { %3234 = vmatmul.msk.f32.gmra.mxu3 %vm77_vm1, %v4078_v34 }
  0x6a   :  { %3160 = vmatmul.msk.f32.gmra.mxu0 %vm77_vm1, %v4104_v36 }
  0x6b   :  { %3185 = vmatmul.msk.f32.gmra.mxu1 %vm77_vm1, %v4104_v36  ;;  %3209 = vmatmul.msk.f32.gmra.mxu2 %vm77_vm1, %v4078_v34 }
  0x6c   :  { %3235 = vmatmul.msk.f32.gmra.mxu3 %vm77_vm1, %v4091_v35 }
  0x72   :  { %3161 = vmatmul.msk.f32.gmra.mxu0 %vm77_vm1, %v4117_v37 }
  0x73   :  { %3186 = vmatmul.msk.f32.gmra.mxu1 %vm77_vm1, %v4117_v37  ;;  %3210 = vmatmul.msk.f32.gmra.mxu2 %vm77_vm1, %v4091_v35 }
  0x74   :  { %3236 = vmatmul.msk.f32.gmra.mxu3 %vm77_vm1, %v4104_v36 }
  0x7a   :  { %3162 = vmatmul.msk.f32.gmra.mxu0 %vm77_vm1, %v4130_v38 }
  0x7b   :  { %3187 = vmatmul.msk.f32.gmra.mxu1 %vm77_vm1, %v4130_v38  ;;  %3211 = vmatmul.msk.f32.gmra.mxu2 %vm77_vm1, %v4104_v36 }
  0x7c   :  { %3237 = vmatmul.msk.f32.gmra.mxu3 %vm77_vm1, %v4117_v37 }
  0x82   :  { %3163 = vmatmul.msk.f32.gmra.mxu0 %vm77_vm1, %v4146_v40 }
  0x83   :  { %3188 = vmatmul.msk.f32.gmra.mxu1 %vm77_vm1, %v4146_v40  ;;  %3212 = vmatmul.msk.f32.gmra.mxu2 %vm77_vm1, %v4117_v37 }
  0x84   :  { %3238 = vmatmul.msk.f32.gmra.mxu3 %vm77_vm1, %v4130_v38 }
  0x87   :  { %v174_v42 = vpop.f32.mrf.mxu0 }
  0x88   :  { %v263_v44 = vpop.f32.mrf.mxu1 }
  0x8a   :  { %3164 = vmatmul.msk.f32.gmra.mxu0 %vm77_vm1, %v4162_v43 }
  0x8b   :  { %3189 = vmatmul.msk.f32.gmra.mxu1 %vm77_vm1, %v4162_v43  ;;  %3213 = vmatmul.msk.f32.gmra.mxu2 %vm77_vm1, %v4130_v38 }
  0x8c   :  { %3239 = vmatmul.msk.f32.gmra.mxu3 %vm77_vm1, %v4146_v40 }
  0x8d   :  { %v4172_v45 = vpop.f32.mrf.mxu2 }
  0x8e   :  { %6895 = vst [vmem:[#allocation2_spill] sm:$0xff] %v4172_v45  ;;  %v450_v46 = vpop.f32.mrf.mxu3 }
  0x8f   :  { %v4174_v47 = vadd.f32 %v450_v46, %v263_v44  ;;  %v177_v48 = vpop.f32.mrf.mxu0 }
  0x90   :  { %v266_v50 = vpop.f32.mrf.mxu1 }
  0x92   :  { %3165 = vmatmul.msk.f32.gmra.mxu0 %vm77_vm1, %v4179_v49 }
  0x93   :  { %3190 = vmatmul.msk.f32.gmra.mxu1 %vm77_vm1, %v4179_v49  ;;  %3214 = vmatmul.msk.f32.gmra.mxu2 %vm77_vm1, %v4146_v40 }
  0x94   :  { %3240 = vmatmul.msk.f32.gmra.mxu3 %vm77_vm1, %v4162_v43 }
  0x96   :  { %v361_v51 = vpop.f32.mrf.mxu2 }
  0x97   :  { %v4189_v52 = vadd.f32 %v361_v51, %v174_v42  ;;  %v453_v53 = vpop.f32.mrf.mxu3  ;;  %v180_v54 = vpop.f32.mrf.mxu0 }
  0x98   :  { %v4196_v56 = vadd.f32 %v453_v53, %v266_v50  ;;  %v269_v57 = vpop.f32.mrf.mxu1 }
  0x9a   :  { %3166 = vmatmul.msk.f32.gmra.mxu0 %vm77_vm1, %v4194_v55 }
  0x9b   :  { %3191 = vmatmul.msk.f32.gmra.mxu1 %vm77_vm1, %v4194_v55  ;;  %3215 = vmatmul.msk.f32.gmra.mxu2 %vm77_vm1, %v4162_v43 }
  0x9c   :  { %3241 = vmatmul.msk.f32.gmra.mxu3 %vm77_vm1, %v4179_v49 }
  0x9e   :  { %v364_v58 = vpop.f32.mrf.mxu2 }
  0x9f   :  { %v4206_v59 = vadd.f32 %v364_v58, %v177_v48  ;;  %v456_v60 = vpop.f32.mrf.mxu3  ;;  %v183_v61 = vpop.f32.mrf.mxu0  ;;  %v4296_v48 = vld [vmem:[%s6886_s0 + $0xb8] sm:$0xff] }
  0xa0   :  { %v4213_v63 = vadd.f32 %v456_v60, %v269_v57  ;;  %v272_v0 = vpop.f32.mrf.mxu1 }
  0xa2   :  { %3167 = vmatmul.msk.f32.gmra.mxu0 %vm77_vm1, %v4211_v62 }
  0xa3   :  { %3192 = vmatmul.msk.f32.gmra.mxu1 %vm77_vm1, %v4211_v62  ;;  %3216 = vmatmul.msk.f32.gmra.mxu2 %vm77_vm1, %v4179_v49 }
  0xa4   :  { %3242 = vmatmul.msk.f32.gmra.mxu3 %vm77_vm1, %v4194_v55 }
  0xa6   :  { %v367_v2 = vpop.f32.mrf.mxu2 }
  0xa7   :  { %v4230_v4 = vadd.f32 %v367_v2, %v180_v54  ;;  %v459_v5 = vpop.f32.mrf.mxu3  ;;  %v186_v6 = vpop.f32.mrf.mxu0 }
  0xa8   :  { %v4237_v8 = vadd.f32 %v459_v5, %v272_v0  ;;  %v275_v9 = vpop.f32.mrf.mxu1 }
  0xaa   :  { %3168 = vmatmul.msk.f32.gmra.mxu0 %vm77_vm1, %v4235_v7 }
  0xab   :  { %3193 = vmatmul.msk.f32.gmra.mxu1 %vm77_vm1, %v4235_v7  ;;  %3217 = vmatmul.msk.f32.gmra.mxu2 %vm77_vm1, %v4194_v55 }
  0xac   :  { %3243 = vmatmul.msk.f32.gmra.mxu3 %vm77_vm1, %v4211_v62 }
  0xae   :  { %v370_v15 = vpop.f32.mrf.mxu2 }
  0xaf   :  { %v4264_v17 = vadd.f32 %v370_v15, %v183_v61  ;;  %v462_v18 = vpop.f32.mrf.mxu3  ;;  %v189_v19 = vpop.f32.mrf.mxu0 }
  0xb0   :  { %v4271_v23 = vadd.f32 %v462_v18, %v275_v9  ;;  %v278_v25 = vpop.f32.mrf.mxu1 }
  0xb2   :  { %3169 = vmatmul.msk.f32.gmra.mxu0 %vm77_vm1, %v4269_v20 }
  0xb3   :  { %3194 = vmatmul.msk.f32.gmra.mxu1 %vm77_vm1, %v4269_v20  ;;  %3218 = vmatmul.msk.f32.gmra.mxu2 %vm77_vm1, %v4211_v62 }
  0xb4   :  { %3244 = vmatmul.msk.f32.gmra.mxu3 %vm77_vm1, %v4235_v7 }
  0xb6   :  { %v373_v41 = vpop.f32.mrf.mxu2 }
  0xb7   :  { %v4291_v42 = vadd.f32 %v373_v41, %v186_v6  ;;  %v465_v44 = vpop.f32.mrf.mxu3  ;;  %v192_v46 = vpop.f32.mrf.mxu0 }
  0xb8   :  { %v4298_v50 = vadd.f32 %v465_v44, %v278_v25  ;;  %v281_v51 = vpop.f32.mrf.mxu1 }
  0xba   :  { %3170 = vmatmul.msk.f32.gmra.mxu0 %vm77_vm1, %v4296_v48 }
  0xbb   :  { %3195 = vmatmul.msk.f32.gmra.mxu1 %vm77_vm1, %v4296_v48  ;;  %3219 = vmatmul.msk.f32.gmra.mxu2 %vm77_vm1, %v4235_v7 }
  0xbc   :  { %3245 = vmatmul.msk.f32.gmra.mxu3 %vm77_vm1, %v4269_v20 }
  0xbe   :  { %v376_v53 = vpop.f32.mrf.mxu2 }
  0xbf   :  { %v4308_v54 = vadd.f32 %v376_v53, %v189_v19  ;;  %v468_v57 = vpop.f32.mrf.mxu3  ;;  %v195_v58 = vpop.f32.mrf.mxu0  ;;  %v3367_v53 = vld [vmem:[%s6885_s1 + $0x120] sm:$0xff] }
  0xc0   :  { %v4310_v60 = vadd.f32 %v468_v57, %v281_v51  ;;  %v284_v61 = vpop.f32.mrf.mxu1  ;;  %1041 = vmatpush.msra.mxu0 %v3367_v53 }
  0xc2   :  { %3256 = vmatmul.msk.f32.vlgmr.msrb.gmra.mxu0 %vm77_vm1, %v3952_v21 }
  0xc3   :  { %3196 = vmatmul.msk.f32.gmra.mxu1 %vm77_vm1, %v3918_v13  ;;  %3220 = vmatmul.msk.f32.gmra.mxu2 %vm77_vm1, %v4269_v20 }
  0xc4   :  { %3246 = vmatmul.msk.f32.gmra.mxu3 %vm77_vm1, %v4296_v48 }
  0xc6   :  { %v379_v0 = vpop.f32.mrf.mxu2 }
  0xc7   :  { %v4320_v1 = vadd.f32 %v379_v0, %v192_v46  ;;  %v471_v2 = vpop.f32.mrf.mxu3  ;;  %v198_v3 = vpop.f32.mrf.mxu0 }
  0xc8   :  { %v4322_v5 = vadd.f32 %v471_v2, %v284_v61  ;;  %v287_v6 = vpop.f32.mrf.mxu1 }
  0xca   :  { %3257 = vmatmul.msk.f32.gmra.mxu0 %vm77_vm1, %v3963_v22 }
  0xcb   :  { %3221 = vmatmul.msk.f32.gmra.mxu2 %vm77_vm1, %v4296_v48  ;;  %3281 = vmatmul.msk.f32.vlgmr.msrb.gmra.mxu1 %vm77_vm1, %v3952_v21 }
  0xcc   :  { %3339 = vmatmul.msk.f32.vlgmr.msrb.gmra.mxu3 %vm77_vm1, %v3963_v22 }
  0xce   :  { %v382_v9 = vpop.f32.mrf.mxu2 }
  0xcf   :  { %v4332_v10 = vadd.f32 %v382_v9, %v195_v58  ;;  %v474_v11 = vpop.f32.mrf.mxu3  ;;  %v201_v12 = vpop.f32.mrf.mxu0 }
  0xd0   :  { %v4334_v14 = vadd.f32 %v474_v11, %v287_v6  ;;  %v290_v15 = vpop.f32.mrf.mxu1 }
  0xd2   :  { %6896 = vst [vmem:[#allocation3_spill] sm:$0xff] %v4334_v14  ;;  %3258 = vmatmul.msk.f32.gmra.mxu0 %vm77_vm1, %v3978_v24 }
  0xd3   :  { %3282 = vmatmul.msk.f32.gmra.mxu1 %vm77_vm1, %v3963_v22  ;;  %3314 = vmatmul.msk.f32.vlgmr.msra.gmra.mxu2 %vm77_vm1, %v3963_v22  ;;  %v3368_v22 = vld [vmem:[%s6885_s1 + $0x128] sm:$0xff] }
  0xd4   :  { %3340 = vmatmul.msk.f32.gmra.mxu3 %vm77_vm1, %v3978_v24  ;;  %1130 = vmatpush.msra.mxu1 %v3368_v22 }
  0xd6   :  { %v385_v21 = vpop.f32.mrf.mxu2 }
  0xd7   :  { %v4344_v16 = vadd.f32 %v385_v21, %v198_v3  ;;  %v477_v18 = vpop.f32.mrf.mxu3  ;;  %v204_v19 = vpop.f32.mrf.mxu0 }
  0xd8   :  { %v4346_v25 = vadd.f32 %v477_v18, %v290_v15  ;;  %v293_v31 = vpop.f32.mrf.mxu1 }
  0xd9   :  { %6897 = vst [vmem:[#allocation4_spill] sm:$0xff] %v4344_v16 }
  0xda   :  { %6898 = vst [vmem:[#allocation5_spill] sm:$0xff] %v4346_v25  ;;  %3259 = vmatmul.msk.f32.gmra.mxu0 %vm77_vm1, %v3994_v26 }
  0xdb   :  { %3283 = vmatmul.msk.f32.gmra.mxu1 %vm77_vm1, %v3978_v24  ;;  %3315 = vmatmul.msk.f32.gmra.mxu2 %vm77_vm1, %v3978_v24 }
  0xdc   :  { %3341 = vmatmul.msk.f32.gmra.mxu3 %vm77_vm1, %v3994_v26 }
  0xde   :  { %v388_v33 = vpop.f32.mrf.mxu2 }
  0xdf   :  { %v4359_v39 = vadd.f32 %v388_v33, %v201_v12  ;;  %v480_v41 = vpop.f32.mrf.mxu3  ;;  %v207_v44 = vpop.f32.mrf.mxu0 }
  0xe0   :  { %v4361_v46 = vadd.f32 %v480_v41, %v293_v31  ;;  %v296_v51 = vpop.f32.mrf.mxu1 }
  0xe1   :  { %6899 = vst [vmem:[#allocation6_spill] sm:$0xff] %v4359_v39 }
  0xe2   :  { %6900 = vst [vmem:[#allocation7_spill] sm:$0xff] %v4361_v46  ;;  %3260 = vmatmul.msk.f32.gmra.mxu0 %vm77_vm1, %v4007_v27 }
  0xe3   :  { %3284 = vmatmul.msk.f32.gmra.mxu1 %vm77_vm1, %v3994_v26  ;;  %3316 = vmatmul.msk.f32.gmra.mxu2 %vm77_vm1, %v3994_v26 }
  0xe4   :  { %3342 = vmatmul.msk.f32.gmra.mxu3 %vm77_vm1, %v4007_v27 }
  0xe6   :  { %v391_v57 = vpop.f32.mrf.mxu2 }
  0xe7   :  { %v4374_v58 = vadd.f32 %v391_v57, %v204_v19  ;;  %v483_v61 = vpop.f32.mrf.mxu3  ;;  %v210_v0 = vpop.f32.mrf.mxu0 }
  0xe8   :  { %v4376_v2 = vadd.f32 %v483_v61, %v296_v51  ;;  %v299_v3 = vpop.f32.mrf.mxu1 }
  0xe9   :  { %6901 = vst [vmem:[#allocation8_spill] sm:$0xff] %v4374_v58 }
  0xea   :  { %6902 = vst [vmem:[#allocation9_spill] sm:$0xff] %v4376_v2  ;;  %3261 = vmatmul.msk.f32.gmra.mxu0 %vm77_vm1, %v4020_v28 }
  0xeb   :  { %3285 = vmatmul.msk.f32.gmra.mxu1 %vm77_vm1, %v4007_v27  ;;  %3317 = vmatmul.msk.f32.gmra.mxu2 %vm77_vm1, %v4007_v27 }
  0xec   :  { %3343 = vmatmul.msk.f32.gmra.mxu3 %vm77_vm1, %v4020_v28 }
  0xee   :  { %v394_v6 = vpop.f32.mrf.mxu2 }
  0xef   :  { %v4386_v9 = vadd.f32 %v394_v6, %v207_v44  ;;  %v486_v11 = vpop.f32.mrf.mxu3  ;;  %v213_v12 = vpop.f32.mrf.mxu0 }
  0xf0   :  { %v4388_v15 = vadd.f32 %v486_v11, %v299_v3  ;;  %v302_v21 = vpop.f32.mrf.mxu1 }
  0xf1   :  { %6903 = vst [vmem:[#allocation10_spill] sm:$0xff] %v4386_v9 }
  0xf2   :  { %6904 = vst [vmem:[#allocation11_spill] sm:$0xff] %v4388_v15  ;;  %3262 = vmatmul.msk.f32.gmra.mxu0 %vm77_vm1, %v4033_v29 }
  0xf3   :  { %3286 = vmatmul.msk.f32.gmra.mxu1 %vm77_vm1, %v4020_v28  ;;  %3318 = vmatmul.msk.f32.gmra.mxu2 %vm77_vm1, %v4020_v28 }
  0xf4   :  { %3344 = vmatmul.msk.f32.gmra.mxu3 %vm77_vm1, %v4033_v29 }
  0xf6   :  { %v397_v18 = vpop.f32.mrf.mxu2 }
  0xf7   :  { %v4398_v19 = vadd.f32 %v397_v18, %v210_v0  ;;  %v489_v31 = vpop.f32.mrf.mxu3  ;;  %v216_v22 = vpop.f32.mrf.mxu0 }
  0xf8   :  { %v4400_v33 = vadd.f32 %v489_v31, %v302_v21  ;;  %v305_v41 = vpop.f32.mrf.mxu1  ;;  %v3366_v31 = vld [vmem:[%s6885_s1 + $0x118] sm:$0xff] }
  0xf9   :  { %6905 = vst [vmem:[#allocation12_spill] sm:$0xff] %v4398_v19  ;;  %1131 = vmatpush.msra.mxu1 %v3366_v31  ;;  %v4632_v19 = vld [vmem:[%s6886_s0 + $0xd0] sm:$0xff] }
  0xfa   :  { %6906 = vst [vmem:[#allocation13_spill] sm:$0xff] %v4400_v33  ;;  %3263 = vmatmul.msk.f32.gmra.mxu0 %vm77_vm1, %v4046_v30 }
  0xfb   :  { %3287 = vmatmul.msk.f32.gmra.mxu1 %vm77_vm1, %v4033_v29  ;;  %3319 = vmatmul.msk.f32.gmra.mxu2 %vm77_vm1, %v4033_v29 }
  0xfc   :  { %3345 = vmatmul.msk.f32.gmra.mxu3 %vm77_vm1, %v4046_v30 }
  0xfe   :  { %v400_v44 = vpop.f32.mrf.mxu2 }
  0xff   :  { %v4410_v51 = vadd.f32 %v400_v44, %v213_v12  ;;  %v492_v53 = vpop.f32.mrf.mxu3  ;;  %v219_v57 = vpop.f32.mrf.mxu0 }
 0x100   :  { %v4412_v61 = vadd.f32 %v492_v53, %v305_v41  ;;  %v308_v0 = vpop.f32.mrf.mxu1 }
 0x101   :  { %6907 = vst [vmem:[#allocation14_spill] sm:$0xff] %v4410_v51 }
 0x102   :  { %6908 = vst [vmem:[#allocation15_spill] sm:$0xff] %v4412_v61  ;;  %3264 = vmatmul.msk.f32.gmra.mxu0 %vm77_vm1, %v4062_v32 }
 0x103   :  { %3288 = vmatmul.msk.f32.gmra.mxu1 %vm77_vm1, %v4046_v30  ;;  %3320 = vmatmul.msk.f32.gmra.mxu2 %vm77_vm1, %v4046_v30 }
 0x104   :  { %3346 = vmatmul.msk.f32.gmra.mxu3 %vm77_vm1, %v4062_v32 }
 0x106   :  { %v403_v3 = vpop.f32.mrf.mxu2 }
 0x107   :  { %v4422_v6 = vadd.f32 %v403_v3, %v216_v22  ;;  %v495_v11 = vpop.f32.mrf.mxu3  ;;  %v222_v12 = vpop.f32.mrf.mxu0 }
 0x108   :  { %v4424_v21 = vadd.f32 %v495_v11, %v308_v0  ;;  %v311_v18 = vpop.f32.mrf.mxu1 }
 0x109   :  { %6909 = vst [vmem:[#allocation16_spill] sm:$0xff] %v4422_v6  ;;  %v4613_v6 = vld [vmem:[%s6886_s0 + $0xc8] sm:$0xff] }
 0x10a   :  { %6910 = vst [vmem:[#allocation17_spill] sm:$0xff] %v4424_v21  ;;  %3265 = vmatmul.msk.f32.gmra.mxu0 %vm77_vm1, %v4078_v34 }
 0x10b   :  { %3289 = vmatmul.msk.f32.gmra.mxu1 %vm77_vm1, %v4062_v32  ;;  %3321 = vmatmul.msk.f32.gmra.mxu2 %vm77_vm1, %v4062_v32 }
 0x10c   :  { %3347 = vmatmul.msk.f32.gmra.mxu3 %vm77_vm1, %v4078_v34 }
 0x10e   :  { %v406_v22 = vpop.f32.mrf.mxu2 }
 0x10f   :  { %v4437_v41 = vadd.f32 %v406_v22, %v219_v57  ;;  %v498_v44 = vpop.f32.mrf.mxu3  ;;  %v225_v53 = vpop.f32.mrf.mxu0  ;;  %v3365_v57 = vld [vmem:[%s6885_s1 + $0x110] sm:$0xff] }
 0x110   :  { %v4439_v0 = vadd.f32 %v498_v44, %v311_v18  ;;  %v314_v3 = vpop.f32.mrf.mxu1  ;;  %1042 = vmatpush.msra.mxu0 %v3365_v57 }
 0x111   :  { %6911 = vst [vmem:[#allocation18_spill] sm:$0xff] %v4437_v41 }
 0x112   :  { %6912 = vst [vmem:[#allocation19_spill] sm:$0xff] %v4439_v0  ;;  %3266 = vmatmul.msk.f32.gmra.mxu0 %vm77_vm1, %v4091_v35 }
 0x113   :  { %3290 = vmatmul.msk.f32.gmra.mxu1 %vm77_vm1, %v4078_v34  ;;  %3322 = vmatmul.msk.f32.gmra.mxu2 %vm77_vm1, %v4078_v34 }
 0x114   :  { %3348 = vmatmul.msk.f32.gmra.mxu3 %vm77_vm1, %v4091_v35 }
 0x116   :  { %v409_v11 = vpop.f32.mrf.mxu2 }
 0x117   :  { %v4452_v18 = vadd.f32 %v409_v11, %v222_v12  ;;  %v501_v31 = vpop.f32.mrf.mxu3  ;;  %v228_v22 = vpop.f32.mrf.mxu0 }
 0x118   :  { %v4454_v44 = vadd.f32 %v501_v31, %v314_v3  ;;  %v317_v45 = vpop.f32.mrf.mxu1 }
 0x119   :  { %6913 = vst [vmem:[#allocation20_spill] sm:$0xff] %v4452_v18 }
 0x11a   :  { %6914 = vst [vmem:[#allocation21_spill] sm:$0xff] %v4454_v44  ;;  %3267 = vmatmul.msk.f32.gmra.mxu0 %vm77_vm1, %v4104_v36 }
 0x11b   :  { %3291 = vmatmul.msk.f32.gmra.mxu1 %vm77_vm1, %v4091_v35  ;;  %3323 = vmatmul.msk.f32.gmra.mxu2 %vm77_vm1, %v4091_v35 }
 0x11c   :  { %3349 = vmatmul.msk.f32.gmra.mxu3 %vm77_vm1, %v4104_v36 }
 0x11e   :  { %v412_v57 = vpop.f32.mrf.mxu2 }
 0x11f   :  { %v4464_v12 = vadd.f32 %v412_v57, %v225_v53  ;;  %v504_v11 = vpop.f32.mrf.mxu3  ;;  %v231_v0 = vpop.f32.mrf.mxu0 }
 0x120   :  { %v4466_v3 = vadd.f32 %v504_v11, %v317_v45  ;;  %v320_v31 = vpop.f32.mrf.mxu1 }
 0x121   :  { %6915 = vst [vmem:[#allocation22_spill] sm:$0xff] %v4464_v12 }
 0x122   :  { %6916 = vst [vmem:[#allocation23_spill] sm:$0xff] %v4466_v3  ;;  %3268 = vmatmul.msk.f32.gmra.mxu0 %vm77_vm1, %v4117_v37 }
 0x123   :  { %3292 = vmatmul.msk.f32.gmra.mxu1 %vm77_vm1, %v4104_v36  ;;  %3324 = vmatmul.msk.f32.gmra.mxu2 %vm77_vm1, %v4104_v36 }
 0x124   :  { %3350 = vmatmul.msk.f32.gmra.mxu3 %vm77_vm1, %v4117_v37 }
 0x126   :  { %v415_v44 = vpop.f32.mrf.mxu2 }
 0x127   :  { %v4476_v53 = vadd.f32 %v415_v44, %v228_v22  ;;  %v507_v57 = vpop.f32.mrf.mxu3  ;;  %v234_v12 = vpop.f32.mrf.mxu0 }
 0x128   :  { %v4478_v45 = vadd.f32 %v507_v57, %v320_v31  ;;  %v323_v11 = vpop.f32.mrf.mxu1 }
 0x129   :  { %6917 = vst [vmem:[#allocation24_spill] sm:$0xff] %v4476_v53 }
 0x12a   :  { %6918 = vst [vmem:[#allocation25_spill] sm:$0xff] %v4478_v45  ;;  %3269 = vmatmul.msk.f32.gmra.mxu0 %vm77_vm1, %v4130_v38 }
 0x12b   :  { %3293 = vmatmul.msk.f32.gmra.mxu1 %vm77_vm1, %v4117_v37  ;;  %3325 = vmatmul.msk.f32.gmra.mxu2 %vm77_vm1, %v4117_v37 }
 0x12c   :  { %3351 = vmatmul.msk.f32.gmra.mxu3 %vm77_vm1, %v4130_v38 }
 0x12e   :  { %v418_v3 = vpop.f32.mrf.mxu2 }
 0x12f   :  { %v4488_v22 = vadd.f32 %v418_v3, %v231_v0  ;;  %v510_v44 = vpop.f32.mrf.mxu3  ;;  %v237_v53 = vpop.f32.mrf.mxu0 }
 0x130   :  { %v4490_v31 = vadd.f32 %v510_v44, %v323_v11  ;;  %v326_v57 = vpop.f32.mrf.mxu1 }
 0x131   :  { %6919 = vst [vmem:[#allocation26_spill] sm:$0xff] %v4488_v22 }
 0x132   :  { %6920 = vst [vmem:[#allocation27_spill] sm:$0xff] %v4490_v31  ;;  %3270 = vmatmul.msk.f32.gmra.mxu0 %vm77_vm1, %v4146_v40 }
 0x133   :  { %3294 = vmatmul.msk.f32.gmra.mxu1 %vm77_vm1, %v4130_v38  ;;  %3326 = vmatmul.msk.f32.gmra.mxu2 %vm77_vm1, %v4130_v38 }
 0x134   :  { %3352 = vmatmul.msk.f32.gmra.mxu3 %vm77_vm1, %v4146_v40 }
 0x136   :  { %v421_v45 = vpop.f32.mrf.mxu2 }
 0x137   :  { %v4500_v0 = vadd.f32 %v421_v45, %v234_v12  ;;  %v513_v3 = vpop.f32.mrf.mxu3  ;;  %v240_v22 = vpop.f32.mrf.mxu0  ;;  %v3364_v12 = vld [vmem:[%s6885_s1 + $0x108] sm:$0xff] }
 0x138   :  { %v4502_v11 = vadd.f32 %v513_v3, %v326_v57  ;;  %v329_v44 = vpop.f32.mrf.mxu1  ;;  %1132 = vmatpush.msra.mxu1 %v3364_v12 }
 0x139   :  { %6921 = vst [vmem:[#allocation28_spill] sm:$0xff] %v4500_v0 }
 0x13a   :  { %6922 = vst [vmem:[#allocation29_spill] sm:$0xff] %v4502_v11  ;;  %3271 = vmatmul.msk.f32.gmra.mxu0 %vm77_vm1, %v4162_v43 }
 0x13b   :  { %3295 = vmatmul.msk.f32.gmra.mxu1 %vm77_vm1, %v4146_v40  ;;  %3327 = vmatmul.msk.f32.gmra.mxu2 %vm77_vm1, %v4146_v40 }
 0x13c   :  { %3353 = vmatmul.msk.f32.gmra.mxu3 %vm77_vm1, %v4162_v43 }
 0x13e   :  { %v424_v45 = vpop.f32.mrf.mxu2 }
 0x13f   :  { %v4515_v57 = vadd.f32 %v424_v45, %v237_v53  ;;  %v516_v3 = vpop.f32.mrf.mxu3  ;;  %v4517_v11 = vpop.f32.mrf.mxu0  ;;  %v3363_v53 = vld [vmem:[%s6885_s1 + $0x100] sm:$0xff] }
 0x140   :  { %v4519_v31 = vadd.f32 %v516_v3, %v329_v44  ;;  %v332_v0 = vpop.f32.mrf.mxu1  ;;  %1043 = vmatpush.msra.mxu0 %v3363_v53 }
 0x141   :  { %6923 = vst [vmem:[#allocation30_spill] sm:$0xff] %v4515_v57 }
 0x142   :  { %6924 = vst [vmem:[#allocation31_spill] sm:$0xff] %v4519_v31  ;;  %3272 = vmatmul.msk.f32.gmra.mxu0 %vm77_vm1, %v4179_v49 }
 0x143   :  { %3296 = vmatmul.msk.f32.gmra.mxu1 %vm77_vm1, %v4162_v43  ;;  %3328 = vmatmul.msk.f32.gmra.mxu2 %vm77_vm1, %v4162_v43 }
 0x144   :  { %3354 = vmatmul.msk.f32.gmra.mxu3 %vm77_vm1, %v4179_v49 }
 0x146   :  { %v427_v44 = vpop.f32.mrf.mxu2 }
 0x147   :  { %v4532_v12 = vadd.f32 %v427_v44, %v240_v22  ;;  %v519_v45 = vpop.f32.mrf.mxu3  ;;  %v4534_v3 = vpop.f32.mrf.mxu0 }
 0x148   :  { %v4536_v31 = vadd.f32 %v519_v45, %v332_v0  ;;  %v4538_v57 = vpop.f32.mrf.mxu1 }
 0x149   :  { %6925 = vst [vmem:[#allocation32_spill] sm:$0xff] %v4532_v12 }
 0x14a   :  { %6926 = vst [vmem:[#allocation33_spill] sm:$0xff] %v4536_v31  ;;  %3273 = vmatmul.msk.f32.gmra.mxu0 %vm77_vm1, %v4194_v55 }
 0x14b   :  { %3297 = vmatmul.msk.f32.gmra.mxu1 %vm77_vm1, %v4179_v49  ;;  %3329 = vmatmul.msk.f32.gmra.mxu2 %vm77_vm1, %v4179_v49 }
 0x14c   :  { %3355 = vmatmul.msk.f32.gmra.mxu3 %vm77_vm1, %v4194_v55 }
 0x14e   :  { %v4648_v46 = vpop.f32.mrf.mxu2 }
 0x14f   :  { %v4548_v22 = vpop.f32.mrf.mxu0  ;;  %6930 = vst [vmem:[#allocation37_spill] sm:$0xff] %v4648_v46 }
 0x150   :  { %v4550_v53 = vpop.f32.mrf.mxu1 }
 0x152   :  { %3274 = vmatmul.msk.f32.gmra.mxu0 %vm77_vm1, %v4211_v62 }
 0x153   :  { %3298 = vmatmul.msk.f32.gmra.mxu1 %vm77_vm1, %v4194_v55  ;;  %3330 = vmatmul.msk.f32.gmra.mxu2 %vm77_vm1, %v4194_v55 }
 0x154   :  { %3356 = vmatmul.msk.f32.gmra.mxu3 %vm77_vm1, %v4211_v62 }
 0x157   :  { %v4560_v0 = vpop.f32.mrf.mxu0 }
 0x158   :  { %v4562_v44 = vpop.f32.mrf.mxu1 }
 0x15a   :  { %3275 = vmatmul.msk.f32.gmra.mxu0 %vm77_vm1, %v4235_v7 }
 0x15b   :  { %3299 = vmatmul.msk.f32.gmra.mxu1 %vm77_vm1, %v4211_v62  ;;  %3331 = vmatmul.msk.f32.gmra.mxu2 %vm77_vm1, %v4211_v62 }
 0x15c   :  { %3357 = vmatmul.msk.f32.gmra.mxu3 %vm77_vm1, %v4235_v7 }
 0x15f   :  { %v4572_v45 = vpop.f32.mrf.mxu0 }
 0x160   :  { %v4574_v31 = vpop.f32.mrf.mxu1 }
 0x162   :  { %3276 = vmatmul.msk.f32.gmra.mxu0 %vm77_vm1, %v4269_v20 }
 0x163   :  { %3300 = vmatmul.msk.f32.gmra.mxu1 %vm77_vm1, %v4235_v7  ;;  %3332 = vmatmul.msk.f32.gmra.mxu2 %vm77_vm1, %v4235_v7 }
 0x164   :  { %3358 = vmatmul.msk.f32.gmra.mxu3 %vm77_vm1, %v4269_v20 }
 0x167   :  { %v4584_v12 = vpop.f32.mrf.mxu0 }
 0x168   :  { %v4586_v18 = vpop.f32.mrf.mxu1 }
 0x16a   :  { %3277 = vmatmul.msk.f32.gmra.mxu0 %vm77_vm1, %v4296_v48 }
 0x16b   :  { %3301 = vmatmul.msk.f32.gmra.mxu1 %vm77_vm1, %v4269_v20  ;;  %3333 = vmatmul.msk.f32.gmra.mxu2 %vm77_vm1, %v4269_v20 }
 0x16c   :  { %3359 = vmatmul.msk.f32.gmra.mxu3 %vm77_vm1, %v4296_v48 }
 0x16f   :  { %v4596_v21 = vpop.f32.mrf.mxu0 }
 0x170   :  { %v4598_v61 = vpop.f32.mrf.mxu1 }
 0x172   :  { %3278 = vmatmul.msk.f32.gmra.mxu0 %vm77_vm1, %v3918_v13 }
 0x173   :  { %3302 = vmatmul.msk.f32.gmra.mxu1 %vm77_vm1, %v4296_v48  ;;  %3334 = vmatmul.msk.f32.gmra.mxu2 %vm77_vm1, %v4296_v48 }
 0x174   :  { %3360 = vmatmul.msk.f32.gmra.mxu3 %vm77_vm1, %v3918_v13 }
 0x177   :  { %v4608_v41 = vpop.f32.mrf.mxu0 }
 0x178   :  { %v4615_v33 = vpop.f32.mrf.mxu1 }
 0x17a   :  { %3279 = vmatmul.msk.f32.gmra.mxu0 %vm77_vm1, %v4613_v6 }
 0x17b   :  { %3303 = vmatmul.msk.f32.gmra.mxu1 %vm77_vm1, %v3918_v13  ;;  %3335 = vmatmul.msk.f32.gmra.mxu2 %vm77_vm1, %v3918_v13 }
 0x17c   :  { %3361 = vmatmul.msk.f32.gmra.mxu3 %vm77_vm1, %v4613_v6 }
 0x17f   :  { %v4625_v15 = vpop.f32.mrf.mxu0 }
 0x180   :  { %6927 = vst [vmem:[#allocation34_spill] sm:$0xff] %v4625_v15  ;;  %v4627_v51 = vpop.f32.mrf.mxu1 }
 0x182   :  { %3372 = vmatmul.msk.f32.vlgmr.msra.gmra.mxu0 %vm77_vm1, %v3978_v24 }
 0x183   :  { %3304 = vmatmul.msk.f32.gmra.mxu1 %vm77_vm1, %v4613_v6  ;;  %3336 = vmatmul.msk.f32.gmra.mxu2 %vm77_vm1, %v4613_v6 }
 0x184   :  { %3362 = vmatmul.msk.f32.gmra.mxu3 %vm77_vm1, %v4632_v19 }
 0x187   :  { %v4642_v13 = vpop.f32.mrf.mxu0 }
 0x188   :  { %6928 = vst [vmem:[#allocation35_spill] sm:$0xff] %v4642_v13  ;;  %v4644_v2 = vpop.f32.mrf.mxu1 }
 0x189   :  { %6929 = vst [vmem:[#allocation36_spill] sm:$0xff] %v4644_v2 }
 0x18a   :  { %3373 = vmatmul.msk.f32.gmra.mxu0 %vm77_vm1, %v3994_v26 }
 0x18b   :  { %3337 = vmatmul.msk.f32.gmra.mxu2 %vm77_vm1, %v4632_v19  ;;  %3397 = vmatmul.msk.f32.vlgmr.msra.gmra.mxu1 %vm77_vm1, %v3978_v24 }
 0x18f   :  { %v4654_v9 = vpop.f32.mrf.mxu0 }
 0x190   :  { %6931 = vst [vmem:[#allocation38_spill] sm:$0xff] %v4654_v9  ;;  %v4656_v58 = vpop.f32.mrf.mxu1 }
 0x191   :  { %6932 = vst [vmem:[#allocation39_spill] sm:$0xff] %v4656_v58 }
 0x192   :  { %3374 = vmatmul.msk.f32.gmra.mxu0 %vm77_vm1, %v4007_v27 }
 0x193   :  { %3398 = vmatmul.msk.f32.gmra.mxu1 %vm77_vm1, %v3994_v26 }
 0x197   :  { %v4662_v25 = vpop.f32.mrf.mxu0 }
 0x198   :  { %6933 = vst [vmem:[#allocation40_spill] sm:$0xff] %v4662_v25  ;;  %v4664_v2 = vpop.f32.mrf.mxu1 }
 0x199   :  { %6934 = vst [vmem:[#allocation41_spill] sm:$0xff] %v4664_v2 }
 0x19a   :  { %3375 = vmatmul.msk.f32.gmra.mxu0 %vm77_vm1, %v4020_v28 }
 0x19b   :  { %3399 = vmatmul.msk.f32.gmra.mxu1 %vm77_vm1, %v4007_v27 }
 0x19f   :  { %v4670_v24 = vpop.f32.mrf.mxu0 }
 0x1a0   :  { %6935 = vst [vmem:[#allocation42_spill] sm:$0xff] %v4670_v24  ;;  %v4672_v46 = vpop.f32.mrf.mxu1 }
 0x1a1   :  { %6936 = vst [vmem:[#allocation43_spill] sm:$0xff] %v4672_v46 }
 0x1a2   :  { %3376 = vmatmul.msk.f32.gmra.mxu0 %vm77_vm1, %v4033_v29 }
 0x1a3   :  { %3400 = vmatmul.msk.f32.gmra.mxu1 %vm77_vm1, %v4020_v28 }
 0x1a7   :  { %v4678_v26 = vpop.f32.mrf.mxu0 }
 0x1a8   :  { %6937 = vst [vmem:[#allocation44_spill] sm:$0xff] %v4678_v26  ;;  %v4680_v25 = vpop.f32.mrf.mxu1 }
 0x1a9   :  { %6938 = vst [vmem:[#allocation45_spill] sm:$0xff] %v4680_v25 }
 0x1aa   :  { %3377 = vmatmul.msk.f32.gmra.mxu0 %vm77_vm1, %v4046_v30 }
 0x1ab   :  { %3401 = vmatmul.msk.f32.gmra.mxu1 %vm77_vm1, %v4033_v29 }
 0x1af   :  { %v4686_v27 = vpop.f32.mrf.mxu0 }
 0x1b0   :  { %6939 = vst [vmem:[#allocation46_spill] sm:$0xff] %v4686_v27  ;;  %v4688_v24 = vpop.f32.mrf.mxu1 }
 0x1b1   :  { %6940 = vst [vmem:[#allocation47_spill] sm:$0xff] %v4688_v24 }
 0x1b2   :  { %3378 = vmatmul.msk.f32.gmra.mxu0 %vm77_vm1, %v4062_v32 }
 0x1b3   :  { %3402 = vmatmul.msk.f32.gmra.mxu1 %vm77_vm1, %v4046_v30 }
 0x1b7   :  { %v4694_v28 = vpop.f32.mrf.mxu0 }
 0x1b8   :  { %6941 = vst [vmem:[#allocation48_spill] sm:$0xff] %v4694_v28  ;;  %v4696_v26 = vpop.f32.mrf.mxu1 }
 0x1b9   :  { %6942 = vst [vmem:[#allocation49_spill] sm:$0xff] %v4696_v26 }
 0x1ba   :  { %3379 = vmatmul.msk.f32.gmra.mxu0 %vm77_vm1, %v4078_v34 }
 0x1bb   :  { %3403 = vmatmul.msk.f32.gmra.mxu1 %vm77_vm1, %v4062_v32  ;;  %v801_v32 = vpop.f32.mrf.mxu2 }
 0x1bf   :  { %v4702_v29 = vpop.f32.mrf.mxu0 }
 0x1c0   :  { %6943 = vst [vmem:[#allocation50_spill] sm:$0xff] %v4702_v29  ;;  %v4704_v27 = vpop.f32.mrf.mxu1 }
 0x1c1   :  { %6944 = vst [vmem:[#allocation51_spill] sm:$0xff] %v4704_v27 }
 0x1c2   :  { %3380 = vmatmul.msk.f32.gmra.mxu0 %vm77_vm1, %v4091_v35 }
 0x1c3   :  { %3404 = vmatmul.msk.f32.gmra.mxu1 %vm77_vm1, %v4078_v34  ;;  %v4726_v34 = vpop.f32.mrf.mxu3 }
 0x1c7   :  { %v4710_v30 = vpop.f32.mrf.mxu0 }
 0x1c8   :  { %6945 = vst [vmem:[#allocation52_spill] sm:$0xff] %v4710_v30  ;;  %v4712_v28 = vpop.f32.mrf.mxu1 }
 0x1c9   :  { %6946 = vst [vmem:[#allocation53_spill] sm:$0xff] %v4712_v28  ;;  %v804_v28 = vpop.f32.mrf.mxu2 }
 0x1ca   :  { %3381 = vmatmul.msk.f32.gmra.mxu0 %vm77_vm1, %v4104_v36 }
 0x1cb   :  { %3405 = vmatmul.msk.f32.gmra.mxu1 %vm77_vm1, %v4091_v35 }
 0x1cf   :  { %v4718_v29 = vpop.f32.mrf.mxu0 }
 0x1d0   :  { %6947 = vst [vmem:[#allocation54_spill] sm:$0xff] %v4718_v29  ;;  %v4720_v27 = vpop.f32.mrf.mxu1  ;;  %v893_v29 = vpop.f32.mrf.mxu3 }
 0x1d1   :  { %6948 = vst [vmem:[#allocation55_spill] sm:$0xff] %v4720_v27  ;;  %v4740_v24 = vpop.f32.mrf.mxu2 }
 0x1d2   :  { %3382 = vmatmul.msk.f32.gmra.mxu0 %vm77_vm1, %v4117_v37 }
 0x1d3   :  { %3406 = vmatmul.msk.f32.gmra.mxu1 %vm77_vm1, %v4104_v36 }
 0x1d7   :  { %v4728_v30 = vpop.f32.mrf.mxu0 }
 0x1d8   :  { %6949 = vst [vmem:[#allocation56_spill] sm:$0xff] %v4728_v30  ;;  %v4730_v26 = vpop.f32.mrf.mxu1  ;;  %v4750_v30 = vpop.f32.mrf.mxu3 }
 0x1d9   :  { %6950 = vst [vmem:[#allocation57_spill] sm:$0xff] %v4730_v26 }
 0x1da   :  { %3383 = vmatmul.msk.f32.gmra.mxu0 %vm77_vm1, %v4130_v38 }
 0x1db   :  { %3407 = vmatmul.msk.f32.gmra.mxu1 %vm77_vm1, %v4117_v37  ;;  %v4754_v37 = vpop.f32.mrf.mxu2 }
 0x1df   :  { %v4736_v35 = vpop.f32.mrf.mxu0 }
 0x1e0   :  { %6951 = vst [vmem:[#allocation58_spill] sm:$0xff] %v4736_v35  ;;  %v4738_v27 = vpop.f32.mrf.mxu1 }
 0x1e1   :  { %6952 = vst [vmem:[#allocation59_spill] sm:$0xff] %v4738_v27 }
 0x1e2   :  { %3384 = vmatmul.msk.f32.gmra.mxu0 %vm77_vm1, %v4146_v40 }
 0x1e3   :  { %3408 = vmatmul.msk.f32.gmra.mxu1 %vm77_vm1, %v4130_v38  ;;  %v3451_v38 = vld [vmem:[%s6887_s3 + $0x2c0] sm:$0xff] }
 0x1e4   :  { %1638 = vmatpush.msrb.mxu2 %v3451_v38 }
 0x1e7   :  { %v4746_v36 = vpop.f32.mrf.mxu0 }
 0x1e8   :  { %6953 = vst [vmem:[#allocation60_spill] sm:$0xff] %v4746_v36  ;;  %v4748_v26 = vpop.f32.mrf.mxu1 }
 0x1e9   :  { %6954 = vst [vmem:[#allocation61_spill] sm:$0xff] %v4748_v26  ;;  %v3477_v26 = vld [vmem:[%s6887_s3 + $0x390] sm:$0x3f] }
 0x1ea   :  { %3385 = vmatmul.msk.f32.gmra.mxu0 %vm77_vm1, %v4162_v43  ;;  %3479 = vmatpush.msk.msra.mxu3 %vm1631_vm2, %v3477_v26  ;;  %v718_v26 = vadd.f32 %v4517_v11, %v4189_v52  ;;  %v720_v52 = vadd.f32 %v4534_v3, %v4206_v59  ;;  %v719_v59 = vadd.f32 %v4538_v57, %v4174_v47 }
 0x1eb   :  { %3409 = vmatmul.msk.f32.gmra.mxu1 %vm77_vm1, %v4146_v40  ;;  %v4772_v40 = vpop.f32.mrf.mxu3 }
 0x1ec   :  { %v962_v11 = vadd.f32 %v801_v32, %v718_v26 }
 0x1ef   :  { %v4758_v35 = vpop.f32.mrf.mxu0 }
 0x1f0   :  { %6955 = vst [vmem:[#allocation62_spill] sm:$0xff] %v4758_v35  ;;  %v4760_v27 = vpop.f32.mrf.mxu1  ;;  %v4775_v35 = vpop.f32.mrf.mxu2 }
 0x1f1   :  { %6956 = vst [vmem:[#allocation63_spill] sm:$0xff] %v4760_v27 }
 0x1f2   :  { %3386 = vmatmul.msk.f32.gmra.mxu0 %vm77_vm1, %v4179_v49 }
 0x1f3   :  { %3410 = vmatmul.msk.f32.gmra.mxu1 %vm77_vm1, %v4162_v43  ;;  %v4785_v43 = vpop.f32.mrf.mxu3 }
 0x1f7   :  { %v4777_v27 = vpop.f32.mrf.mxu0 }
 0x1f8   :  { %6957 = vst [vmem:[#allocation64_spill] sm:$0xff] %v4777_v27  ;;  %v4779_v36 = vpop.f32.mrf.mxu1  ;;  %v4787_v25 = vpop.f32.mrf.mxu2  ;;  %v964_v27 = vadd.f32 %v804_v28, %v720_v52 }
 0x1f9   :  { %6958 = vst [vmem:[#allocation65_spill] sm:$0xff] %v4779_v36  ;;  %v1254_v36 = vld [vmem:[%s6888_s2] sm:$0x3] }
 0x1fa   :  { %3387 = vmatmul.msk.f32.gmra.mxu0 %vm77_vm1, %v4194_v55  ;;  %v4808_v9 = vperm.slane %v1254_v36, 0  ;;  %v4830_v28 = vperm.slane %v1254_v36, 1 }
 0x1fb   :  { %3411 = vmatmul.msk.f32.gmra.mxu1 %vm77_vm1, %v4179_v49  ;;  %v3449_v49 = vld [vmem:[%s6887_s3 + $0x2b0] sm:$0xff] }
 0x1fc   :  { %1639 = vmatpush.msrb.mxu2 %v3449_v49 }
 0x1ff   :  { %v1045_v46 = vpop.f32.mrf.mxu0 }
 0x200   :  { %v4789_v38 = vpop.f32.mrf.mxu1  ;;  %v1206_v2 = vadd.f32 %v1045_v46, %v962_v11  ;;  %v4812_v39 = vpop.f32.mrf.mxu2  ;;  %v3447_v46 = vld [vmem:[%s6887_s3 + $0x2a0] sm:$0xff] }
 0x201   :  { %6959 = vst [vmem:[#allocation66_spill] sm:$0xff] %v4789_v38  ;;  %v3475_v38 = vld [vmem:[%s6887_s3 + $0x380] sm:$0xff]  ;;  %1640 = vmatpush.msrb.mxu2 %v3447_v46 }
 0x202   :  { %3388 = vmatmul.msk.f32.gmra.mxu0 %vm77_vm1, %v4211_v62  ;;  %1683 = vmatpush.msra.mxu3 %v3475_v38  ;;  %v1260_v15 = vadd.f32 %v4808_v9, %v1206_v2  ;;  %v963_v2 = vadd.f32 %v4726_v34, %v719_v59  ;;  %v725_v59 = vadd.f32 %v4574_v31, %v4237_v8 }
 0x203   :  { %3412 = vmatmul.msk.f32.gmra.mxu1 %vm77_vm1, %v4194_v55  ;;  %v4810_v55 = vpop.f32.mrf.mxu3 }
 0x207   :  { %v1048_v58 = vpop.f32.mrf.mxu0 }
 0x208   :  { %v1208_v14 = vadd.f32 %v1048_v58, %v964_v27  ;;  %v1134_v13 = vpop.f32.mrf.mxu1 }
 0x209   :  { %v1207_v27 = vadd.f32 %v1134_v13, %v963_v2 }
 0x20a   :  { %v1262_v16 = vadd.f32 %v4808_v9, %v1208_v14  ;;  %3389 = vmatmul.msk.f32.gmra.mxu0 %vm77_vm1, %v4235_v7  ;;  %v721_v14 = vadd.f32 %v4550_v53, %v4196_v56  ;;  %v3473_v53 = vld [vmem:[%s6887_s3 + $0x370] sm:$0xff] }
 0x20b   :  { %3413 = vmatmul.msk.f32.gmra.mxu1 %vm77_vm1, %v4211_v62  ;;  %v722_v62 = vadd.f32 %v4548_v22, %v4230_v4  ;;  %v4834_v38 = vpop.f32.mrf.mxu3  ;;  %v724_v4 = vadd.f32 %v4560_v0, %v4264_v17  ;;  %1684 = vmatpush.msra.mxu3 %v3473_v53  ;;  %v723_v17 = vadd.f32 %v4562_v44, %v4213_v63  ;;  %v3445_v0 = vld [vmem:[%s6887_s3 + $0x290] sm:$0xff] }
 0x20c   :  { %v4825_v58 = vmax.f32 %v1260_v15, %v1262_v16  ;;  %v965_v3 = vadd.f32 %v893_v29, %v721_v14  ;;  %v4838_v16 = vpop.f32.mrf.mxu2  ;;  %v1261_v15 = vadd.f32 %v4830_v28, %v1207_v27  ;;  %1641 = vmatpush.msrb.mxu2 %v3445_v0  ;;  %v969_v63 = vadd.f32 %v4772_v40, %v725_v59  ;;  %v3471_v40 = vld [vmem:[%s6887_s3 + $0x360] sm:$0xff] }
 0x20d   :  { %v966_v22 = vadd.f32 %v4740_v24, %v722_v62  ;;  %v968_v29 = vadd.f32 %v4754_v37, %v724_v4  ;;  %v967_v11 = vadd.f32 %v4750_v30, %v723_v17  ;;  %v3819_v30 = vld [vmem:[%s6886_s0 + $0xc0] sm:$0xff]  ;;  %1685 = vmatpush.msra.mxu3 %v3471_v40 }
 0x20e   :  { %v6961_v40 = vld [vmem:[#allocation34_spill] sm:$0xff] }
 0x20f   :  { %v1051_v47 = vpop.f32.mrf.mxu0 }
 0x210   :  { %v1137_v57 = vpop.f32.mrf.mxu1  ;;  %v1210_v34 = vadd.f32 %v1051_v47, %v966_v22  ;;  %v729_v22 = vadd.f32 %v4598_v61, %v4298_v50 }
 0x211   :  { %v1209_v32 = vadd.f32 %v1137_v57, %v965_v3  ;;  %v726_v3 = vadd.f32 %v4572_v45, %v4291_v42  ;;  %v3443_v42 = vld [vmem:[%s6887_s3 + $0x280] sm:$0xff]  ;;  %v728_v45 = vadd.f32 %v4584_v12, %v4308_v54 }
 0x212   :  { %3390 = vmatmul.msk.f32.gmra.mxu0 %vm77_vm1, %v4269_v20  ;;  %1642 = vmatpush.msrb.mxu2 %v3443_v42 }
 0x213   :  { %v1263_v56 = vadd.f32 %v4830_v28, %v1209_v32  ;;  %3414 = vmatmul.msk.f32.gmra.mxu1 %vm77_vm1, %v4235_v7  ;;  %v1264_v7 = vadd.f32 %v4808_v9, %v1210_v34  ;;  %v4864_v24 = vpop.f32.mrf.mxu3  ;;  %v970_v27 = vadd.f32 %v4775_v35, %v726_v3  ;;  %v972_v57 = vadd.f32 %v4787_v25, %v728_v45 }
 0x214   :  { %v4871_v46 = vpop.f32.mrf.mxu2  ;;  %v727_v25 = vadd.f32 %v4586_v18, %v4271_v23  ;;  %v733_v3 = vadd.f32 %v4627_v51, %v4322_v5  ;;  %v3467_v5 = vld [vmem:[%s6887_s3 + $0x340] sm:$0xff] }
 0x215   :  { %v4850_v13 = vmax.f32 %v1261_v15, %v1263_v56  ;;  %v6962_v51 = vld [vmem:[#allocation6_spill] sm:$0xff] }
 0x216   :  { %v971_v4 = vadd.f32 %v4785_v43, %v727_v25  ;;  %v3441_v43 = vld [vmem:[%s6887_s3 + $0x270] sm:$0xff] }
 0x217   :  { %v1054_v36 = vpop.f32.mrf.mxu0  ;;  %1643 = vmatpush.msrb.mxu2 %v3441_v43 }
 0x218   :  { %v1212_v26 = vadd.f32 %v1054_v36, %v968_v29  ;;  %v1140_v49 = vpop.f32.mrf.mxu1  ;;  %v973_v29 = vadd.f32 %v4810_v55, %v729_v22  ;;  %v3469_v55 = vld [vmem:[%s6887_s3 + $0x350] sm:$0xff] }
 0x219   :  { %1686 = vmatpush.msra.mxu3 %v3469_v55 }
 0x21a   :  { %3391 = vmatmul.msk.f32.gmra.mxu0 %vm77_vm1, %v4296_v48  ;;  %v1266_v52 = vadd.f32 %v4808_v9, %v1212_v26 }
 0x21b   :  { %3415 = vmatmul.msk.f32.gmra.mxu1 %vm77_vm1, %v4269_v20  ;;  %v1211_v20 = vadd.f32 %v1140_v49, %v967_v11  ;;  %v59_v11 = vld [vmem:[%s6886_s0 + $0xd8] sm:$0xff]  ;;  %1687 = vmatpush.msra.mxu3 %v3467_v5  ;;  %v6972_v5 = vld [vmem:[#allocation7_spill] sm:$0xff] }
 0x21c   :  { %v4866_v37 = vmax.f32 %v1264_v7, %v1266_v52  ;;  %v4900_v62 = vpop.f32.mrf.mxu2  ;;  %v730_v7 = vadd.f32 %v4596_v21, %v4320_v1  ;;  %v732_v1 = vadd.f32 %v4608_v41, %v4332_v10 }
 0x21d   :  { %v1265_v8 = vadd.f32 %v4830_v28, %v1211_v20 }
 0x21e   :  { %1360 = vrot.lane.b32.xlu0 %v4866_v37, %s3820_s10  ;;  %v974_v21 = vadd.f32 %v4812_v39, %v730_v7  ;;  %v976_v17 = vadd.f32 %v4838_v16, %v732_v1  ;;  %v731_v16 = vadd.f32 %v4615_v33, %v4310_v60  ;;  %v977_v60 = vadd.f32 %v4864_v24, %v733_v3  ;;  %v6966_v7 = vld [vmem:[#allocation5_spill] sm:$0xff] }
 0x21f   :  { %v1057_v44 = vpop.f32.mrf.mxu0 }
 0x220   :  { %v1143_v2 = vpop.f32.mrf.mxu1  ;;  %v1214_v32 = vadd.f32 %v1057_v44, %v970_v27  ;;  %v3439_v44 = vld [vmem:[%s6887_s3 + $0x260] sm:$0xff] }
 0x221   :  { %v1213_v14 = vadd.f32 %v1143_v2, %v969_v63  ;;  %1644 = vmatpush.msrb.mxu2 %v3439_v44  ;;  %v6971_v44 = vld [vmem:[#allocation40_spill] sm:$0xff] }
 0x222   :  { %3392 = vmatmul.msk.f32.gmra.mxu0 %vm77_vm1, %v3819_v30  ;;  %v1268_v54 = vadd.f32 %v4808_v9, %v1214_v32 }
 0x223   :  { %v1267_v31 = vadd.f32 %v4830_v28, %v1213_v14  ;;  %3416 = vmatmul.msk.f32.gmra.mxu1 %vm77_vm1, %v4296_v48  ;;  %v4898_v48 = vpop.f32.mrf.mxu3  ;;  %v975_v14 = vadd.f32 %v4834_v38, %v731_v16  ;;  %v6963_v38 = vld [vmem:[#allocation35_spill] sm:$0xff]  ;;  %v6970_v16 = vld [vmem:[#allocation10_spill] sm:$0xff] }
 0x224   :  { %v4921_v23 = vpop.f32.mrf.mxu2  ;;  %v736_v24 = vadd.f32 %v6963_v38, %v6962_v51 }
 0x225   :  { %v4895_v47 = vmax.f32 %v1265_v8, %v1267_v31  ;;  %v6960_v31 = vld [vmem:[#allocation4_spill] sm:$0xff] }
 0x226   :  { %v734_v42 = vadd.f32 %v6961_v40, %v6960_v31 }
 0x227   :  { %1362 = vrot.lane.b32.xlu0 %v4895_v47, %s3820_s10  ;;  %v1060_v15 = vpop.f32.mrf.mxu0 }
 0x228   :  { %v1216_v56 = vadd.f32 %v1060_v15, %v972_v57  ;;  %v1146_v53 = vpop.f32.mrf.mxu1  ;;  %v978_v57 = vadd.f32 %v4871_v46, %v734_v42  ;;  %v6964_v46 = vld [vmem:[#allocation3_spill] sm:$0xff] }
 0x229   :  { %v1215_v34 = vadd.f32 %v1146_v53, %v971_v4  ;;  %v980_v53 = vadd.f32 %v4900_v62, %v736_v24 }
 0x22a   :  { %3393 = vmatmul.msk.f32.gmra.mxu0 %vm77_vm1, %v4613_v6  ;;  %v1270_v12 = vadd.f32 %v4808_v9, %v1216_v56 }
 0x22b   :  { %3417 = vmatmul.msk.f32.gmra.mxu1 %vm77_vm1, %v3819_v30  ;;  %v4919_v26 = vpop.f32.mrf.mxu3  ;;  %v1269_v50 = vadd.f32 %v4830_v28, %v1215_v34  ;;  %v6965_v34 = vld [vmem:[#allocation36_spill] sm:$0xff] }
 0x22c   :  { %v4911_v35 = vmax.f32 %v1268_v54, %v1270_v12  ;;  %v834_v20 = vpop.f32.mrf.mxu2 }
 0x22e   :  { %1364 = vrot.lane.b32.xlu1 %v4911_v35, %s3820_s10 }
 0x22f   :  { %v1063_v36 = vpop.f32.mrf.mxu0 }
 0x230   :  { %v1149_v49 = vpop.f32.mrf.mxu1 }
 0x231   :  { %v1217_v18 = vadd.f32 %v1149_v49, %v973_v29  ;;  %v3437_v49 = vld [vmem:[%s6887_s3 + $0x250] sm:$0xff] }
 0x232   :  { %3394 = vmatmul.msk.f32.gmra.mxu0 %vm77_vm1, %v4632_v19  ;;  %1645 = vmatpush.msrb.mxu2 %v3437_v49 }
 0x233   :  { %v1271_v61 = vadd.f32 %v4830_v28, %v1217_v18  ;;  %3418 = vmatmul.msk.f32.gmra.mxu1 %vm77_vm1, %v4613_v6  ;;  %v1218_v6 = vadd.f32 %v1063_v36, %v974_v21  ;;  %v4948_v10 = vpop.f32.mrf.mxu3  ;;  %v735_v36 = vadd.f32 %v6965_v34, %v6964_v46  ;;  %v6976_v46 = vld [vmem:[#allocation12_spill] sm:$0xff]  ;;  %v6977_v34 = vld [vmem:[#allocation42_spill] sm:$0xff] }
 0x234   :  { %v4979_v15 = vpop.f32.mrf.mxu2 }
 0x235   :  { %v4940_v52 = vmax.f32 %v1269_v50, %v1271_v61  ;;  %v1272_v39 = vadd.f32 %v4808_v9, %v1218_v6  ;;  %v979_v62 = vadd.f32 %v4898_v48, %v735_v36  ;;  %v6967_v50 = vld [vmem:[#allocation39_spill] sm:$0xff]  ;;  %v742_v36 = vadd.f32 %v6977_v34, %v6976_v46 }
 0x236   :  { %v737_v61 = vadd.f32 %v6967_v50, %v6966_v7  ;;  %v3433_v50 = vld [vmem:[%s6887_s3 + $0x230] sm:$0xff] }
 0x237   :  { %1366 = vrot.lane.b32.xlu1 %v4940_v52, %s3820_s10  ;;  %v1066_v0 = vpop.f32.mrf.mxu0 }
 0x238   :  { %v1220_v59 = vadd.f32 %v1066_v0, %v976_v17  ;;  %v1152_v63 = vpop.f32.mrf.mxu1  ;;  %v981_v55 = vadd.f32 %v4919_v26, %v737_v61  ;;  %v3435_v26 = vld [vmem:[%s6887_s3 + $0x240] sm:$0xff] }
 0x239   :  { %v1219_v33 = vadd.f32 %v1152_v63, %v975_v14  ;;  %v740_v14 = vadd.f32 %v6971_v44, %v6970_v16  ;;  %1646 = vmatpush.msrb.mxu2 %v3435_v26  ;;  %v6978_v61 = vld [vmem:[#allocation14_spill] sm:$0xff]  ;;  %v6981_v26 = vld [vmem:[#allocation45_spill] sm:$0xff] }
 0x23a   :  { %3395 = vmatmul.msk.f32.gmra.mxu0 %vm77_vm1, %v59_v11  ;;  %v1274_v41 = vadd.f32 %v4808_v9, %v1220_v59  ;;  %v6969_v59 = vld [vmem:[#allocation38_spill] sm:$0xff] }
 0x23b   :  { %3419 = vmatmul.msk.f32.gmra.mxu1 %vm77_vm1, %v4632_v19  ;;  %v1273_v45 = vadd.f32 %v4830_v28, %v1219_v33  ;;  %v923_v32 = vpop.f32.mrf.mxu3  ;;  %v984_v33 = vadd.f32 %v834_v20, %v740_v14  ;;  %v3463_v20 = vld [vmem:[%s6887_s3 + $0x320] sm:$0xff]  ;;  %1647 = vmatpush.msrb.mxu2 %v3433_v50 }
 0x23c   :  { %v4960_v2 = vmax.f32 %v1272_v39, %v1274_v41  ;;  %v840_v1 = vpop.f32.mrf.mxu2  ;;  %v3465_v41 = vld [vmem:[%s6887_s3 + $0x330] sm:$0xff] }
 0x23d   :  { %1688 = vmatpush.msra.mxu3 %v3465_v41  ;;  %v6980_v41 = vld [vmem:[#allocation11_spill] sm:$0xff] }
 0x23e   :  { %1368 = vrot.lane.b32.xlu2 %v4960_v2, %s3820_s10  ;;  %v743_v16 = vadd.f32 %v6981_v26, %v6980_v41  ;;  %v6990_v26 = vld [vmem:[#allocation17_spill] sm:$0xff] }
 0x23f   :  { %v1069_v30 = vpop.f32.mrf.mxu0  ;;  %1689 = vmatpush.msra.mxu3 %v3463_v20  ;;  %v6985_v20 = vld [vmem:[#allocation46_spill] sm:$0xff] }
 0x240   :  { %v1155_v19 = vpop.f32.mrf.mxu1  ;;  %v1222_v54 = vadd.f32 %v1069_v30, %v978_v57  ;;  %v6974_v57 = vld [vmem:[#allocation9_spill] sm:$0xff] }
 0x241   :  { %v1221_v8 = vadd.f32 %v1155_v19, %v977_v60 }
 0x242   :  { %v1276_v22 = vadd.f32 %v4808_v9, %v1222_v54 }
 0x243   :  { %v1275_v27 = vadd.f32 %v4830_v28, %v1221_v8  ;;  %3420 = vmatmul.msk.f32.gmra.mxu1 %vm77_vm1, %v59_v11  ;;  %v4998_v43 = vpop.f32.mrf.mxu3  ;;  %v6968_v11 = vld [vmem:[#allocation8_spill] sm:$0xff] }
 0x244   :  { %v738_v63 = vadd.f32 %v6969_v59, %v6968_v11  ;;  %v843_v42 = vpop.f32.mrf.mxu2 }
 0x245   :  { %v4981_v56 = vmax.f32 %v1273_v45, %v1275_v27 }
 0x246   :  { %v982_v3 = vadd.f32 %v4921_v23, %v738_v63  ;;  %v6973_v23 = vld [vmem:[#allocation41_spill] sm:$0xff] }
 0x247   :  { %1370 = vrot.lane.b32.xlu2 %v4981_v56, %s3820_s10  ;;  %v1072_v12 = vpop.f32.mrf.mxu0  ;;  %v739_v51 = vadd.f32 %v6973_v23, %v6972_v5 }
 0x248   :  { %v1224_v25 = vadd.f32 %v1072_v12, %v980_v53  ;;  %v1158_v4 = vpop.f32.mrf.mxu1  ;;  %v6975_v53 = vld [vmem:[#allocation43_spill] sm:$0xff] }
 0x249   :  { %v1223_v21 = vadd.f32 %v1158_v4, %v979_v62  ;;  %v983_v24 = vadd.f32 %v4948_v10, %v739_v51  ;;  %v741_v54 = vadd.f32 %v6975_v53, %v6974_v57  ;;  %v6984_v51 = vld [vmem:[#allocation16_spill] sm:$0xff] }
 0x24a   :  { %v1278_v29 = vadd.f32 %v4808_v9, %v1224_v25 }
 0x24b   :  { %v1277_v48 = vadd.f32 %v4830_v28, %v1223_v21  ;;  %v929_v8 = vpop.f32.mrf.mxu3  ;;  %v985_v12 = vadd.f32 %v923_v32, %v741_v54  ;;  %v6979_v32 = vld [vmem:[#allocation44_spill] sm:$0xff]  ;;  %v986_v21 = vadd.f32 %v4979_v15, %v742_v36  ;;  %v3459_v54 = vld [vmem:[%s6887_s3 + $0x300] sm:$0xff] }
 0x24c   :  { %v4993_v18 = vmax.f32 %v1276_v22, %v1278_v29  ;;  %v846_v62 = vpop.f32.mrf.mxu2  ;;  %v3461_v15 = vld [vmem:[%s6887_s3 + $0x310] sm:$0xff] }
 0x24d   :  { %1690 = vmatpush.msra.mxu3 %v3461_v15 }
 0x24e   :  { %1372 = vrot.lane.b32.xlu0 %v4993_v18, %s3820_s10 }
 0x24f   :  { %v1075_v17 = vpop.f32.mrf.mxu0  ;;  %1691 = vmatpush.msra.mxu3 %v3459_v54 }
 0x250   :  { %v1161_v6 = vpop.f32.mrf.mxu1  ;;  %v1226_v30 = vadd.f32 %v1075_v17, %v982_v3  ;;  %v987_v3 = vadd.f32 %v4998_v43, %v743_v16  ;;  %v3429_v43 = vld [vmem:[%s6887_s3 + $0x210] sm:$0xff]  ;;  %v6991_v16 = vld [vmem:[#allocation51_spill] sm:$0xff] }
 0x251   :  { %v1225_v0 = vadd.f32 %v1161_v6, %v981_v55  ;;  %v744_v55 = vadd.f32 %v6979_v32, %v6978_v61  ;;  %v3427_v32 = vld [vmem:[%s6887_s3 + $0x200] sm:$0xff]  ;;  %v749_v15 = vadd.f32 %v6991_v16, %v6990_v26  ;;  %v7000_v16 = vld [vmem:[#allocation24_spill] sm:$0xff] }
 0x252   :  { %v1280_v45 = vadd.f32 %v4808_v9, %v1226_v30  ;;  %v6983_v30 = vld [vmem:[#allocation47_spill] sm:$0xff] }
 0x253   :  { %v1279_v39 = vadd.f32 %v4830_v28, %v1225_v0  ;;  %v5036_v49 = vpop.f32.mrf.mxu3  ;;  %v988_v6 = vadd.f32 %v840_v1, %v744_v55  ;;  %v3431_v1 = vld [vmem:[%s6887_s3 + $0x220] sm:$0xff]  ;;  %v3457_v55 = vld [vmem:[%s6887_s3 + $0x2f0] sm:$0xff] }
 0x254   :  { %1648 = vmatpush.msrb.mxu2 %v3431_v1  ;;  %1692 = vmatpush.msra.mxu3 %v3457_v55  ;;  %v3453_v1 = vld [vmem:[%s6887_s3 + $0x2d0] sm:$0xff] }
 0x255   :  { %v5016_v60 = vmax.f32 %v1277_v48, %v1279_v39 }
 0x256   :  { %1649 = vmatpush.msrb.mxu2 %v3429_v43 }
 0x257   :  { %1374 = vrot.lane.b32.xlu1 %v5016_v60, %s3820_s10  ;;  %v1078_v19 = vpop.f32.mrf.mxu0 }
 0x258   :  { %v1228_v31 = vadd.f32 %v1078_v19, %v984_v33  ;;  %v1164_v40 = vpop.f32.mrf.mxu1  ;;  %v6982_v33 = vld [vmem:[#allocation13_spill] sm:$0xff]  ;;  %1650 = vmatpush.msrb.mxu2 %v3427_v32 }
 0x259   :  { %v1227_v25 = vadd.f32 %v1164_v40, %v983_v24  ;;  %v745_v19 = vadd.f32 %v6983_v30, %v6982_v33  ;;  %v746_v24 = vadd.f32 %v6985_v20, %v6984_v51 }
 0x25a   :  { %v1282_v27 = vadd.f32 %v4808_v9, %v1228_v31  ;;  %v849_v31 = vpop.f32.mrf.mxu2 }
 0x25b   :  { %v1281_v7 = vadd.f32 %v4830_v28, %v1227_v25  ;;  %v935_v44 = vpop.f32.mrf.mxu3  ;;  %v989_v40 = vadd.f32 %v929_v8, %v745_v19  ;;  %v1520_v8 = vld [vmem:[%s6887_s3 + $0xf8] sm:$0xff]  ;;  %v6987_v25 = vld [vmem:[#allocation48_spill] sm:$0xff] }
 0x25c   :  { %v5027_v38 = vmax.f32 %v1280_v45, %v1282_v27  ;;  %1893 = vmatpush.msrb.mxu0 %v1520_v8  ;;  %v993_v33 = vadd.f32 %v935_v44, %v749_v15  ;;  %v1518_v44 = vld [vmem:[%s6887_s3 + $0xe8] sm:$0xff]  ;;  %v7001_v15 = vld [vmem:[#allocation54_spill] sm:$0xff] }
 0x25e   :  { %1376 = vrot.lane.b32.xlu2 %v5027_v38, %s3820_s10  ;;  %1894 = vmatpush.msrb.mxu0 %v1518_v44 }
 0x25f   :  { %v1081_v4 = vpop.f32.mrf.mxu0 }
 0x260   :  { %v1167_v22 = vpop.f32.mrf.mxu1  ;;  %v1230_v0 = vadd.f32 %v1081_v4, %v986_v21 }
 0x261   :  { %v1229_v29 = vadd.f32 %v1167_v22, %v985_v12  ;;  %v6986_v12 = vld [vmem:[#allocation18_spill] sm:$0xff]  ;;  %v990_v22 = vadd.f32 %v843_v42, %v746_v24 }
 0x262   :  { %v1284_v48 = vadd.f32 %v4808_v9, %v1230_v0  ;;  %v748_v4 = vadd.f32 %v6987_v25, %v6986_v12  ;;  %v6988_v0 = vld [vmem:[#allocation15_spill] sm:$0xff]  ;;  %v1544_v12 = vld [vmem:[%s6887_s3 + $0x1b8] sm:$0xff] }
 0x263   :  { %v1283_v10 = vadd.f32 %v4830_v28, %v1229_v29  ;;  %v1546_v29 = vld [vmem:[%s6887_s3 + $0x1c8] sm:$0x3f]  ;;  %v938_v36 = vpop.f32.mrf.mxu3 }
 0x264   :  { %3506 = vmatpush.msk.msrb.mxu1 %vm1631_vm2, %v1546_v29  ;;  %v992_v34 = vadd.f32 %v846_v62, %v748_v4 }
 0x265   :  { %v5046_v17 = vmax.f32 %v1281_v7, %v1283_v10  ;;  %v852_v10 = vpop.f32.mrf.mxu2 }
 0x266   :  { %1938 = vmatpush.msrb.mxu1 %v1544_v12 }
 0x267   :  { %1378 = vrot.lane.b32.xlu0 %v5046_v17, %s3820_s10  ;;  %v1084_v11 = vpop.f32.mrf.mxu0 }
 0x268   :  { %v1232_v59 = vadd.f32 %v1084_v11, %v988_v6  ;;  %v1170_v63 = vpop.f32.mrf.mxu1  ;;  %v3425_v6 = vld [vmem:[%s6887_s3 + $0x1f0] sm:$0xff]  ;;  %v6989_v11 = vld [vmem:[#allocation49_spill] sm:$0xff] }
 0x269   :  { %v1231_v45 = vadd.f32 %v1170_v63, %v987_v3  ;;  %1651 = vmatpush.msrb.mxu2 %v3425_v6  ;;  %v3455_v63 = vld [vmem:[%s6887_s3 + $0x2e0] sm:$0xff]  ;;  %v3421_v3 = vld [vmem:[%s6887_s3 + $0x1d0] sm:$0xff]  ;;  %v6999_v6 = vld [vmem:[#allocation55_spill] sm:$0xff] }
 0x26a   :  { %v1286_v39 = vadd.f32 %v4808_v9, %v1232_v59  ;;  %v747_v59 = vadd.f32 %v6989_v11, %v6988_v0  ;;  %1693 = vmatpush.msra.mxu3 %v3455_v63  ;;  %v1516_v11 = vld [vmem:[%s6887_s3 + $0xd8] sm:$0xff] }
 0x26b   :  { %v1285_v57 = vadd.f32 %v4830_v28, %v1231_v45  ;;  %1895 = vmatpush.msrb.mxu0 %v1516_v11 }
 0x26c   :  { %v5060_v14 = vmax.f32 %v1284_v48, %v1286_v39  ;;  %v3423_v39 = vld [vmem:[%s6887_s3 + $0x1e0] sm:$0xff]  ;;  %v991_v41 = vadd.f32 %v5036_v49, %v747_v59  ;;  %1694 = vmatpush.msra.mxu3 %v3453_v1  ;;  %v941_v49 = vpop.f32.mrf.mxu3  ;;  %v754_v1 = vadd.f32 %v7001_v15, %v7000_v16 }
 0x26d   :  { %1652 = vmatpush.msrb.mxu2 %v3423_v39  ;;  %v855_v45 = vpop.f32.mrf.mxu2 }
 0x26e   :  { %1380 = vrot.lane.b32.xlu1 %v5060_v14, %s3820_s10 }
 0x26f   :  { %v1087_v27 = vpop.f32.mrf.mxu0  ;;  %1653 = vmatpush.msrb.mxu2 %v3421_v3 }
 0x270   :  { %v1173_v5 = vpop.f32.mrf.mxu1  ;;  %v1234_v7 = vadd.f32 %v1087_v27, %v990_v22 }
 0x271   :  { %v1233_v23 = vadd.f32 %v1173_v5, %v989_v40  ;;  %v6992_v5 = vld [vmem:[#allocation20_spill] sm:$0xff] }
 0x272   :  { %v1288_v62 = vadd.f32 %v4808_v9, %v1234_v7 }
 0x273   :  { %v1287_v53 = vadd.f32 %v4830_v28, %v1233_v23  ;;  %v6993_v23 = vld [vmem:[#allocation50_spill] sm:$0xff] }
 0x274   :  { %v750_v51 = vadd.f32 %v6993_v23, %v6992_v5 }
 0x275   :  { %v5085_v46 = vmax.f32 %v1285_v57, %v1287_v53  ;;  %v6994_v57 = vld [vmem:[#allocation22_spill] sm:$0xff]  ;;  %v6995_v53 = vld [vmem:[#allocation52_spill] sm:$0xff]  ;;  %v858_v55 = vpop.f32.mrf.mxu2 }
 0x276   :  { %v752_v43 = vadd.f32 %v6995_v53, %v6994_v57  ;;  %v994_v54 = vadd.f32 %v849_v31, %v750_v51 }
 0x277   :  { %1382 = vrot.lane.b32.xlu2 %v5085_v46, %s3820_s10  ;;  %v1090_v50 = vpop.f32.mrf.mxu0 }
 0x278   :  { %v1236_v42 = vadd.f32 %v1090_v50, %v992_v34  ;;  %v1176_v61 = vpop.f32.mrf.mxu1  ;;  %v996_v25 = vadd.f32 %v852_v10, %v752_v43  ;;  %v944_v34 = vpop.f32.mrf.mxu3 }
 0x279   :  { %v1235_v30 = vadd.f32 %v1176_v61, %v991_v41  ;;  %v6997_v61 = vld [vmem:[#allocation53_spill] sm:$0xff] }
 0x27a   :  { %v1290_v21 = vadd.f32 %v4808_v9, %v1236_v42  ;;  %v6996_v42 = vld [vmem:[#allocation19_spill] sm:$0xff] }
 0x27b   :  { %v1289_v20 = vadd.f32 %v4830_v28, %v1235_v30  ;;  %v751_v32 = vadd.f32 %v6997_v61, %v6996_v42  ;;  %v1542_v30 = vld [vmem:[%s6887_s3 + $0x1a8] sm:$0xff] }
 0x27c   :  { %v5106_v48 = vmax.f32 %v1288_v62, %v1290_v21  ;;  %v6998_v21 = vld [vmem:[#allocation21_spill] sm:$0xff]  ;;  %1939 = vmatpush.msrb.mxu1 %v1542_v30  ;;  %v7011_v30 = vld [vmem:[#allocation60_spill] sm:$0xff] }
 0x27d   :  { %v995_v10 = vadd.f32 %v938_v36, %v751_v32  ;;  %v753_v0 = vadd.f32 %v6999_v6, %v6998_v21  ;;  %v861_v23 = vpop.f32.mrf.mxu2  ;;  %v7006_v32 = vld [vmem:[#allocation25_spill] sm:$0xff] }
 0x27e   :  { %1384 = vrot.lane.b32.xlu0 %v5106_v48, %s3820_s10 }
 0x27f   :  { %v1093_v19 = vpop.f32.mrf.mxu0  ;;  %v997_v59 = vadd.f32 %v941_v49, %v753_v0  ;;  %v7003_v49 = vld [vmem:[#allocation56_spill] sm:$0xff] }
 0x280   :  { %v1179_v40 = vpop.f32.mrf.mxu1  ;;  %v1238_v4 = vadd.f32 %v1093_v19, %v994_v54  ;;  %v7002_v19 = vld [vmem:[#allocation26_spill] sm:$0xff]  ;;  %v947_v5 = vpop.f32.mrf.mxu3 }
 0x281   :  { %v1237_v27 = vadd.f32 %v1179_v40, %v993_v33  ;;  %v756_v40 = vadd.f32 %v7003_v49, %v7002_v19 }
 0x282   :  { %v1292_v7 = vadd.f32 %v4808_v9, %v1238_v4  ;;  %v7004_v4 = vld [vmem:[#allocation23_spill] sm:$0xff] }
 0x283   :  { %v1291_v24 = vadd.f32 %v4830_v28, %v1237_v27  ;;  %v998_v27 = vadd.f32 %v855_v45, %v754_v1  ;;  %v1540_v1 = vld [vmem:[%s6887_s3 + $0x198] sm:$0xff] }
 0x284   :  { %1940 = vmatpush.msrb.mxu1 %v1540_v1 }
 0x285   :  { %v5128_v8 = vmax.f32 %v1289_v20, %v1291_v24  ;;  %v1000_v20 = vadd.f32 %v858_v55, %v756_v40  ;;  %v7007_v55 = vld [vmem:[#allocation59_spill] sm:$0xff]  ;;  %v864_v6 = vpop.f32.mrf.mxu2 }
 0x287   :  { %1386 = vrot.lane.b32.xlu1 %v5128_v8, %s3820_s10  ;;  %v1096_v22 = vpop.f32.mrf.mxu0 }
 0x288   :  { %v1240_v29 = vadd.f32 %v1096_v22, %v996_v25  ;;  %v1182_v31 = vpop.f32.mrf.mxu1  ;;  %v7005_v22 = vld [vmem:[#allocation57_spill] sm:$0xff]  ;;  %v950_v21 = vpop.f32.mrf.mxu3 }
 0x289   :  { %v1239_v63 = vadd.f32 %v1182_v31, %v995_v10  ;;  %v757_v10 = vadd.f32 %v7007_v55, %v7006_v32  ;;  %v7014_v55 = vld [vmem:[#allocation29_spill] sm:$0xff] }
 0x28a   :  { %v1294_v50 = vadd.f32 %v4808_v9, %v1240_v29  ;;  %v755_v29 = vadd.f32 %v7005_v22, %v7004_v4  ;;  %v7013_v4 = vld [vmem:[#allocation61_spill] sm:$0xff] }
 0x28b   :  { %v1293_v3 = vadd.f32 %v4830_v28, %v1239_v63 }
 0x28c   :  { %v5142_v62 = vmax.f32 %v1292_v7, %v1294_v50  ;;  %v1514_v7 = vld [vmem:[%s6887_s3 + $0xc8] sm:$0xff]  ;;  %v999_v61 = vadd.f32 %v944_v34, %v755_v29 }
 0x28d   :  { %1896 = vmatpush.msrb.mxu0 %v1514_v7 }
 0x28e   :  { %1388 = vrot.lane.b32.xlu2 %v5142_v62, %s3820_s10 }
 0x28f   :  { %1356 = vrot.lane.b32.xlu1 %v4825_v58, %s3820_s10  ;;  %v1099_v39 = vpop.f32.mrf.mxu0 }
 0x290   :  { %v1185_v41 = vpop.f32.mrf.mxu1  ;;  %v1361_v26 = vpop.permute.xlu0 %1360  ;;  %v1242_v24 = vadd.f32 %v1099_v39, %v998_v27 }
 0x291   :  { %v1241_v36 = vadd.f32 %v1185_v41, %v997_v59  ;;  %v7008_v41 = vld [vmem:[#allocation28_spill] sm:$0xff] }
 0x292   :  { %v1296_v45 = vadd.f32 %v4808_v9, %v1242_v24  ;;  %v953_v24 = vpop.f32.mrf.mxu3 }
 0x293   :  { %v1295_v33 = vadd.f32 %v4830_v28, %v1241_v36 }
 0x295   :  { %v5162_v51 = vmax.f32 %v1293_v3, %v1295_v33  ;;  %v1512_v3 = vld [vmem:[%s6887_s3 + $0xb8] sm:$0xff]  ;;  %v7010_v33 = vld [vmem:[#allocation30_spill] sm:$0xff] }
 0x296   :  { %1358 = vrot.lane.b32.xlu2 %v4850_v13, %s3820_s10  ;;  %v760_v19 = vadd.f32 %v7011_v30, %v7010_v33  ;;  %1897 = vmatpush.msrb.mxu0 %v1512_v3 }
 0x297   :  { %1390 = vrot.lane.b32.xlu0 %v5162_v51, %s3820_s10  ;;  %v1102_v57 = vpop.f32.mrf.mxu0 }
 0x298   :  { %v1244_v53 = vadd.f32 %v1102_v57, %v1000_v20  ;;  %v1188_v43 = vpop.f32.mrf.mxu1  ;;  %v1369_v63 = vpop.permute.xlu2 %1368  ;;  %v1004_v27 = vadd.f32 %v864_v6, %v760_v19  ;;  %v7020_v19 = vld [vmem:[#allocation64_spill] sm:$0xff] }
 0x299   :  { %v1363_v54 = vpop.permute.xlu0 %1362  ;;  %v1243_v0 = vadd.f32 %v1188_v43, %v999_v61  ;;  %v867_v43 = vpop.f32.mrf.mxu2 }
 0x29a   :  { %v1298_v44 = vadd.f32 %v4808_v9, %v1244_v53  ;;  %v1406_v12 = vsel %vm1404_vm3, %v1361_v26, %v1363_v54  ;;  %v1444_v25 = vmax.f32 %v4895_v47, %v1363_v54  ;;  %v7009_v26 = vld [vmem:[#allocation58_spill] sm:$0xff]  ;;  %v956_v1 = vpop.f32.mrf.mxu3 }
 0x29b   :  { %v1443_v31 = vmax.f32 %v4866_v37, %v1406_v12  ;;  %v1001_v37 = vadd.f32 %v947_v5, %v757_v10  ;;  %v758_v36 = vadd.f32 %v7009_v26, %v7008_v41  ;;  %v1297_v16 = vadd.f32 %v4830_v28, %v1243_v0  ;;  %v7015_v10 = vld [vmem:[#allocation63_spill] sm:$0xff]  ;;  %v7016_v41 = vld [vmem:[#allocation2_spill] sm:$0xff]  ;;  %v7017_v26 = vld [vmem:[#allocation37_spill] sm:$0xff] }
 0x29c   :  { %v5178_v50 = vand.u32 2147483647, %v1444_v25  ;;  %v5180_v42 = vmax.f32 %v1296_v45, %v1298_v44  ;;  %v7012_v25 = vld [vmem:[#allocation27_spill] sm:$0xff] }
 0x29d   :  { %v5184_v47 = vand.u32 2147483647, %v1443_v31  ;;  %v1002_v49 = vadd.f32 %v861_v23, %v758_v36  ;;  %v759_v22 = vadd.f32 %v7013_v4, %v7012_v25  ;;  %v7018_v36 = vld [vmem:[#allocation32_spill] sm:$0xff]  ;;  %v7021_v4 = vld [vmem:[#allocation31_spill] sm:$0xff] }
 0x29e   :  { %3480 = vmatmul.msk.f32.vlgmr.msra.gmra.mxu3 %vm1606_vm4, %v5178_v50 }
 0x29f   :  { %1392 = vrot.lane.b32.xlu0 %v5180_v42, %s3820_s10  ;;  %1654 = vmatmul.f32.vlgmr.msrb.gmra.mxu2 %v5184_v47  ;;  %v1105_v11 = vpop.f32.mrf.mxu0  ;;  %v1003_v32 = vadd.f32 %v950_v21, %v759_v22  ;;  %v7022_v22 = vld [vmem:[#allocation65_spill] sm:$0xff] }
 0x2a0   :  { %v1191_v59 = vpop.f32.mrf.mxu1  ;;  %v1365_v34 = vpop.permute.xlu1 %1364  ;;  %v1246_v5 = vadd.f32 %v1105_v11, %v1002_v49 }
 0x2a1   :  { %v1245_v39 = vadd.f32 %v1191_v59, %v1001_v37  ;;  %v1371_v29 = vpop.permute.xlu2 %1370  ;;  %v761_v37 = vadd.f32 %v7015_v10, %v7014_v55  ;;  %v870_v3 = vpop.f32.mrf.mxu2  ;;  %v7023_v10 = vld [vmem:[#allocation33_spill] sm:$0xff] }
 0x2a2   :  { %v1300_v45 = vadd.f32 %v4808_v9, %v1246_v5  ;;  %v1408_v0 = vsel %vm1404_vm3, %v1369_v63, %v1371_v29  ;;  %v1448_v21 = vmax.f32 %v4981_v56, %v1371_v29  ;;  %v431_v63 = vadd.f32 %v7017_v26, %v7016_v41  ;;  %v1538_v5 = vld [vmem:[%s6887_s3 + $0x188] sm:$0xff]  ;;  %v1536_v41 = vld [vmem:[%s6887_s3 + $0x178] sm:$0xff] }
 0x2a3   :  { %v1299_v15 = vadd.f32 %v4830_v28, %v1245_v39  ;;  %1941 = vmatpush.msrb.mxu1 %v1538_v5  ;;  %v763_v29 = vadd.f32 %v7022_v22, %v7021_v4  ;;  %v1530_v5 = vld [vmem:[%s6887_s3 + $0x148] sm:$0xff]  ;;  %v3466_v4 = vld [vmem:[%s6887_s3 + $0x338] sm:$0xff] }
 0x2a4   :  { %v764_v49 = vadd.f32 %v7020_v19, %v431_v63  ;;  %v5237_v56 = vand.u32 2147483647, %v1448_v21  ;;  %v3448_v21 = vld [vmem:[%s6887_s3 + $0x2a8] sm:$0xff] }
 0x2a5   :  { %v5203_v40 = vmax.f32 %v1297_v16, %v1299_v15  ;;  %v7019_v16 = vld [vmem:[#allocation62_spill] sm:$0xff]  ;;  %v1007_v55 = vadd.f32 %v956_v1, %v763_v29  ;;  %1942 = vmatpush.msrb.mxu1 %v1536_v41  ;;  %v3472_v1 = vld [vmem:[%s6887_s3 + $0x368] sm:$0xff]  ;;  %v3462_v41 = vld [vmem:[%s6887_s3 + $0x318] sm:$0xff] }
 0x2a6   :  { %v762_v15 = vadd.f32 %v7019_v16, %v7018_v36  ;;  %v3446_v16 = vld [vmem:[%s6887_s3 + $0x298] sm:$0xff]  ;;  %v1506_v19 = vld [vmem:[%s6887_s3 + $0x88] sm:$0xff] }
 0x2a7   :  { %1394 = vrot.lane.b32.xlu1 %v5203_v40, %s3820_s10  ;;  %v1108_v20 = vpop.f32.mrf.mxu0  ;;  %v1522_v22 = vld [vmem:[%s6887_s3 + $0x108] sm:$0xff] }
 0x2a8   :  { %v1248_v57 = vadd.f32 %v1108_v20, %v1004_v27  ;;  %v1194_v53 = vpop.f32.mrf.mxu1  ;;  %v1006_v27 = vadd.f32 %v867_v43, %v762_v15  ;;  %v3452_v20 = vld [vmem:[%s6887_s3 + $0x2c8] sm:$0xff]  ;;  %v1008_v43 = vadd.f32 %v870_v3, %v764_v49 }
 0x2a9   :  { %v1367_v54 = vpop.permute.xlu1 %1366  ;;  %1720 = vmatpush.msra.mxu2 %v3452_v20  ;;  %v3444_v3 = vld [vmem:[%s6887_s3 + $0x288] sm:$0xff] }
 0x2aa   :  { %v1302_v44 = vadd.f32 %v4808_v9, %v1248_v57  ;;  %v1407_v23 = vsel %vm1404_vm3, %v1365_v34, %v1367_v54  ;;  %v1446_v12 = vmax.f32 %v4940_v52, %v1367_v54  ;;  %v1005_v52 = vadd.f32 %v953_v24, %v761_v37  ;;  %v7024_v37 = vld [vmem:[#allocation66_spill] sm:$0xff]  ;;  %v3440_v20 = vld [vmem:[%s6887_s3 + $0x268] sm:$0xff] }
 0x2ab   :  { %v1445_v31 = vmax.f32 %v4911_v35, %v1407_v23  ;;  %v1247_v35 = vadd.f32 %v1194_v53, %v1003_v32  ;;  %v1447_v34 = vmax.f32 %v4960_v2, %v1408_v0  ;;  %v1510_v2 = vld [vmem:[%s6887_s3 + $0xa8] sm:$0xff]  ;;  %v3478_v53 = vld [vmem:[%s6887_s3 + $0x398] sm:$0x3f]  ;;  %v765_v0 = vadd.f32 %v7024_v37, %v7023_v10 }
 0x2ac   :  { %v5214_v7 = vand.u32 2147483647, %v1446_v12  ;;  %v5216_v61 = vmax.f32 %v1300_v45, %v1302_v44  ;;  %1898 = vmatpush.msrb.mxu0 %v1510_v2  ;;  %3488 = vmatpush.msk.msrb.mxu3 %vm1631_vm2, %v3478_v53  ;;  %v1532_v2 = vld [vmem:[%s6887_s3 + $0x158] sm:$0xff] }
 0x2ad   :  { %v5220_v6 = vand.u32 2147483647, %v1445_v31  ;;  %v1301_v33 = vadd.f32 %v4830_v28, %v1247_v35  ;;  %v5248_v24 = vand.u32 2147483647, %v1447_v34  ;;  %v959_v31 = vpop.f32.mrf.mxu3  ;;  %v3476_v35 = vld [vmem:[%s6887_s3 + $0x388] sm:$0xff]  ;;  %v3474_v34 = vld [vmem:[%s6887_s3 + $0x378] sm:$0xff] }
 0x2ae   :  { %3481 = vmatmul.msk.f32.gmra.mxu3 %vm1606_vm4, %v5214_v7  ;;  %1396 = vrot.lane.b32.xlu2 %v5216_v61, %s3820_s10 }
 0x2af   :  { %1657 = vmatmul.f32.gmra.mxu2 %v5220_v6  ;;  %v1111_v11 = vpop.f32.mrf.mxu0  ;;  %1765 = vmatpush.msrb.mxu3 %v3476_v35 }
 0x2b0   :  { %v1197_v59 = vpop.f32.mrf.mxu1  ;;  %v1250_v54 = vadd.f32 %v1111_v11, %v1006_v27 }
 0x2b1   :  { %v1249_v39 = vadd.f32 %v1197_v59, %v1005_v52  ;;  %v3450_v52 = vld [vmem:[%s6887_s3 + $0x2b8] sm:$0xff]  ;;  %1766 = vmatpush.msrb.mxu3 %v3474_v34 }
 0x2b2   :  { %v1304_v12 = vadd.f32 %v4808_v9, %v1250_v54  ;;  %1721 = vmatpush.msra.mxu2 %v3450_v52  ;;  %v1508_v59 = vld [vmem:[%s6887_s3 + $0x98] sm:$0xff]  ;;  %v3468_v54 = vld [vmem:[%s6887_s3 + $0x348] sm:$0xff] }
 0x2b3   :  { %v1303_v30 = vadd.f32 %v4830_v28, %v1249_v39  ;;  %1899 = vmatpush.msrb.mxu0 %v1508_v59  ;;  %1767 = vmatpush.msrb.mxu3 %v3472_v1  ;;  %v1502_v52 = vld [vmem:[%s6887_s3 + $0x68] sm:$0xff]  ;;  %v3434_v34 = vld [vmem:[%s6887_s3 + $0x238] sm:$0xff] }
 0x2b4   :  { %1722 = vmatpush.msra.mxu2 %v3448_v21 }
 0x2b5   :  { %v5250_v57 = vmax.f32 %v1301_v33, %v1303_v30  ;;  %v3442_v33 = vld [vmem:[%s6887_s3 + $0x278] sm:$0xff]  ;;  %1900 = vmatpush.msrb.mxu0 %v1506_v19  ;;  %v3428_v19 = vld [vmem:[%s6887_s3 + $0x208] sm:$0xff] }
 0x2b6   :  { %3482 = vmatmul.msk.f32.gmra.mxu3 %vm1606_vm4, %v5237_v56  ;;  %1723 = vmatpush.msra.mxu2 %v3446_v16  ;;  %v3470_v30 = vld [vmem:[%s6887_s3 + $0x358] sm:$0xff] }
 0x2b7   :  { %1398 = vrot.lane.b32.xlu0 %v5250_v57, %s3820_s10  ;;  %1660 = vmatmul.f32.gmra.mxu2 %v5248_v24  ;;  %v1114_v45 = vpop.f32.mrf.mxu0 }
 0x2b8   :  { %v1252_v44 = vadd.f32 %v1114_v45, %v1008_v43  ;;  %v1200_v23 = vpop.f32.mrf.mxu1  ;;  %1724 = vmatpush.msra.mxu2 %v3444_v3  ;;  %1768 = vmatpush.msrb.mxu3 %v3470_v30  ;;  %v1377_v29 = vpop.permute.xlu2 %1376  ;;  %v1494_v3 = vld [vmem:[%s6887_s3 + $0x28] sm:$0xff] }
 0x2b9   :  { %v1251_v11 = vadd.f32 %v1200_v23, %v1007_v55  ;;  %v1504_v55 = vld [vmem:[%s6887_s3 + $0x78] sm:$0xff]  ;;  %v3460_v30 = vld [vmem:[%s6887_s3 + $0x308] sm:$0xff] }
 0x2ba   :  { %v1306_v25 = vadd.f32 %v4808_v9, %v1252_v44  ;;  %v1009_v9 = vadd.f32 %v959_v31, %v765_v0  ;;  %1725 = vmatpush.msra.mxu2 %v3442_v33  ;;  %v1528_v44 = vld [vmem:[%s6887_s3 + $0x138] sm:$0xff]  ;;  %1769 = vmatpush.msrb.mxu3 %v3468_v54  ;;  %v3436_v31 = vld [vmem:[%s6887_s3 + $0x248] sm:$0xff] }
 0x2bb   :  { %v1305_v63 = vadd.f32 %v4830_v28, %v1251_v11  ;;  %1901 = vmatpush.msrb.mxu0 %v1504_v55  ;;  %v1500_v11 = vld [vmem:[%s6887_s3 + $0x58] sm:$0xff] }
 0x2bc   :  { %v5265_v32 = vmax.f32 %v1304_v12, %v1306_v25  ;;  %1726 = vmatpush.msra.mxu2 %v3440_v20  ;;  %v1524_v25 = vld [vmem:[%s6887_s3 + $0x118] sm:$0xff]  ;;  %1770 = vmatpush.msrb.mxu3 %v3466_v4  ;;  %v3456_v20 = vld [vmem:[%s6887_s3 + $0x2e8] sm:$0xff] }
 0x2bd   :  { %1902 = vmatpush.msrb.mxu0 %v1502_v52  ;;  %v3570_v52 = vld [vmem:[%s6887_s3 + $0x558] sm:$0xff] }
 0x2be   :  { %1400 = vrot.lane.b32.xlu1 %v5265_v32, %s3820_s10 }
 0x2bf   :  { %1903 = vmatpush.msrb.mxu0 %v1500_v11  ;;  %v3568_v11 = vld [vmem:[%s6887_s3 + $0x548] sm:$0xff] }
 0x2c0   :  { %v1203_v39 = vpop.f32.mrf.mxu1  ;;  %v1373_v49 = vpop.permute.xlu0 %1372 }
 0x2c1   :  { %v1253_v26 = vadd.f32 %v1203_v39, %v1009_v9  ;;  %v3432_v39 = vld [vmem:[%s6887_s3 + $0x228] sm:$0xff] }
 0x2c3   :  { %v1307_v36 = vadd.f32 %v4830_v28, %v1253_v26  ;;  %v1534_v28 = vld [vmem:[%s6887_s3 + $0x168] sm:$0xff]  ;;  %v1496_v26 = vld [vmem:[%s6887_s3 + $0x38] sm:$0xff] }
 0x2c4   :  { %1943 = vmatpush.msrb.mxu1 %v1534_v28 }
 0x2c5   :  { %v5294_v15 = vmax.f32 %v1305_v63, %v1307_v36 }
 0x2c6   :  { %1944 = vmatpush.msrb.mxu1 %v1532_v2 }
 0x2c7   :  { %1402 = vrot.lane.b32.xlu2 %v5294_v15, %s3820_s10 }
 0x2c8   :  { %1945 = vmatpush.msrb.mxu1 %v1530_v5  ;;  %v3426_v5 = vld [vmem:[%s6887_s3 + $0x1f8] sm:$0xff] }
 0x2c9   :  { %v1375_v27 = vpop.permute.xlu1 %1374 }
 0x2ca   :  { %v1409_v53 = vsel %vm1404_vm3, %v1373_v49, %v1375_v27  ;;  %v1450_v43 = vmax.f32 %v5016_v60, %v1375_v27  ;;  %v1526_v60 = vld [vmem:[%s6887_s3 + $0x128] sm:$0xff]  ;;  %1946 = vmatpush.msrb.mxu1 %v1528_v44  ;;  %v3458_v27 = vld [vmem:[%s6887_s3 + $0x2f8] sm:$0xff] }
 0x2cb   :  { %v1449_v45 = vmax.f32 %v4993_v18, %v1409_v53  ;;  %v3438_v18 = vld [vmem:[%s6887_s3 + $0x258] sm:$0xff]  ;;  %v1490_v49 = vld [vmem:[%s6887_s3 + $0x8] sm:$0xff] }
 0x2cc   :  { %v5334_v23 = vand.u32 2147483647, %v1450_v43  ;;  %1947 = vmatpush.msrb.mxu1 %v1526_v60  ;;  %1727 = vmatpush.msra.mxu2 %v3438_v18  ;;  %v3424_v53 = vld [vmem:[%s6887_s3 + $0x1e8] sm:$0xff]  ;;  %v3454_v44 = vld [vmem:[%s6887_s3 + $0x2d8] sm:$0xff]  ;;  %v1519_v18 = vld [vmem:[%s6887_s3 + $0xf0] sm:$0xff] }
 0x2cd   :  { %v5336_v12 = vand.u32 2147483647, %v1449_v45  ;;  %v3422_v45 = vld [vmem:[%s6887_s3 + $0x1d8] sm:$0xff] }
 0x2ce   :  { %3483 = vmatmul.msk.f32.gmra.mxu3 %vm1606_vm4, %v5334_v23  ;;  %1948 = vmatpush.msrb.mxu1 %v1524_v25 }
 0x2cf   :  { %1663 = vmatmul.f32.gmra.mxu2 %v5336_v12 }
 0x2d0   :  { %1949 = vmatpush.msrb.mxu1 %v1522_v22  ;;  %1728 = vmatpush.msra.mxu2 %v3436_v31 }
 0x2d1   :  { %v1383_v21 = vpop.permute.xlu2 %1382 }
 0x2d2   :  { %1729 = vmatpush.msra.mxu2 %v3434_v34  ;;  %v1454_v63 = vmax.f32 %v5085_v46, %v1383_v21  ;;  %v3430_v46 = vld [vmem:[%s6887_s3 + $0x218] sm:$0xff] }
 0x2d3   :  { %v3566_v34 = vld [vmem:[%s6887_s3 + $0x538] sm:$0xff] }
 0x2d4   :  { %1730 = vmatpush.msra.mxu2 %v3432_v39  ;;  %v5402_v28 = vand.u32 2147483647, %v1454_v63  ;;  %v1513_v39 = vld [vmem:[%s6887_s3 + $0xc0] sm:$0xff]  ;;  %v1511_v63 = vld [vmem:[%s6887_s3 + $0xb0] sm:$0xff] }
 0x2d6   :  { %1731 = vmatpush.msra.mxu2 %v3430_v46 }
 0x2d8   :  { %1732 = vmatpush.msra.mxu2 %v3428_v19 }
 0x2d9   :  { %v1379_v10 = vpop.permute.xlu0 %1378 }
 0x2da   :  { %v1410_v37 = vsel %vm1404_vm3, %v1377_v29, %v1379_v10  ;;  %v1452_v0 = vmax.f32 %v5046_v17, %v1379_v10  ;;  %v3464_v17 = vld [vmem:[%s6887_s3 + $0x328] sm:$0xff]  ;;  %1733 = vmatpush.msra.mxu2 %v3426_v5 }
 0x2db   :  { %v1451_v35 = vmax.f32 %v5027_v38, %v1410_v37  ;;  %v1498_v38 = vld [vmem:[%s6887_s3 + $0x48] sm:$0xff]  ;;  %1771 = vmatpush.msrb.mxu3 %v3464_v17  ;;  %v1517_v37 = vld [vmem:[%s6887_s3 + $0xe0] sm:$0xff] }
 0x2dc   :  { %v5368_v9 = vand.u32 2147483647, %v1452_v0  ;;  %1904 = vmatpush.msrb.mxu0 %v1498_v38  ;;  %1734 = vmatpush.msra.mxu2 %v3424_v53  ;;  %v1543_v0 = vld [vmem:[%s6887_s3 + $0x1b0] sm:$0xff]  ;;  %v1541_v38 = vld [vmem:[%s6887_s3 + $0x1a0] sm:$0xff]  ;;  %v3556_v53 = vld [vmem:[%s6887_s3 + $0x4e8] sm:$0xff] }
 0x2dd   :  { %v5373_v59 = vand.u32 2147483647, %v1451_v35  ;;  %1772 = vmatpush.msrb.mxu3 %v3462_v41 }
 0x2de   :  { %3484 = vmatmul.msk.f32.gmra.mxu3 %vm1606_vm4, %v5368_v9  ;;  %1905 = vmatpush.msrb.mxu0 %v1496_v26  ;;  %v1539_v26 = vld [vmem:[%s6887_s3 + $0x190] sm:$0xff] }
 0x2df   :  { %1666 = vmatmul.f32.gmra.mxu2 %v5373_v59  ;;  %1773 = vmatpush.msrb.mxu3 %v3460_v30 }
 0x2e0   :  { %v1381_v36 = vpop.permute.xlu1 %1380  ;;  %1906 = vmatpush.msrb.mxu0 %v1494_v3  ;;  %1735 = vmatpush.msra.mxu2 %v3422_v45  ;;  %v3560_v3 = vld [vmem:[%s6887_s3 + $0x508] sm:$0xff]  ;;  %v3538_v45 = vld [vmem:[%s6887_s3 + $0x458] sm:$0xff] }
 0x2e1   :  { %v1411_v16 = vsel %vm1404_vm3, %v1381_v36, %v1383_v21  ;;  %1774 = vmatpush.msrb.mxu3 %v3458_v27  ;;  %v3562_v36 = vld [vmem:[%s6887_s3 + $0x518] sm:$0xff] }
 0x2e2   :  { %v1453_v1 = vmax.f32 %v5060_v14, %v1411_v16  ;;  %v1492_v14 = vld [vmem:[%s6887_s3 + $0x18] sm:$0xff]  ;;  %1811 = vmatpush.msrb.mxu2 %v1519_v18  ;;  %v3536_v18 = vld [vmem:[%s6887_s3 + $0x448] sm:$0xff] }
 0x2e3   :  { %1907 = vmatpush.msrb.mxu0 %v1492_v14  ;;  %1775 = vmatpush.msrb.mxu3 %v3456_v20  ;;  %v3546_v16 = vld [vmem:[%s6887_s3 + $0x498] sm:$0xff]  ;;  %v3544_v14 = vld [vmem:[%s6887_s3 + $0x488] sm:$0xff] }
 0x2e4   :  { %v5404_v33 = vand.u32 2147483647, %v1453_v1  ;;  %1812 = vmatpush.msrb.mxu2 %v1517_v37  ;;  %v3542_v27 = vld [vmem:[%s6887_s3 + $0x478] sm:$0xff]  ;;  %v3540_v20 = vld [vmem:[%s6887_s3 + $0x468] sm:$0xff]  ;;  %v1503_v37 = vld [vmem:[%s6887_s3 + $0x70] sm:$0xff] }
 0x2e5   :  { %1908 = vmatpush.msrb.mxu0 %v1490_v49  ;;  %1776 = vmatpush.msrb.mxu3 %v3454_v44  ;;  %v3554_v44 = vld [vmem:[%s6887_s3 + $0x4d8] sm:$0xff] }
 0x2e6   :  { %3485 = vmatmul.msk.f32.gmra.mxu3 %vm1606_vm4, %v5402_v28 }
 0x2e7   :  { %1669 = vmatmul.f32.gmra.mxu2 %v5404_v33  ;;  %2125 = vmatpush.msra.mxu0 %v3546_v16  ;;  %v1525_v16 = vld [vmem:[%s6887_s3 + $0x120] sm:$0xff] }
 0x2e8   :  { %v5427_v2 = vpop.permute.xlu2 %1388 }
 0x2e9   :  { %2126 = vmatpush.msra.mxu0 %v3544_v14  ;;  %v1489_v14 = vld [vmem:[%s6887_s3] sm:$0xff] }
 0x2eb   :  { %2127 = vmatpush.msra.mxu0 %v3542_v27  ;;  %v3545_v27 = vld [vmem:[%s6887_s3 + $0x490] sm:$0xff] }
 0x2ed   :  { %2128 = vmatpush.msra.mxu0 %v3540_v20  ;;  %v3648_v20 = vld [vmem:[%s6887_s3 + $0x738] sm:$0x3f] }
 0x2ef   :  { %2129 = vmatpush.msra.mxu0 %v3538_v45  ;;  %v3644_v45 = vld [vmem:[%s6887_s3 + $0x718] sm:$0xff] }
 0x2f0   :  { %v1359_v43 = vpop.permute.xlu2 %1358  ;;  %v1385_v25 = vpop.permute.xlu0 %1384 }
 0x2f1   :  { %v1442_v54 = vmax.f32 %v4850_v13, %v1359_v43  ;;  %v1545_v13 = vld [vmem:[%s6887_s3 + $0x1c0] sm:$0x3f]  ;;  %2130 = vmatpush.msra.mxu0 %v3536_v18  ;;  %v3642_v18 = vld [vmem:[%s6887_s3 + $0x708] sm:$0xff] }
 0x2f2   :  { %3497 = vmatpush.msk.msra.mxu3 %vm1631_vm2, %v1545_v13  ;;  %v3552_v13 = vld [vmem:[%s6887_s3 + $0x4c8] sm:$0xff] }
 0x2f3   :  { %v5445_v60 = vand.u32 2147483647, %v1442_v54  ;;  %v1535_v54 = vld [vmem:[%s6887_s3 + $0x170] sm:$0xff] }
 0x2f4   :  { %1856 = vmatpush.msra.mxu3 %v1543_v0  ;;  %v3532_v0 = vld [vmem:[%s6887_s3 + $0x428] sm:$0xff] }
 0x2f5   :  { %3507 = vmatmul.msk.f32.vlgmr.msrb.gmra.mxu1 %vm1606_vm4, %v5445_v60 }
 0x2f6   :  { %1857 = vmatpush.msra.mxu3 %v1541_v38  ;;  %v1527_v38 = vld [vmem:[%s6887_s3 + $0x130] sm:$0xff] }
 0x2f8   :  { %1858 = vmatpush.msra.mxu3 %v1539_v26  ;;  %v3520_v26 = vld [vmem:[%s6887_s3 + $0x3c8] sm:$0xff] }
 0x2f9   :  { %v1387_v4 = vpop.permute.xlu1 %1386 }
 0x2fa   :  { %v1412_v22 = vsel %vm1404_vm3, %v1385_v25, %v1387_v4  ;;  %v1456_v29 = vmax.f32 %v5128_v8, %v1387_v4  ;;  %v3572_v8 = vld [vmem:[%s6887_s3 + $0x568] sm:$0x3f]  ;;  %v1505_v25 = vld [vmem:[%s6887_s3 + $0x80] sm:$0xff]  ;;  %v3550_v4 = vld [vmem:[%s6887_s3 + $0x4b8] sm:$0xff] }
 0x2fb   :  { %v1455_v31 = vmax.f32 %v5106_v48, %v1412_v22  ;;  %v1515_v48 = vld [vmem:[%s6887_s3 + $0xd0] sm:$0xff]  ;;  %3582 = vmatpush.msk.msra.mxu1 %vm1631_vm2, %v3572_v8  ;;  %v3534_v22 = vld [vmem:[%s6887_s3 + $0x438] sm:$0xff] }
 0x2fc   :  { %v5459_v55 = vand.u32 2147483647, %v1456_v29  ;;  %1813 = vmatpush.msrb.mxu2 %v1515_v48  ;;  %v1533_v29 = vld [vmem:[%s6887_s3 + $0x160] sm:$0xff]  ;;  %2131 = vmatpush.msra.mxu0 %v3534_v22  ;;  %v3530_v8 = vld [vmem:[%s6887_s3 + $0x418] sm:$0xff]  ;;  %v1531_v48 = vld [vmem:[%s6887_s3 + $0x150] sm:$0xff] }
 0x2fd   :  { %v5461_v10 = vand.u32 2147483647, %v1455_v31  ;;  %3508 = vmatmul.msk.f32.gmra.mxu1 %vm1606_vm4, %v5178_v50  ;;  %v3548_v31 = vld [vmem:[%s6887_s3 + $0x4a8] sm:$0xff] }
 0x2fe   :  { %3486 = vmatmul.msk.f32.gmra.mxu3 %vm1606_vm4, %v5459_v55  ;;  %2170 = vmatpush.msra.mxu1 %v3570_v52  ;;  %v1501_v52 = vld [vmem:[%s6887_s3 + $0x60] sm:$0xff]  ;;  %v3638_v22 = vld [vmem:[%s6887_s3 + $0x6e8] sm:$0xff] }
 0x2ff   :  { %1672 = vmatmul.f32.gmra.mxu2 %v5461_v10  ;;  %2132 = vmatpush.msra.mxu0 %v3532_v0  ;;  %v3535_v0 = vld [vmem:[%s6887_s3 + $0x440] sm:$0xff] }
 0x300   :  { %2171 = vmatpush.msra.mxu1 %v3568_v11  ;;  %1814 = vmatpush.msrb.mxu2 %v1513_v39  ;;  %v3526_v11 = vld [vmem:[%s6887_s3 + $0x3f8] sm:$0xff]  ;;  %v3524_v39 = vld [vmem:[%s6887_s3 + $0x3e8] sm:$0xff] }
 0x301   :  { %v1357_v35 = vpop.permute.xlu1 %1356  ;;  %2133 = vmatpush.msra.mxu0 %v3530_v8  ;;  %v3563_v8 = vld [vmem:[%s6887_s3 + $0x520] sm:$0xff] }
 0x302   :  { %v1405_v21 = vsel %vm1404_vm3, %v1357_v35, %v1359_v43  ;;  %2172 = vmatpush.msra.mxu1 %v3566_v34  ;;  %1815 = vmatpush.msrb.mxu2 %v1511_v63  ;;  %v1507_v43 = vld [vmem:[%s6887_s3 + $0x90] sm:$0xff]  ;;  %v3528_v35 = vld [vmem:[%s6887_s3 + $0x408] sm:$0xff]  ;;  %v1497_v34 = vld [vmem:[%s6887_s3 + $0x40] sm:$0xff] }
 0x303   :  { %v1441_v17 = vmax.f32 %v4825_v58, %v1405_v21  ;;  %v3564_v58 = vld [vmem:[%s6887_s3 + $0x528] sm:$0xff]  ;;  %v1499_v21 = vld [vmem:[%s6887_s3 + $0x50] sm:$0xff]  ;;  %2134 = vmatpush.msra.mxu0 %v3528_v35  ;;  %v3518_v63 = vld [vmem:[%s6887_s3 + $0x3b8] sm:$0xff] }
 0x304   :  { %2173 = vmatpush.msra.mxu1 %v3564_v58  ;;  %v3522_v58 = vld [vmem:[%s6887_s3 + $0x3d8] sm:$0xff] }
 0x305   :  { %v5498_v41 = vand.u32 2147483647, %v1441_v17  ;;  %3509 = vmatmul.msk.f32.gmra.mxu1 %vm1606_vm4, %v5214_v7  ;;  %v1529_v17 = vld [vmem:[%s6887_s3 + $0x140] sm:$0xff]  ;;  %2135 = vmatpush.msra.mxu0 %v3526_v11  ;;  %v3632_v35 = vld [vmem:[%s6887_s3 + $0x6b8] sm:$0xff] }
 0x306   :  { %2174 = vmatpush.msra.mxu1 %v3562_v36  ;;  %v1495_v36 = vld [vmem:[%s6887_s3 + $0x30] sm:$0xff]  ;;  %v3616_v11 = vld [vmem:[%s6887_s3 + $0x638] sm:$0xff] }
 0x307   :  { %1909 = vmatmul.f32.vlgmr.msrb.gmra.mxu0 %v5498_v41 }
 0x308   :  { %2175 = vmatpush.msra.mxu1 %v3560_v3  ;;  %2136 = vmatpush.msra.mxu0 %v3524_v39  ;;  %v3516_v3 = vld [vmem:[%s6887_s3 + $0x3a8] sm:$0xff]  ;;  %v3628_v39 = vld [vmem:[%s6887_s3 + $0x698] sm:$0xff] }
 0x309   :  { %v1391_v1 = vpop.permute.xlu0 %1390 }
 0x30a   :  { %v1413_v46 = vsel %vm1404_vm3, %v5427_v2, %v1391_v1  ;;  %v1458_v30 = vmax.f32 %v5162_v51, %v1391_v1  ;;  %v1509_v51 = vld [vmem:[%s6887_s3 + $0xa0] sm:$0xff]  ;;  %v3558_v2 = vld [vmem:[%s6887_s3 + $0x4f8] sm:$0xff]  ;;  %2137 = vmatpush.msra.mxu0 %v3522_v58 }
 0x30b   :  { %v1457_v19 = vmax.f32 %v5142_v62, %v1413_v46  ;;  %v1537_v62 = vld [vmem:[%s6887_s3 + $0x180] sm:$0xff]  ;;  %1816 = vmatpush.msrb.mxu2 %v1509_v51  ;;  %2176 = vmatpush.msra.mxu1 %v3558_v2  ;;  %v1523_v46 = vld [vmem:[%s6887_s3 + $0x110] sm:$0xff]  ;;  %v3612_v58 = vld [vmem:[%s6887_s3 + $0x618] sm:$0xff] }
 0x30c   :  { %v5528_v49 = vand.u32 2147483647, %v1458_v30  ;;  %1859 = vmatpush.msra.mxu3 %v1537_v62  ;;  %v1493_v1 = vld [vmem:[%s6887_s3 + $0x20] sm:$0xff]  ;;  %2138 = vmatpush.msra.mxu0 %v3520_v26  ;;  %v1491_v30 = vld [vmem:[%s6887_s3 + $0x10] sm:$0xff] }
 0x30d   :  { %v5533_v5 = vand.u32 2147483647, %v1457_v19  ;;  %3510 = vmatmul.msk.f32.gmra.mxu1 %vm1606_vm4, %v5237_v56  ;;  %1817 = vmatpush.msrb.mxu2 %v1507_v43  ;;  %v1521_v19 = vld [vmem:[%s6887_s3 + $0x100] sm:$0xff]  ;;  %v3569_v2 = vld [vmem:[%s6887_s3 + $0x550] sm:$0xff]  ;;  %v3646_v43 = vld [vmem:[%s6887_s3 + $0x728] sm:$0xff] }
 0x30e   :  { %3487 = vmatmul.msk.f32.gmra.mxu3 %vm1606_vm4, %v5528_v49  ;;  %2177 = vmatpush.msra.mxu1 %v3556_v53  ;;  %v3571_v51 = vld [vmem:[%s6887_s3 + $0x560] sm:$0x3f]  ;;  %v3541_v53 = vld [vmem:[%s6887_s3 + $0x470] sm:$0xff] }
 0x30f   :  { %1675 = vmatmul.f32.gmra.mxu2 %v5533_v5  ;;  %1912 = vmatmul.f32.gmra.mxu0 %v5184_v47  ;;  %v3543_v62 = vld [vmem:[%s6887_s3 + $0x480] sm:$0xff] }
 0x310   :  { %1860 = vmatpush.msra.mxu3 %v1535_v54  ;;  %2178 = vmatpush.msra.mxu1 %v3554_v44  ;;  %v3567_v54 = vld [vmem:[%s6887_s3 + $0x540] sm:$0xff] }
 0x311   :  { %1818 = vmatpush.msrb.mxu2 %v1505_v25  ;;  %2139 = vmatpush.msra.mxu0 %v3518_v63  ;;  %v3539_v44 = vld [vmem:[%s6887_s3 + $0x460] sm:$0xff]  ;;  %v3565_v25 = vld [vmem:[%s6887_s3 + $0x530] sm:$0xff]  ;;  %v3626_v63 = vld [vmem:[%s6887_s3 + $0x688] sm:$0xff] }
 0x312   :  { %2179 = vmatpush.msra.mxu1 %v3552_v13  ;;  %1861 = vmatpush.msra.mxu3 %v1533_v29  ;;  %v3640_v13 = vld [vmem:[%s6887_s3 + $0x6f8] sm:$0xff]  ;;  %v3622_v29 = vld [vmem:[%s6887_s3 + $0x668] sm:$0xff]  ;;  %v3531_v26 = vld [vmem:[%s6887_s3 + $0x420] sm:$0xff] }
 0x313   :  { %1819 = vmatpush.msrb.mxu2 %v1503_v37  ;;  %2140 = vmatpush.msra.mxu0 %v3516_v3  ;;  %v3620_v37 = vld [vmem:[%s6887_s3 + $0x658] sm:$0xff] }
 0x314   :  { %2180 = vmatpush.msra.mxu1 %v3550_v4  ;;  %1862 = vmatpush.msra.mxu3 %v1531_v48  ;;  %v3537_v4 = vld [vmem:[%s6887_s3 + $0x450] sm:$0xff]  ;;  %v3634_v48 = vld [vmem:[%s6887_s3 + $0x6c8] sm:$0xff]  ;;  %v3624_v3 = vld [vmem:[%s6887_s3 + $0x678] sm:$0xff] }
 0x315   :  { %3511 = vmatmul.msk.f32.gmra.mxu1 %vm1606_vm4, %v5334_v23  ;;  %1820 = vmatpush.msrb.mxu2 %v1501_v52  ;;  %v3618_v52 = vld [vmem:[%s6887_s3 + $0x648] sm:$0xff] }
 0x316   :  { %3489 = vmatmul.msk.f32.vlgmr.msrb.gmra.mxu3 %vm1606_vm4, %v5178_v50  ;;  %2181 = vmatpush.msra.mxu1 %v3548_v31  ;;  %v3636_v31 = vld [vmem:[%s6887_s3 + $0x6d8] sm:$0xff] }
 0x317   :  { %1736 = vmatmul.f32.vlgmr.msra.gmra.mxu2 %v5184_v47  ;;  %1915 = vmatmul.f32.gmra.mxu0 %v5220_v6 }
 0x318   :  { %1821 = vmatpush.msrb.mxu2 %v1499_v21  ;;  %1863 = vmatpush.msra.mxu3 %v1529_v17  ;;  %v3533_v21 = vld [vmem:[%s6887_s3 + $0x430] sm:$0xff]  ;;  %v3630_v17 = vld [vmem:[%s6887_s3 + $0x6a8] sm:$0xff] }
 0x319   :  { %3658 = vmatpush.msk.msrb.mxu1 %vm1631_vm2, %v3648_v20  ;;  %2373 = vmatpush.msrb.mxu0 %v3622_v29  ;;  %v3600_v20 = vld [vmem:[%s6887_s3 + $0x5b8] sm:$0xff]  ;;  %v3551_v29 = vld [vmem:[%s6887_s3 + $0x4c0] sm:$0xff] }
 0x31a   :  { %1822 = vmatpush.msrb.mxu2 %v1497_v34  ;;  %1864 = vmatpush.msra.mxu3 %v1527_v38  ;;  %v3561_v34 = vld [vmem:[%s6887_s3 + $0x510] sm:$0xff]  ;;  %v3614_v38 = vld [vmem:[%s6887_s3 + $0x628] sm:$0xff] }
 0x31b   :  { %2418 = vmatpush.msrb.mxu1 %v3646_v43  ;;  %2374 = vmatpush.msrb.mxu0 %v3620_v37  ;;  %v3555_v43 = vld [vmem:[%s6887_s3 + $0x4e0] sm:$0xff] }
 0x31c   :  { %1823 = vmatpush.msrb.mxu2 %v1495_v36  ;;  %1865 = vmatpush.msra.mxu3 %v1525_v16  ;;  %v3559_v36 = vld [vmem:[%s6887_s3 + $0x500] sm:$0xff] }
 0x31d   :  { %3512 = vmatmul.msk.f32.gmra.mxu1 %vm1606_vm4, %v5368_v9  ;;  %2375 = vmatpush.msrb.mxu0 %v3618_v52 }
 0x31e   :  { %3490 = vmatmul.msk.f32.gmra.mxu3 %vm1606_vm4, %v5214_v7  ;;  %1824 = vmatpush.msrb.mxu2 %v1493_v1  ;;  %v3610_v1 = vld [vmem:[%s6887_s3 + $0x608] sm:$0xff] }
 0x31f   :  { %1739 = vmatmul.f32.gmra.mxu2 %v5220_v6  ;;  %1918 = vmatmul.f32.gmra.mxu0 %v5248_v24 }
 0x320   :  { %1866 = vmatpush.msra.mxu3 %v1523_v46  ;;  %1825 = vmatpush.msrb.mxu2 %v1491_v30  ;;  %v3608_v30 = vld [vmem:[%s6887_s3 + $0x5f8] sm:$0xff] }
 0x321   :  { %2419 = vmatpush.msrb.mxu1 %v3644_v45  ;;  %2376 = vmatpush.msrb.mxu0 %v3616_v11  ;;  %v5807_v16 = vpop.f32.mrf.mxu3  ;;  %v1395_v45 = vpop.permute.xlu1 %1394  ;;  %v3515_v11 = vld [vmem:[%s6887_s3 + $0x3a0] sm:$0xff] }
 0x322   :  { %1826 = vmatpush.msrb.mxu2 %v1489_v14  ;;  %1867 = vmatpush.msra.mxu3 %v1521_v19  ;;  %v5817_v46 = vpop.f32.mrf.mxu2  ;;  %v3529_v14 = vld [vmem:[%s6887_s3 + $0x410] sm:$0xff] }
 0x323   :  { %2420 = vmatpush.msrb.mxu1 %v3642_v18  ;;  %2377 = vmatpush.msrb.mxu0 %v3614_v38  ;;  %v3557_v19 = vld [vmem:[%s6887_s3 + $0x4f0] sm:$0xff]  ;;  %v3594_v18 = vld [vmem:[%s6887_s3 + $0x588] sm:$0xff] }
 0x324   :  { %2043 = vmatpush.msra.mxu2 %v3545_v27  ;;  %3573 = vmatpush.msk.msrb.mxu3 %vm1631_vm2, %v3571_v51  ;;  %v3604_v27 = vld [vmem:[%s6887_s3 + $0x5d8] sm:$0xff] }
 0x325   :  { %3513 = vmatmul.msk.f32.gmra.mxu1 %vm1606_vm4, %v5402_v28  ;;  %2378 = vmatpush.msrb.mxu0 %v3612_v58  ;;  %v3647_v58 = vld [vmem:[%s6887_s3 + $0x730] sm:$0x3f] }
 0x326   :  { %3491 = vmatmul.msk.f32.gmra.mxu3 %vm1606_vm4, %v5237_v56  ;;  %2044 = vmatpush.msra.mxu2 %v3543_v62  ;;  %v3602_v62 = vld [vmem:[%s6887_s3 + $0x5c8] sm:$0xff] }
 0x327   :  { %1742 = vmatmul.f32.gmra.mxu2 %v5248_v24  ;;  %1921 = vmatmul.f32.gmra.mxu0 %v5336_v12 }
 0x328   :  { %2088 = vmatpush.msrb.mxu3 %v3569_v2  ;;  %2045 = vmatpush.msra.mxu2 %v3541_v53  ;;  %v3525_v53 = vld [vmem:[%s6887_s3 + $0x3f0] sm:$0xff] }
 0x329   :  { %2421 = vmatpush.msrb.mxu1 %v3640_v13  ;;  %2379 = vmatpush.msrb.mxu0 %v3610_v1  ;;  %v1460_v13 = vmax.f32 %v5203_v40, %v1395_v45  ;;  %v3519_v40 = vld [vmem:[%s6887_s3 + $0x3c0] sm:$0xff] }
 0x32a   :  { %2089 = vmatpush.msrb.mxu3 %v3567_v54  ;;  %2046 = vmatpush.msra.mxu2 %v3539_v44  ;;  %v3523_v54 = vld [vmem:[%s6887_s3 + $0x3e0] sm:$0xff]  ;;  %v3553_v44 = vld [vmem:[%s6887_s3 + $0x4d0] sm:$0xff] }
 0x32b   :  { %2422 = vmatpush.msrb.mxu1 %v3638_v22  ;;  %2380 = vmatpush.msrb.mxu0 %v3608_v30  ;;  %v3521_v22 = vld [vmem:[%s6887_s3 + $0x3d0] sm:$0xff]  ;;  %v5901_v37 = vand.u32 2147483647, %v1460_v13  ;;  %v3645_v30 = vld [vmem:[%s6887_s3 + $0x720] sm:$0xff]  ;;  %v3714_v13 = vld [vmem:[%s6887_s3 + $0x8b8] sm:$0xff] }
 0x32c   :  { %2090 = vmatpush.msrb.mxu3 %v3565_v25  ;;  %2047 = vmatpush.msra.mxu2 %v3537_v4  ;;  %v3592_v4 = vld [vmem:[%s6887_s3 + $0x578] sm:$0xff] }
 0x32d   :  { %3514 = vmatmul.msk.f32.gmra.mxu1 %vm1606_vm4, %v5459_v55 }
 0x32e   :  { %3492 = vmatmul.msk.f32.gmra.mxu3 %vm1606_vm4, %v5334_v23  ;;  %2423 = vmatpush.msrb.mxu1 %v3636_v31 }
 0x32f   :  { %1745 = vmatmul.f32.gmra.mxu2 %v5336_v12  ;;  %1924 = vmatmul.f32.gmra.mxu0 %v5373_v59 }
 0x330   :  { %2048 = vmatpush.msra.mxu2 %v3535_v0  ;;  %2091 = vmatpush.msrb.mxu3 %v3563_v8  ;;  %v3549_v0 = vld [vmem:[%s6887_s3 + $0x4b0] sm:$0xff] }
 0x331   :  { %2424 = vmatpush.msrb.mxu1 %v3634_v48  ;;  %v5841_v51 = vpop.f32.mrf.mxu3  ;;  %v3517_v48 = vld [vmem:[%s6887_s3 + $0x3b0] sm:$0xff] }
 0x332   :  { %2049 = vmatpush.msra.mxu2 %v3533_v21  ;;  %2092 = vmatpush.msrb.mxu3 %v3561_v34  ;;  %v5848_v2 = vpop.f32.mrf.mxu2  ;;  %v3547_v21 = vld [vmem:[%s6887_s3 + $0x4a0] sm:$0xff] }
 0x333   :  { %2425 = vmatpush.msrb.mxu1 %v3632_v35 }
 0x334   :  { %2050 = vmatpush.msra.mxu2 %v3531_v26  ;;  %2093 = vmatpush.msrb.mxu3 %v3559_v36 }
 0x335   :  { %3583 = vmatmul.msk.f32.vlgmr.msra.gmra.mxu1 %vm1606_vm4, %v5214_v7 }
 0x336   :  { %3493 = vmatmul.msk.f32.gmra.mxu3 %vm1606_vm4, %v5368_v9  ;;  %2426 = vmatpush.msrb.mxu1 %v3630_v17  ;;  %v1393_v17 = vpop.permute.xlu0 %1392 }
 0x337   :  { %1748 = vmatmul.f32.gmra.mxu2 %v5373_v59  ;;  %1927 = vmatmul.f32.gmra.mxu0 %v5404_v33  ;;  %v1414_v34 = vsel %vm1404_vm3, %v1393_v17, %v1395_v45  ;;  %v3613_v45 = vld [vmem:[%s6887_s3 + $0x620] sm:$0xff]  ;;  %v3710_v17 = vld [vmem:[%s6887_s3 + $0x898] sm:$0xff] }
 0x338   :  { %2427 = vmatpush.msrb.mxu1 %v3628_v39  ;;  %2051 = vmatpush.msra.mxu2 %v3529_v14  ;;  %v3621_v39 = vld [vmem:[%s6887_s3 + $0x660] sm:$0xff]  ;;  %v3724_v14 = vld [vmem:[%s6887_s3 + $0x908] sm:$0x3f] }
 0x339   :  { %2094 = vmatpush.msrb.mxu3 %v3557_v19  ;;  %v5883_v25 = vpop.f32.mrf.mxu3  ;;  %v3722_v19 = vld [vmem:[%s6887_s3 + $0x8f8] sm:$0xff] }
 0x33a   :  { %2428 = vmatpush.msrb.mxu1 %v3626_v63  ;;  %v5896_v31 = vpop.f32.mrf.mxu2  ;;  %v1459_v63 = vmax.f32 %v5180_v42, %v1414_v34  ;;  %v3617_v42 = vld [vmem:[%s6887_s3 + $0x640] sm:$0xff]  ;;  %v3692_v34 = vld [vmem:[%s6887_s3 + $0x808] sm:$0xff] }
 0x33b   :  { %2095 = vmatpush.msrb.mxu3 %v3555_v43  ;;  %v3615_v43 = vld [vmem:[%s6887_s3 + $0x630] sm:$0xff] }
 0x33c   :  { %2429 = vmatpush.msrb.mxu1 %v3624_v3  ;;  %v5948_v1 = vand.u32 2147483647, %v1459_v63  ;;  %v3619_v3 = vld [vmem:[%s6887_s3 + $0x650] sm:$0xff]  ;;  %v3708_v63 = vld [vmem:[%s6887_s3 + $0x888] sm:$0xff] }
 0x33d   :  { %3584 = vmatmul.msk.f32.gmra.mxu1 %vm1606_vm4, %v5237_v56  ;;  %2096 = vmatpush.msrb.mxu3 %v3553_v44  ;;  %v3698_v44 = vld [vmem:[%s6887_s3 + $0x838] sm:$0xff] }
 0x33e   :  { %3494 = vmatmul.msk.f32.gmra.mxu3 %vm1606_vm4, %v5402_v28  ;;  %3734 = vmatpush.msk.msra.mxu1 %vm1631_vm2, %v3724_v14 }
 0x33f   :  { %1751 = vmatmul.f32.gmra.mxu2 %v5404_v33  ;;  %1930 = vmatmul.f32.gmra.mxu0 %v5461_v10 }
 0x340   :  { %2097 = vmatpush.msrb.mxu3 %v3551_v29  ;;  %2666 = vmatpush.msra.mxu1 %v3722_v19  ;;  %v3696_v29 = vld [vmem:[%s6887_s3 + $0x828] sm:$0xff] }
 0x341   :  { %v3688_v19 = vld [vmem:[%s6887_s3 + $0x7e8] sm:$0xff] }
 0x342   :  { %2098 = vmatpush.msrb.mxu3 %v3549_v0 }
 0x344   :  { %2099 = vmatpush.msrb.mxu3 %v3547_v21  ;;  %v3639_v21 = vld [vmem:[%s6887_s3 + $0x6f0] sm:$0xff] }
 0x345   :  { %3585 = vmatmul.msk.f32.gmra.mxu1 %vm1606_vm4, %v5334_v23 }
 0x346   :  { %3495 = vmatmul.msk.f32.gmra.mxu3 %vm1606_vm4, %v5459_v55 }
 0x347   :  { %1754 = vmatmul.f32.gmra.mxu2 %v5461_v10  ;;  %2141 = vmatmul.f32.vlgmr.msra.gmra.mxu0 %v5220_v6 }
 0x34d   :  { %3586 = vmatmul.msk.f32.gmra.mxu1 %vm1606_vm4, %v5368_v9 }
 0x34e   :  { %3496 = vmatmul.msk.f32.gmra.mxu3 %vm1606_vm4, %v5528_v49 }
 0x34f   :  { %1757 = vmatmul.f32.gmra.mxu2 %v5533_v5  ;;  %2144 = vmatmul.f32.gmra.mxu0 %v5248_v24 }
 0x351   :  { %v5910_v8 = vpop.f32.mrf.mxu3 }
 0x352   :  { %v5917_v52 = vpop.f32.mrf.mxu2 }
 0x355   :  { %3587 = vmatmul.msk.f32.gmra.mxu1 %vm1606_vm4, %v5402_v28 }
 0x356   :  { %3498 = vmatmul.msk.f32.vlgmr.msra.gmra.mxu3 %vm1606_vm4, %v5445_v60  ;;  %v3606_v60 = vld [vmem:[%s6887_s3 + $0x5e8] sm:$0xff] }
 0x357   :  { %1827 = vmatmul.f32.vlgmr.msrb.gmra.mxu2 %v5498_v41  ;;  %2147 = vmatmul.f32.gmra.mxu0 %v5336_v12  ;;  %v3527_v41 = vld [vmem:[%s6887_s3 + $0x400] sm:$0xff] }
 0x358   :  { %2052 = vmatpush.msra.mxu2 %v3527_v41  ;;  %2381 = vmatpush.msrb.mxu0 %v3606_v60  ;;  %v3643_v41 = vld [vmem:[%s6887_s3 + $0x710] sm:$0xff] }
 0x359   :  { %3649 = vmatpush.msk.msra.mxu3 %vm1631_vm2, %v3647_v58  ;;  %v3637_v58 = vld [vmem:[%s6887_s3 + $0x6e0] sm:$0xff] }
 0x35a   :  { %2382 = vmatpush.msrb.mxu0 %v3604_v27  ;;  %2053 = vmatpush.msra.mxu2 %v3525_v53  ;;  %v3720_v27 = vld [vmem:[%s6887_s3 + $0x8e8] sm:$0xff] }
 0x35b   :  { %2336 = vmatpush.msra.mxu3 %v3645_v30  ;;  %2667 = vmatpush.msra.mxu1 %v3720_v27  ;;  %v3706_v27 = vld [vmem:[%s6887_s3 + $0x878] sm:$0xff] }
 0x35c   :  { %2383 = vmatpush.msrb.mxu0 %v3602_v62  ;;  %2054 = vmatpush.msra.mxu2 %v3523_v54  ;;  %v3716_v54 = vld [vmem:[%s6887_s3 + $0x8c8] sm:$0xff] }
 0x35d   :  { %3588 = vmatmul.msk.f32.gmra.mxu1 %vm1606_vm4, %v5459_v55  ;;  %2337 = vmatpush.msra.mxu3 %v3643_v41 }
 0x35e   :  { %3499 = vmatmul.msk.f32.gmra.mxu3 %vm1606_vm4, %v5178_v50  ;;  %v3598_v50 = vld [vmem:[%s6887_s3 + $0x5a8] sm:$0xff]  ;;  %2384 = vmatpush.msrb.mxu0 %v3600_v20 }
 0x35f   :  { %1830 = vmatmul.f32.gmra.mxu2 %v5184_v47  ;;  %2150 = vmatmul.f32.gmra.mxu0 %v5373_v59  ;;  %v3596_v47 = vld [vmem:[%s6887_s3 + $0x598] sm:$0xff] }
 0x360   :  { %2385 = vmatpush.msrb.mxu0 %v3598_v50  ;;  %2055 = vmatpush.msra.mxu2 %v3521_v22  ;;  %v3718_v50 = vld [vmem:[%s6887_s3 + $0x8d8] sm:$0xff] }
 0x361   :  { %v5932_v38 = vpop.f32.mrf.mxu3  ;;  %2668 = vmatpush.msra.mxu1 %v3718_v50  ;;  %v3704_v50 = vld [vmem:[%s6887_s3 + $0x868] sm:$0xff] }
 0x362   :  { %2386 = vmatpush.msrb.mxu0 %v3596_v47  ;;  %2056 = vmatpush.msra.mxu2 %v3519_v40  ;;  %v5942_v26 = vpop.f32.mrf.mxu2  ;;  %v3641_v47 = vld [vmem:[%s6887_s3 + $0x700] sm:$0xff]  ;;  %v3712_v40 = vld [vmem:[%s6887_s3 + $0x8a8] sm:$0xff] }
 0x363   :  { %2338 = vmatpush.msra.mxu3 %v3641_v47  ;;  %2669 = vmatpush.msra.mxu1 %v3716_v54  ;;  %v3607_v47 = vld [vmem:[%s6887_s3 + $0x5f0] sm:$0xff]  ;;  %v3686_v54 = vld [vmem:[%s6887_s3 + $0x7d8] sm:$0xff] }
 0x364   :  { %2387 = vmatpush.msrb.mxu0 %v3594_v18  ;;  %2057 = vmatpush.msra.mxu2 %v3517_v48  ;;  %v3694_v48 = vld [vmem:[%s6887_s3 + $0x818] sm:$0xff] }
 0x365   :  { %3589 = vmatmul.msk.f32.gmra.mxu1 %vm1606_vm4, %v5528_v49  ;;  %2339 = vmatpush.msra.mxu3 %v3639_v21 }
 0x366   :  { %3500 = vmatmul.msk.f32.gmra.mxu3 %vm1606_vm4, %v5214_v7  ;;  %2388 = vmatpush.msrb.mxu0 %v3592_v4 }
 0x367   :  { %1833 = vmatmul.f32.gmra.mxu2 %v5220_v6  ;;  %2153 = vmatmul.f32.gmra.mxu0 %v5404_v33 }
 0x368   :  { %2058 = vmatpush.msra.mxu2 %v3515_v11  ;;  %2621 = vmatpush.msra.mxu0 %v3698_v44  ;;  %v3611_v11 = vld [vmem:[%s6887_s3 + $0x610] sm:$0xff]  ;;  %v3702_v44 = vld [vmem:[%s6887_s3 + $0x858] sm:$0xff] }
 0x369   :  { %v5972_v60 = vpop.f32.mrf.mxu3  ;;  %2670 = vmatpush.msra.mxu1 %v3714_v13  ;;  %2340 = vmatpush.msra.mxu3 %v3637_v58  ;;  %v3684_v13 = vld [vmem:[%s6887_s3 + $0x7c8] sm:$0xff] }
 0x36a   :  { %2291 = vmatpush.msrb.mxu2 %v3621_v39  ;;  %v5980_v62 = vpop.f32.mrf.mxu2  ;;  %2622 = vmatpush.msra.mxu0 %v3696_v29  ;;  %v3609_v39 = vld [vmem:[%s6887_s3 + $0x600] sm:$0xff]  ;;  %v3680_v58 = vld [vmem:[%s6887_s3 + $0x7a8] sm:$0xff] }
 0x36b   :  { %2671 = vmatpush.msra.mxu1 %v3712_v40 }
 0x36c   :  { %2292 = vmatpush.msrb.mxu2 %v3619_v3  ;;  %2623 = vmatpush.msra.mxu0 %v3694_v48  ;;  %v3690_v3 = vld [vmem:[%s6887_s3 + $0x7f8] sm:$0xff] }
 0x36d   :  { %3590 = vmatmul.msk.f32.gmra.mxu1 %vm1606_vm4, %v5901_v37 }
 0x36e   :  { %3501 = vmatmul.msk.f32.gmra.mxu3 %vm1606_vm4, %v5237_v56  ;;  %2293 = vmatpush.msrb.mxu2 %v3617_v42 }
 0x36f   :  { %1836 = vmatmul.f32.gmra.mxu2 %v5248_v24  ;;  %2156 = vmatmul.f32.gmra.mxu0 %v5461_v10 }
 0x370   :  { %2294 = vmatpush.msrb.mxu2 %v3615_v43  ;;  %2672 = vmatpush.msra.mxu1 %v3710_v17 }
 0x371   :  { %2624 = vmatpush.msra.mxu0 %v3692_v34 }
 0x372   :  { %v5919_v35 = vpop.f32.mrf.mxu1  ;;  %2295 = vmatpush.msrb.mxu2 %v3613_v45  ;;  %2673 = vmatpush.msra.mxu1 %v3708_v63  ;;  %v3635_v45 = vld [vmem:[%s6887_s3 + $0x6d0] sm:$0xff] }
 0x373   :  { %2625 = vmatpush.msra.mxu0 %v3690_v3  ;;  %2341 = vmatpush.msra.mxu3 %v3635_v45  ;;  %v3603_v63 = vld [vmem:[%s6887_s3 + $0x5d0] sm:$0xff]  ;;  %v3601_v3 = vld [vmem:[%s6887_s3 + $0x5c0] sm:$0xff]  ;;  %v3674_v45 = vld [vmem:[%s6887_s3 + $0x778] sm:$0xff] }
 0x374   :  { %2296 = vmatpush.msrb.mxu2 %v3611_v11  ;;  %2674 = vmatpush.msra.mxu1 %v3706_v27  ;;  %v3682_v11 = vld [vmem:[%s6887_s3 + $0x7b8] sm:$0xff]  ;;  %v3676_v27 = vld [vmem:[%s6887_s3 + $0x788] sm:$0xff] }
 0x375   :  { %3659 = vmatmul.msk.f32.vlgmr.msrb.gmra.mxu1 %vm1606_vm4, %v5237_v56  ;;  %2626 = vmatpush.msra.mxu0 %v3688_v19 }
 0x376   :  { %3502 = vmatmul.msk.f32.gmra.mxu3 %vm1606_vm4, %v5334_v23  ;;  %2297 = vmatpush.msrb.mxu2 %v3609_v39  ;;  %v3633_v39 = vld [vmem:[%s6887_s3 + $0x6c0] sm:$0xff] }
 0x377   :  { %1839 = vmatmul.f32.gmra.mxu2 %v5336_v12  ;;  %2159 = vmatmul.f32.gmra.mxu0 %v5533_v5 }
 0x378   :  { %2675 = vmatpush.msra.mxu1 %v3704_v50  ;;  %2298 = vmatpush.msrb.mxu2 %v3607_v47 }
 0x379   :  { %2627 = vmatpush.msra.mxu0 %v3686_v54  ;;  %2342 = vmatpush.msra.mxu3 %v3633_v39  ;;  %v3627_v39 = vld [vmem:[%s6887_s3 + $0x690] sm:$0xff] }
 0x37a   :  { %v5946_v36 = vpop.f32.mrf.mxu1  ;;  %2676 = vmatpush.msra.mxu1 %v3702_v44 }
 0x37b   :  { %2628 = vmatpush.msra.mxu0 %v3684_v13  ;;  %v3672_v13 = vld [vmem:[%s6887_s3 + $0x768] sm:$0xff] }
 0x37d   :  { %3660 = vmatmul.msk.f32.gmra.mxu1 %vm1606_vm4, %v5334_v23  ;;  %2629 = vmatpush.msra.mxu0 %v3682_v11  ;;  %v3597_v11 = vld [vmem:[%s6887_s3 + $0x5a0] sm:$0xff] }
 0x37e   :  { %3503 = vmatmul.msk.f32.gmra.mxu3 %vm1606_vm4, %v5368_v9 }
 0x37f   :  { %1842 = vmatmul.f32.gmra.mxu2 %v5373_v59  ;;  %2162 = vmatmul.f32.gmra.mxu0 %v5948_v1 }
 0x380   :  { %2630 = vmatpush.msra.mxu0 %v3680_v58 }
 0x381   :  { %v6010_v18 = vpop.f32.mrf.mxu3 }
 0x382   :  { %v5982_v20 = vpop.f32.mrf.mxu1  ;;  %v6015_v4 = vpop.f32.mrf.mxu2 }
 0x384   :  { %v5984_v53 = vpop.f32.mrf.mxu0 }
 0x385   :  { %3661 = vmatmul.msk.f32.gmra.mxu1 %vm1606_vm4, %v5368_v9 }
 0x386   :  { %3504 = vmatmul.msk.f32.gmra.mxu3 %vm1606_vm4, %v5402_v28 }
 0x387   :  { %1845 = vmatmul.f32.gmra.mxu2 %v5404_v33  ;;  %2389 = vmatmul.f32.vlgmr.msrb.gmra.mxu0 %v5248_v24 }
 0x38a   :  { %v6017_v22 = vpop.f32.mrf.mxu1 }
 0x38c   :  { %v6025_v0 = vpop.f32.mrf.mxu0 }
 0x38d   :  { %3662 = vmatmul.msk.f32.gmra.mxu1 %vm1606_vm4, %v5402_v28 }
 0x38e   :  { %3505 = vmatmul.msk.f32.gmra.mxu3 %vm1606_vm4, %v5459_v55 }
 0x38f   :  { %1848 = vmatmul.f32.gmra.mxu2 %v5461_v10  ;;  %2392 = vmatmul.f32.gmra.mxu0 %v5336_v12 }
 0x391   :  { %v1717_v30 = vpop.f32.mrf.mxu3 }
 0x392   :  { %v1676_v14 = vpop.f32.mrf.mxu2  ;;  %v6060_v42 = vpop.f32.mrf.mxu1 }
 0x393   :  { %v6065_v41 = vadd.f32 %v1717_v30, %v1676_v14  ;;  %v3631_v30 = vld [vmem:[%s6887_s3 + $0x6b0] sm:$0xff] }
 0x394   :  { %v6070_v43 = vpop.f32.mrf.mxu0  ;;  %2343 = vmatpush.msra.mxu3 %v3631_v30 }
 0x395   :  { %3663 = vmatmul.msk.f32.gmra.mxu1 %vm1606_vm4, %v5459_v55 }
 0x396   :  { %3574 = vmatmul.msk.f32.vlgmr.msrb.gmra.mxu3 %vm1606_vm4, %v5214_v7  ;;  %v3605_v7 = vld [vmem:[%s6887_s3 + $0x5e0] sm:$0xff] }
 0x397   :  { %2059 = vmatmul.f32.vlgmr.msra.gmra.mxu2 %v5220_v6  ;;  %2395 = vmatmul.f32.gmra.mxu0 %v5373_v59  ;;  %v3700_v6 = vld [vmem:[%s6887_s3 + $0x848] sm:$0xff] }
 0x398   :  { %2299 = vmatpush.msrb.mxu2 %v3605_v7  ;;  %2677 = vmatpush.msra.mxu1 %v3700_v6 }
 0x399   :  { %v1778_v29 = vpop.f32.mrf.mxu3 }
 0x39a   :  { %v1737_v40 = vpop.f32.mrf.mxu2  ;;  %v6102_v48 = vpop.f32.mrf.mxu1  ;;  %2300 = vmatpush.msrb.mxu2 %v3603_v63 }
 0x39b   :  { %v1779_v21 = vadd.f32 %v1778_v29, %v1737_v40  ;;  %v3599_v29 = vld [vmem:[%s6887_s3 + $0x5b0] sm:$0xff]  ;;  %v3670_v40 = vld [vmem:[%s6887_s3 + $0x758] sm:$0xff] }
 0x39c   :  { %v6107_v17 = vpop.f32.mrf.mxu0  ;;  %2301 = vmatpush.msrb.mxu2 %v3601_v3 }
 0x39d   :  { %v1911_v34 = vadd.f32 %v5984_v53, %v1779_v21  ;;  %3664 = vmatmul.msk.f32.gmra.mxu1 %vm1606_vm4, %v5528_v49  ;;  %v3678_v53 = vld [vmem:[%s6887_s3 + $0x798] sm:$0xff] }
 0x39e   :  { %3575 = vmatmul.msk.f32.gmra.mxu3 %vm1606_vm4, %v5237_v56  ;;  %2631 = vmatpush.msra.mxu0 %v3678_v53 }
 0x39f   :  { %2062 = vmatmul.f32.gmra.mxu2 %v5248_v24  ;;  %2398 = vmatmul.f32.gmra.mxu0 %v5404_v33  ;;  %v6135_v14 = vadd.f32 %v5919_v35, %v1911_v34  ;;  %v1399_v35 = vpop.permute.xlu0 %1398  ;;  %v3668_v34 = vld [vmem:[%s6887_s3 + $0x748] sm:$0xff] }
 0x3a0   :  { %2632 = vmatpush.msra.mxu0 %v3676_v27  ;;  %v1462_v6 = vmax.f32 %v5250_v57, %v1399_v35  ;;  %2302 = vmatpush.msrb.mxu2 %v3599_v29  ;;  %v3625_v27 = vld [vmem:[%s6887_s3 + $0x680] sm:$0xff] }
 0x3a1   :  { %v1781_v19 = vpop.f32.mrf.mxu3 }
 0x3a2   :  { %v1740_v50 = vpop.f32.mrf.mxu2  ;;  %v6140_v47 = vpop.f32.mrf.mxu1  ;;  %2633 = vmatpush.msra.mxu0 %v3674_v45  ;;  %2303 = vmatpush.msrb.mxu2 %v3597_v11  ;;  %v6181_v53 = vand.u32 2147483647, %v1462_v6 }
 0x3a3   :  { %v1782_v54 = vadd.f32 %v1781_v19, %v1740_v50  ;;  %v3595_v19 = vld [vmem:[%s6887_s3 + $0x590] sm:$0xff]  ;;  %v1397_v6 = vpop.permute.xlu2 %1396 }
 0x3a4   :  { %v6145_v44 = vpop.f32.mrf.mxu0  ;;  %2634 = vmatpush.msra.mxu0 %v3672_v13  ;;  %2304 = vmatpush.msrb.mxu2 %v3595_v19  ;;  %v1415_v11 = vsel %vm1404_vm3, %v1397_v6, %v1399_v35 }
 0x3a5   :  { %v1914_v7 = vadd.f32 %v6025_v0, %v1782_v54  ;;  %3665 = vmatmul.msk.f32.gmra.mxu1 %vm1606_vm4, %v5901_v37  ;;  %v3629_v0 = vld [vmem:[%s6887_s3 + $0x6a0] sm:$0xff]  ;;  %v1461_v35 = vmax.f32 %v5216_v61, %v1415_v11  ;;  %v3721_v61 = vld [vmem:[%s6887_s3 + $0x8f0] sm:$0xff] }
 0x3a6   :  { %3576 = vmatmul.msk.f32.gmra.mxu3 %vm1606_vm4, %v5334_v23  ;;  %2635 = vmatpush.msra.mxu0 %v3670_v40  ;;  %v3591_v40 = vld [vmem:[%s6887_s3 + $0x570] sm:$0xff] }
 0x3a7   :  { %2065 = vmatmul.f32.gmra.mxu2 %v5336_v12  ;;  %2401 = vmatmul.f32.gmra.mxu0 %v5461_v10  ;;  %v6171_v21 = vadd.f32 %v5946_v36, %v1914_v7 }
 0x3a8   :  { %2344 = vmatpush.msra.mxu3 %v3629_v0  ;;  %2636 = vmatpush.msra.mxu0 %v3668_v34 }
 0x3a9   :  { %v1784_v57 = vpop.f32.mrf.mxu3 }
 0x3aa   :  { %v1743_v58 = vpop.f32.mrf.mxu2  ;;  %v6179_v63 = vpop.f32.mrf.mxu1  ;;  %2345 = vmatpush.msra.mxu3 %v3627_v39 }
 0x3ab   :  { %v1785_v36 = vadd.f32 %v1784_v57, %v1743_v58  ;;  %v3723_v57 = vld [vmem:[%s6887_s3 + $0x900] sm:$0x3f] }
 0x3ac   :  { %v1925_v3 = vpop.f32.mrf.mxu0  ;;  %2346 = vmatpush.msra.mxu3 %v3625_v27  ;;  %v6227_v27 = vand.u32 2147483647, %v1461_v35 }
 0x3ad   :  { %v1917_v30 = vadd.f32 %v6070_v43, %v1785_v36  ;;  %3666 = vmatmul.msk.f32.gmra.mxu1 %vm1606_vm4, %v6181_v53  ;;  %v3593_v43 = vld [vmem:[%s6887_s3 + $0x580] sm:$0xff] }
 0x3ae   :  { %3577 = vmatmul.msk.f32.gmra.mxu3 %vm1606_vm4, %v5368_v9  ;;  %2305 = vmatpush.msrb.mxu2 %v3593_v43 }
 0x3af   :  { %2068 = vmatmul.f32.gmra.mxu2 %v5373_v59  ;;  %2404 = vmatmul.f32.gmra.mxu0 %v5533_v5  ;;  %v6200_v50 = vadd.f32 %v5982_v20, %v1917_v30  ;;  %v3623_v20 = vld [vmem:[%s6887_s3 + $0x670] sm:$0xff] }
 0x3b0   :  { %2306 = vmatpush.msrb.mxu2 %v3591_v40  ;;  %2347 = vmatpush.msra.mxu3 %v3623_v20 }
 0x3b1   :  { %v1787_v54 = vpop.f32.mrf.mxu3 }
 0x3b2   :  { %v1746_v45 = vpop.f32.mrf.mxu2  ;;  %v2183_v7 = vpop.f32.mrf.mxu1  ;;  %3725 = vmatpush.msk.msrb.mxu3 %vm1631_vm2, %v3723_v57 }
 0x3b3   :  { %v1788_v13 = vadd.f32 %v1787_v54, %v1746_v45 }
 0x3b4   :  { %v1928_v29 = vpop.f32.mrf.mxu0  ;;  %2584 = vmatpush.msrb.mxu3 %v3721_v61 }
 0x3b5   :  { %v1920_v0 = vadd.f32 %v6107_v17, %v1788_v13  ;;  %3735 = vmatmul.msk.f32.vlgmr.msra.gmra.mxu1 %vm1606_vm4, %v5334_v23  ;;  %v3697_v17 = vld [vmem:[%s6887_s3 + $0x830] sm:$0xff]  ;;  %v3719_v13 = vld [vmem:[%s6887_s3 + $0x8e0] sm:$0xff] }
 0x3b6   :  { %3578 = vmatmul.msk.f32.gmra.mxu3 %vm1606_vm4, %v5402_v28  ;;  %2539 = vmatpush.msra.mxu2 %v3697_v17 }
 0x3b7   :  { %2071 = vmatmul.f32.gmra.mxu2 %v5404_v33  ;;  %2407 = vmatmul.f32.gmra.mxu0 %v5948_v1  ;;  %v6223_v34 = vadd.f32 %v6017_v22, %v1920_v0  ;;  %v3695_v22 = vld [vmem:[%s6887_s3 + $0x820] sm:$0xff] }
 0x3b8   :  { %2540 = vmatpush.msra.mxu2 %v3695_v22  ;;  %2585 = vmatpush.msrb.mxu3 %v3719_v13 }
 0x3b9   :  { %v1790_v39 = vpop.f32.mrf.mxu3 }
 0x3ba   :  { %v1749_v58 = vpop.f32.mrf.mxu2  ;;  %v2186_v36 = vpop.f32.mrf.mxu1 }
 0x3bb   :  { %v1791_v30 = vadd.f32 %v1790_v39, %v1749_v58 }
 0x3bc   :  { %v1931_v19 = vpop.f32.mrf.mxu0 }
 0x3bd   :  { %v1923_v43 = vadd.f32 %v6145_v44, %v1791_v30  ;;  %3736 = vmatmul.msk.f32.gmra.mxu1 %vm1606_vm4, %v5368_v9  ;;  %v3693_v44 = vld [vmem:[%s6887_s3 + $0x810] sm:$0xff] }
 0x3be   :  { %3579 = vmatmul.msk.f32.gmra.mxu3 %vm1606_vm4, %v5459_v55  ;;  %2541 = vmatpush.msra.mxu2 %v3693_v44  ;;  %v3687_v44 = vld [vmem:[%s6887_s3 + $0x7e0] sm:$0xff] }
 0x3bf   :  { %2074 = vmatmul.f32.gmra.mxu2 %v5461_v10  ;;  %2410 = vmatmul.f32.gmra.mxu0 %v6227_v27  ;;  %v6246_v54 = vadd.f32 %v6060_v42, %v1923_v43  ;;  %v3691_v42 = vld [vmem:[%s6887_s3 + $0x800] sm:$0xff] }
 0x3c0   :  { %2542 = vmatpush.msra.mxu2 %v3691_v42 }
 0x3c1   :  { %v1793_v45 = vpop.f32.mrf.mxu3 }
 0x3c2   :  { %v1752_v6 = vpop.f32.mrf.mxu2  ;;  %v2189_v0 = vpop.f32.mrf.mxu1 }
 0x3c3   :  { %v1794_v40 = vadd.f32 %v1793_v45, %v1752_v6 }
 0x3c4   :  { %v2142_v20 = vpop.f32.mrf.mxu0 }
 0x3c5   :  { %v1926_v11 = vadd.f32 %v1925_v3, %v1794_v40  ;;  %v2184_v17 = vadd.f32 %v2183_v7, %v2142_v20  ;;  %3737 = vmatmul.msk.f32.gmra.mxu1 %vm1606_vm4, %v5402_v28  ;;  %v3717_v3 = vld [vmem:[%s6887_s3 + $0x8d0] sm:$0xff] }
 0x3c6   :  { %3580 = vmatmul.msk.f32.gmra.mxu3 %vm1606_vm4, %v5528_v49  ;;  %v3689_v7 = vld [vmem:[%s6887_s3 + $0x7f0] sm:$0xff] }
 0x3c7   :  { %v6259_v57 = vadd.f32 %v2184_v17, %v6135_v14  ;;  %2077 = vmatmul.f32.gmra.mxu2 %v5533_v5  ;;  %2637 = vmatmul.f32.vlgmr.msra.gmra.mxu0 %v5336_v12  ;;  %v6270_v35 = vadd.f32 %v6102_v48, %v1926_v11  ;;  %v3715_v48 = vld [vmem:[%s6887_s3 + $0x8c0] sm:$0xff] }
 0x3c8   :  { %2586 = vmatpush.msrb.mxu3 %v3717_v3  ;;  %2543 = vmatpush.msra.mxu2 %v3689_v7  ;;  %v3683_v3 = vld [vmem:[%s6887_s3 + $0x7c0] sm:$0xff] }
 0x3c9   :  { %v1796_v39 = vpop.f32.mrf.mxu3 }
 0x3ca   :  { %v1755_v14 = vpop.f32.mrf.mxu2  ;;  %v2192_v58 = vpop.f32.mrf.mxu1  ;;  %2544 = vmatpush.msra.mxu2 %v3687_v44  ;;  %2587 = vmatpush.msrb.mxu3 %v3715_v48  ;;  %v1700_v44 = vadd.f32 %v5841_v51, %v5848_v2 }
 0x3cb   :  { %v1797_v30 = vadd.f32 %v1796_v39, %v1755_v14 }
 0x3cc   :  { %v2145_v43 = vpop.f32.mrf.mxu0 }
 0x3cd   :  { %v1929_v22 = vadd.f32 %v1928_v29, %v1797_v30  ;;  %v2187_v61 = vadd.f32 %v2186_v36, %v2145_v43  ;;  %3738 = vmatmul.msk.f32.gmra.mxu1 %vm1606_vm4, %v5459_v55  ;;  %v3685_v29 = vld [vmem:[%s6887_s3 + $0x7d0] sm:$0xff] }
 0x3ce   :  { %3581 = vmatmul.msk.f32.gmra.mxu3 %vm1606_vm4, %v5901_v37  ;;  %v3713_v36 = vld [vmem:[%s6887_s3 + $0x8b0] sm:$0xff]  ;;  %2545 = vmatpush.msra.mxu2 %v3685_v29 }
 0x3cf   :  { %v6283_v45 = vadd.f32 %v2187_v61, %v6171_v21  ;;  %2080 = vmatmul.f32.gmra.mxu2 %v5948_v1  ;;  %2640 = vmatmul.f32.gmra.mxu0 %v5373_v59  ;;  %v6294_v13 = vadd.f32 %v6140_v47, %v1929_v22  ;;  %v3679_v61 = vld [vmem:[%s6887_s3 + $0x7a0] sm:$0xff] }
 0x3d0   :  { %2588 = vmatpush.msrb.mxu3 %v3713_v36  ;;  %2546 = vmatpush.msra.mxu2 %v3683_v3 }
 0x3d1   :  { %v1799_v6 = vpop.f32.mrf.mxu3 }
 0x3d2   :  { %v1758_v21 = vpop.f32.mrf.mxu2  ;;  %v2195_v40 = vpop.f32.mrf.mxu1 }
 0x3d3   :  { %v1800_v20 = vadd.f32 %v1799_v6, %v1758_v21  ;;  %v1403_v6 = vpop.permute.xlu2 %1402 }
 0x3d4   :  { %v2148_v11 = vpop.f32.mrf.mxu0  ;;  %v1464_v51 = vmax.f32 %v5294_v15, %v1403_v6  ;;  %v1703_v15 = vadd.f32 %v5883_v25, %v5896_v31  ;;  %v3671_v25 = vld [vmem:[%s6887_s3 + $0x760] sm:$0xff] }
 0x3d5   :  { %v1932_v17 = vadd.f32 %v1931_v19, %v1800_v20  ;;  %v2190_v42 = vadd.f32 %v2189_v0, %v2148_v11  ;;  %3739 = vmatmul.msk.f32.gmra.mxu1 %vm1606_vm4, %v5528_v49  ;;  %v3711_v19 = vld [vmem:[%s6887_s3 + $0x8a0] sm:$0xff]  ;;  %v3681_v0 = vld [vmem:[%s6887_s3 + $0x7b0] sm:$0xff] }
 0x3d6   :  { %3650 = vmatmul.msk.f32.vlgmr.msra.gmra.mxu3 %vm1606_vm4, %v5237_v56  ;;  %2547 = vmatpush.msra.mxu2 %v3681_v0  ;;  %v1697_v56 = vadd.f32 %v5807_v16, %v5817_v46  ;;  %v3677_v46 = vld [vmem:[%s6887_s3 + $0x790] sm:$0xff] }
 0x3d7   :  { %v6304_v47 = vadd.f32 %v2190_v42, %v6200_v50  ;;  %2307 = vmatmul.f32.vlgmr.msrb.gmra.mxu2 %v5248_v24  ;;  %2643 = vmatmul.f32.gmra.mxu0 %v5404_v33  ;;  %v6315_v7 = vadd.f32 %v6179_v63, %v1932_v17  ;;  %v3709_v63 = vld [vmem:[%s6887_s3 + $0x890] sm:$0xff]  ;;  %v3675_v17 = vld [vmem:[%s6887_s3 + $0x780] sm:$0xff] }
 0x3d8   :  { %2589 = vmatpush.msrb.mxu3 %v3711_v19  ;;  %2548 = vmatpush.msra.mxu2 %v3679_v61  ;;  %v3673_v42 = vld [vmem:[%s6887_s3 + $0x770] sm:$0xff] }
 0x3d9   :  { %v1869_v50 = vpop.f32.mrf.mxu3 }
 0x3da   :  { %v1828_v24 = vpop.f32.mrf.mxu2  ;;  %v2198_v39 = vpop.f32.mrf.mxu1  ;;  %2590 = vmatpush.msrb.mxu3 %v3709_v63  ;;  %2549 = vmatpush.msra.mxu2 %v3677_v46  ;;  %v1706_v63 = vadd.f32 %v5910_v8, %v5917_v52 }
 0x3db   :  { %v1829_v14 = vadd.f32 %v1828_v24, %v1697_v56  ;;  %v6370_v56 = vand.u32 2147483647, %v1464_v51 }
 0x3dc   :  { %v2151_v30 = vpop.f32.mrf.mxu0  ;;  %2550 = vmatpush.msra.mxu2 %v3675_v17 }
 0x3dd   :  { %v6319_v43 = vadd.f32 %v1869_v50, %v1829_v14  ;;  %v2193_v22 = vadd.f32 %v2192_v58, %v2151_v30  ;;  %3740 = vmatmul.msk.f32.gmra.mxu1 %vm1606_vm4, %v5901_v37  ;;  %v3707_v58 = vld [vmem:[%s6887_s3 + $0x880] sm:$0xff] }
 0x3de   :  { %3651 = vmatmul.msk.f32.gmra.mxu3 %vm1606_vm4, %v5334_v23  ;;  %2551 = vmatpush.msra.mxu2 %v3673_v42 }
 0x3df   :  { %v6332_v16 = vadd.f32 %v2193_v22, %v6223_v34  ;;  %2310 = vmatmul.f32.gmra.mxu2 %v5336_v12  ;;  %2646 = vmatmul.f32.gmra.mxu0 %v5461_v10  ;;  %v3669_v22 = vld [vmem:[%s6887_s3 + $0x750] sm:$0xff] }
 0x3e0   :  { %2591 = vmatpush.msrb.mxu3 %v3707_v58  ;;  %2552 = vmatpush.msra.mxu2 %v3671_v25  ;;  %v1401_v58 = vpop.permute.xlu1 %1400 }
 0x3e1   :  { %v1872_v48 = vpop.f32.mrf.mxu3  ;;  %v1416_v17 = vsel %vm1404_vm3, %v1401_v58, %v1403_v6 }
 0x3e2   :  { %v1831_v34 = vpop.f32.mrf.mxu2  ;;  %v2201_v29 = vpop.f32.mrf.mxu1  ;;  %2553 = vmatpush.msra.mxu2 %v3669_v22  ;;  %v1463_v52 = vmax.f32 %v5265_v32, %v1416_v17  ;;  %v1712_v32 = vadd.f32 %v5972_v60, %v5980_v62 }
 0x3e3   :  { %v1832_v36 = vadd.f32 %v1831_v34, %v1700_v44 }
 0x3e4   :  { %v2154_v21 = vpop.f32.mrf.mxu0 }
 0x3e5   :  { %v6344_v20 = vadd.f32 %v1872_v48, %v1832_v36  ;;  %v2196_v11 = vadd.f32 %v2195_v40, %v2154_v21  ;;  %3741 = vmatmul.msk.f32.gmra.mxu1 %vm1606_vm4, %v6181_v53  ;;  %v3705_v40 = vld [vmem:[%s6887_s3 + $0x870] sm:$0xff]  ;;  %v3667_v21 = vld [vmem:[%s6887_s3 + $0x740] sm:$0xff] }
 0x3e6   :  { %3652 = vmatmul.msk.f32.gmra.mxu3 %vm1606_vm4, %v5368_v9  ;;  %2554 = vmatpush.msra.mxu2 %v3667_v21 }
 0x3e7   :  { %v6355_v2 = vadd.f32 %v2196_v11, %v6246_v54  ;;  %2313 = vmatmul.f32.gmra.mxu2 %v5373_v59  ;;  %2649 = vmatmul.f32.gmra.mxu0 %v5533_v5  ;;  %v3703_v54 = vld [vmem:[%s6887_s3 + $0x860] sm:$0xff] }
 0x3e8   :  { %2592 = vmatpush.msrb.mxu3 %v3705_v40  ;;  %v3699_v11 = vld [vmem:[%s6887_s3 + $0x840] sm:$0xff] }
 0x3e9   :  { %v1875_v3 = vpop.f32.mrf.mxu3 }
 0x3ea   :  { %v1834_v19 = vpop.f32.mrf.mxu2  ;;  %v2204_v0 = vpop.f32.mrf.mxu1  ;;  %2593 = vmatpush.msrb.mxu3 %v3703_v54 }
 0x3eb   :  { %v1835_v50 = vadd.f32 %v1834_v19, %v1703_v15 }
 0x3ec   :  { %v2157_v24 = vpop.f32.mrf.mxu0 }
 0x3ed   :  { %v6372_v14 = vadd.f32 %v1875_v3, %v1835_v50  ;;  %v2199_v30 = vadd.f32 %v2198_v39, %v2157_v24  ;;  %3742 = vmatmul.msk.f32.gmra.mxu1 %vm1606_vm4, %v6370_v56  ;;  %v3701_v39 = vld [vmem:[%s6887_s3 + $0x850] sm:$0xff]  ;;  %v6413_v3 = vand.u32 2147483647, %v1463_v52 }
 0x3ee   :  { %3653 = vmatmul.msk.f32.gmra.mxu3 %vm1606_vm4, %v5402_v28 }
 0x3ef   :  { %v6382_v31 = vadd.f32 %v2199_v30, %v6270_v35  ;;  %2316 = vmatmul.f32.gmra.mxu2 %v5404_v33  ;;  %2652 = vmatmul.f32.gmra.mxu0 %v5948_v1 }
 0x3f0   :  { %2594 = vmatpush.msrb.mxu3 %v3701_v39  ;;  %v1715_v39 = vadd.f32 %v6010_v18, %v6015_v4 }
 0x3f1   :  { %v1878_v61 = vpop.f32.mrf.mxu3 }
 0x3f2   :  { %v1837_v35 = vpop.f32.mrf.mxu2  ;;  %v2431_v46 = vpop.f32.mrf.mxu1  ;;  %2595 = vmatpush.msrb.mxu3 %v3699_v11 }
 0x3f3   :  { %v1838_v44 = vadd.f32 %v1837_v35, %v1706_v63 }
 0x3f4   :  { %v2160_v48 = vpop.f32.mrf.mxu0 }
 0x3f5   :  { %v6394_v34 = vadd.f32 %v1878_v61, %v1838_v44  ;;  %v2202_v36 = vadd.f32 %v2201_v29, %v2160_v48  ;;  %v1709_v29 = vadd.f32 %v5932_v38, %v5942_v26 }
 0x3f6   :  { %3654 = vmatmul.msk.f32.gmra.mxu3 %vm1606_vm4, %v5459_v55 }
 0x3f7   :  { %v6406_v8 = vadd.f32 %v2202_v36, %v6294_v13  ;;  %2319 = vmatmul.f32.gmra.mxu2 %v5461_v10  ;;  %2655 = vmatmul.f32.gmra.mxu0 %v6227_v27 }
 0x3f9   :  { %v1881_v51 = vpop.f32.mrf.mxu3 }
 0x3fa   :  { %v1840_v40 = vpop.f32.mrf.mxu2  ;;  %v2434_v6 = vpop.f32.mrf.mxu1 }
 0x3fb   :  { %v1841_v42 = vadd.f32 %v1840_v40, %v1709_v29 }
 0x3fc   :  { %v2163_v15 = vpop.f32.mrf.mxu0 }
 0x3fd   :  { %v6415_v54 = vadd.f32 %v1881_v51, %v1841_v42  ;;  %v2205_v13 = vadd.f32 %v2204_v0, %v2163_v15 }
 0x3fe   :  { %3655 = vmatmul.msk.f32.gmra.mxu3 %vm1606_vm4, %v5528_v49 }
 0x3ff   :  { %v6420_v19 = vadd.f32 %v2205_v13, %v6315_v7  ;;  %2322 = vmatmul.f32.gmra.mxu2 %v5533_v5  ;;  %2658 = vmatmul.f32.gmra.mxu0 %v6413_v3 }
 0x401   :  { %v1884_v38 = vpop.f32.mrf.mxu3 }
 0x402   :  { %v1843_v26 = vpop.f32.mrf.mxu2  ;;  %v2437_v50 = vpop.f32.mrf.mxu1 }
 0x403   :  { %v1844_v24 = vadd.f32 %v1843_v26, %v1712_v32 }
 0x404   :  { %v2390_v30 = vpop.f32.mrf.mxu0 }
 0x405   :  { %v6426_v25 = vadd.f32 %v1884_v38, %v1844_v24  ;;  %v2432_v0 = vadd.f32 %v2431_v46, %v2390_v30 }
 0x406   :  { %3656 = vmatmul.msk.f32.gmra.mxu3 %vm1606_vm4, %v5901_v37 }
 0x407   :  { %v6431_v7 = vadd.f32 %v2432_v0, %v6259_v57  ;;  %2325 = vmatmul.f32.gmra.mxu2 %v5948_v1 }
 0x409   :  { %v1887_v60 = vpop.f32.mrf.mxu3 }
 0x40a   :  { %v1846_v62 = vpop.f32.mrf.mxu2  ;;  %v6436_v22 = vpop.f32.mrf.mxu1 }
 0x40b   :  { %v1847_v63 = vadd.f32 %v1846_v62, %v1715_v39 }
 0x40c   :  { %v2393_v61 = vpop.f32.mrf.mxu0 }
 0x40d   :  { %v6438_v35 = vadd.f32 %v1887_v60, %v1847_v63  ;;  %v2435_v46 = vadd.f32 %v2434_v6, %v2393_v61 }
 0x40e   :  { %3657 = vmatmul.msk.f32.gmra.mxu3 %vm1606_vm4, %v6181_v53 }
 0x40f   :  { %v6443_v57 = vadd.f32 %v2435_v46, %v6283_v45  ;;  %2328 = vmatmul.f32.gmra.mxu2 %v6227_v27 }
 0x411   :  { %v1890_v58 = vpop.f32.mrf.mxu3 }
 0x412   :  { %v1849_v44 = vpop.f32.mrf.mxu2  ;;  %v2443_v18 = vpop.f32.mrf.mxu1 }
 0x413   :  { %v1850_v4 = vadd.f32 %v1849_v44, %v6065_v41 }
 0x414   :  { %v2396_v48 = vpop.f32.mrf.mxu0 }
 0x415   :  { %v6447_v36 = vadd.f32 %v1890_v58, %v1850_v4  ;;  %v2438_v21 = vadd.f32 %v2437_v50, %v2396_v48 }
 0x416   :  { %3726 = vmatmul.msk.f32.vlgmr.msrb.gmra.mxu3 %vm1606_vm4, %v5334_v23 }
 0x417   :  { %v6452_v11 = vadd.f32 %v2438_v21, %v6304_v47  ;;  %2555 = vmatmul.f32.vlgmr.msra.gmra.mxu2 %v5336_v12 }
 0x419   :  { %v6455_v45 = vpop.f32.mrf.mxu3 }
 0x41a   :  { %v6457_v17 = vpop.f32.mrf.mxu2  ;;  %v2446_v52 = vpop.f32.mrf.mxu1 }
 0x41c   :  { %v6459_v29 = vpop.f32.mrf.mxu0 }
 0x41e   :  { %3727 = vmatmul.msk.f32.gmra.mxu3 %vm1606_vm4, %v5368_v9 }
 0x41f   :  { %2558 = vmatmul.f32.gmra.mxu2 %v5373_v59 }
 0x421   :  { %v6464_v41 = vpop.f32.mrf.mxu3 }
 0x422   :  { %v6466_v23 = vpop.f32.mrf.mxu2  ;;  %v2449_v47 = vpop.f32.mrf.mxu1 }
 0x424   :  { %v2402_v51 = vpop.f32.mrf.mxu0 }
 0x425   :  { %v2444_v40 = vadd.f32 %v2443_v18, %v2402_v51 }
 0x426   :  { %3728 = vmatmul.msk.f32.gmra.mxu3 %vm1606_vm4, %v5402_v28 }
 0x427   :  { %v6471_v12 = vadd.f32 %v2444_v40, %v6355_v2  ;;  %2561 = vmatmul.f32.gmra.mxu2 %v5404_v33 }
 0x429   :  { %v6474_v6 = vpop.f32.mrf.mxu3 }
 0x42a   :  { %v6476_v9 = vpop.f32.mrf.mxu2  ;;  %v6478_v59 = vpop.f32.mrf.mxu1 }
 0x42c   :  { %v2405_v42 = vpop.f32.mrf.mxu0 }
 0x42d   :  { %v2447_v15 = vadd.f32 %v2446_v52, %v2405_v42 }
 0x42e   :  { %3729 = vmatmul.msk.f32.gmra.mxu3 %vm1606_vm4, %v5459_v55 }
 0x42f   :  { %v6483_v13 = vadd.f32 %v2447_v15, %v6382_v31  ;;  %2564 = vmatmul.f32.gmra.mxu2 %v5461_v10 }
 0x431   :  { %v6486_v28 = vpop.f32.mrf.mxu3 }
 0x432   :  { %v6488_v2 = vpop.f32.mrf.mxu2  ;;  %v2679_v38 = vpop.f32.mrf.mxu1 }
 0x434   :  { %v2408_v33 = vpop.f32.mrf.mxu0 }
 0x435   :  { %v2450_v32 = vadd.f32 %v2449_v47, %v2408_v33 }
 0x436   :  { %3730 = vmatmul.msk.f32.gmra.mxu3 %vm1606_vm4, %v5528_v49 }
 0x437   :  { %v6493_v26 = vadd.f32 %v2450_v32, %v6406_v8  ;;  %2567 = vmatmul.f32.gmra.mxu2 %v5533_v5 }
 0x439   :  { %v2113_v55 = vpop.f32.mrf.mxu3 }
 0x43a   :  { %v2072_v31 = vpop.f32.mrf.mxu2  ;;  %v2682_v30 = vpop.f32.mrf.mxu1 }
 0x43b   :  { %v2114_v50 = vadd.f32 %v2113_v55, %v2072_v31 }
 0x43c   :  { %v6496_v24 = vpop.f32.mrf.mxu0 }
 0x43d   :  { %v6499_v10 = vadd.f32 %v2114_v50, %v6415_v54 }
 0x43e   :  { %3731 = vmatmul.msk.f32.gmra.mxu3 %vm1606_vm4, %v5901_v37  ;;  %v6513_v37 = vld [vmem:[%s6889_s4] sm:$0x3]  ;;  %s3821_s4 = smov 108  }
 0x43f   :  { %2570 = vmatmul.f32.gmra.mxu2 %v5948_v1 }
 0x441   :  { %v2116_v49 = vpop.f32.mrf.mxu3 }
 0x442   :  { %v2075_v0 = vpop.f32.mrf.mxu2  ;;  %v2685_v62 = vpop.f32.mrf.mxu1 }
 0x443   :  { %v2117_v8 = vadd.f32 %v2116_v49, %v2075_v0 }
 0x444   :  { %v2638_v39 = vpop.f32.mrf.mxu0 }
 0x445   :  { %v6505_v5 = vadd.f32 %v2117_v8, %v6426_v25  ;;  %v2680_v54 = vadd.f32 %v2679_v38, %v2638_v39  ;;  %v6517_v25 = vperm.slane %v6513_v37, 1 }
 0x446   :  { %3732 = vmatmul.msk.f32.gmra.mxu3 %vm1606_vm4, %v6181_v53 }
 0x447   :  { %2573 = vmatmul.f32.gmra.mxu2 %v6227_v27  ;;  %v2704_v46 = vadd.f32 %v2680_v54, %v6431_v7 }
 0x449   :  { %v2119_v60 = vpop.f32.mrf.mxu3  ;;  %v2726_v44 = vadd.f32 %v6517_v25, %v2704_v46 }
 0x44a   :  { %v2078_v1 = vpop.f32.mrf.mxu2  ;;  %v2688_v52 = vpop.f32.mrf.mxu1 }
 0x44b   :  { %v2120_v63 = vadd.f32 %v2119_v60, %v2078_v1 }
 0x44c   :  { %v2641_v61 = vpop.f32.mrf.mxu0 }
 0x44d   :  { %v6520_v53 = vadd.f32 %v2120_v63, %v6438_v35  ;;  %v2683_v27 = vadd.f32 %v2682_v30, %v2641_v61 }
 0x44e   :  { %3733 = vmatmul.msk.f32.gmra.mxu3 %vm1606_vm4, %v6370_v56  ;;  %v2102_v56 = vadd.f32 %v6455_v45, %v6457_v17 }
 0x44f   :  { %v2706_v58 = vadd.f32 %v2683_v27, %v6443_v57  ;;  %2576 = vmatmul.f32.gmra.mxu2 %v6413_v3  ;;  %v2441_v3 = vadd.f32 %v6436_v22, %v6459_v29 }
 0x450   :  { %v2207_v42 = vadd.f32 %v2102_v56, %v6319_v43 }
 0x451   :  { %v2728_v18 = vadd.f32 %v6517_v25, %v2706_v58  ;;  %v2122_v4 = vpop.f32.mrf.mxu3  ;;  %v2462_v32 = vadd.f32 %v2441_v3, %v6332_v16  ;;  %v2108_v16 = vadd.f32 %v6474_v6, %v6476_v9 }
 0x452   :  { %v2081_v7 = vpop.f32.mrf.mxu2  ;;  %v2691_v31 = vpop.f32.mrf.mxu1 }
 0x453   :  { %v2123_v48 = vadd.f32 %v2122_v4, %v2081_v7  ;;  %v6528_v21 = vmax.f32 %v2726_v44, %v2728_v18  ;;  %v2211_v60 = vadd.f32 %v2108_v16, %v6372_v14  ;;  %v2453_v14 = vadd.f32 %v6478_v59, %v6496_v24 }
 0x454   :  { %v2644_v35 = vpop.f32.mrf.mxu0 }
 0x455   :  { %v6531_v47 = vadd.f32 %v2123_v48, %v6447_v36  ;;  %v2686_v57 = vadd.f32 %v2685_v62, %v2644_v35  ;;  %v2470_v56 = vadd.f32 %v2453_v14, %v6420_v19 }
 0x457   :  { %v2708_v38 = vadd.f32 %v2686_v57, %v6452_v11 }
 0x459   :  { %v2349_v51 = vpop.f32.mrf.mxu3  ;;  %v2730_v45 = vadd.f32 %v6517_v25, %v2708_v38 }
 0x45a   :  { %v2308_v40 = vpop.f32.mrf.mxu2  ;;  %v2694_v0 = vpop.f32.mrf.mxu1 }
 0x45b   :  { %v2350_v15 = vadd.f32 %v2349_v51, %v2308_v40 }
 0x45c   :  { %v2647_v33 = vpop.f32.mrf.mxu0 }
 0x45d   :  { %v6540_v55 = vadd.f32 %v2350_v15, %v2207_v42  ;;  %v2689_v36 = vadd.f32 %v2688_v52, %v2647_v33 }
 0x45f   :  { %v2710_v50 = vadd.f32 %v2689_v36, %v2462_v32 }
 0x461   :  { %v2732_v22 = vadd.f32 %v6517_v25, %v2710_v50  ;;  %v2352_v17 = vpop.f32.mrf.mxu3 }
 0x462   :  { %v2311_v29 = vpop.f32.mrf.mxu2 }
 0x463   :  { %v6544_v30 = vmax.f32 %v2730_v45, %v2732_v22  ;;  %v2353_v50 = vadd.f32 %v2352_v17, %v2311_v29 }
 0x464   :  { %v2650_v43 = vpop.f32.mrf.mxu0 }
 0x465   :  { %v2692_v49 = vadd.f32 %v2691_v31, %v2650_v43  ;;  %2763 = vrot.lane.b32.xlu0 %v6544_v30, %s3821_s4 }
 0x467   :  { %v2712_v11 = vadd.f32 %v2692_v49, %v6471_v12  ;;  %v2697_v12 = vpop.f32.mrf.mxu1 }
 0x469   :  { %v2734_v8 = vadd.f32 %v6517_v25, %v2712_v11  ;;  %v2355_v39 = vpop.f32.mrf.mxu3 }
 0x46a   :  { %v2314_v54 = vpop.f32.mrf.mxu2 }
 0x46b   :  { %v2356_v62 = vadd.f32 %v2355_v39, %v2314_v54 }
 0x46c   :  { %v2653_v1 = vpop.f32.mrf.mxu0 }
 0x46d   :  { %v2459_v63 = vadd.f32 %v2356_v62, %v2211_v60  ;;  %v2695_v61 = vadd.f32 %v2694_v0, %v2653_v1  ;;  %2759 = vrot.lane.b32.xlu0 %v6528_v21, %s3821_s4 }
 0x46f   :  { %v2714_v46 = vadd.f32 %v2695_v61, %v6483_v13  ;;  %v2700_v52 = vpop.f32.mrf.mxu1 }
 0x471   :  { %v2736_v6 = vadd.f32 %v6517_v25, %v2714_v46  ;;  %v2358_v9 = vpop.f32.mrf.mxu3 }
 0x472   :  { %v2317_v27 = vpop.f32.mrf.mxu2 }
 0x473   :  { %v6557_v58 = vmax.f32 %v2734_v8, %v2736_v6 }
 0x474   :  { %v2656_v44 = vpop.f32.mrf.mxu0 }
 0x475   :  { %v2698_v18 = vadd.f32 %v2697_v12, %v2656_v44 }
 0x477   :  { %v2716_v13 = vadd.f32 %v2698_v18, %v6493_v26 }
 0x479   :  { %v2361_v4 = vpop.f32.mrf.mxu3  ;;  %v2738_v40 = vadd.f32 %v6517_v25, %v2716_v13  ;;  %v3758_v13 = vld [vmem:[%s6890_s5 + $0x108] sm:$0xff] }
 0x47a   :  { %v2320_v7 = vpop.f32.mrf.mxu2  ;;  %2846 = vmatpush.msrb.mxu2 %v3758_v13  ;;  %v3794_v13 = vld [vmem:[%s6890_s5 + $0x1f8] sm:$0xff] }
 0x47b   :  { %v2362_v48 = vadd.f32 %v2361_v4, %v2320_v7  ;;  %v3760_v4 = vld [vmem:[%s6890_s5 + $0x118] sm:$0xf] }
 0x47c   :  { %v2659_v35 = vpop.f32.mrf.mxu0  ;;  %3761 = vmatpush.msk.msra.mxu3 %vm150_vm0, %v3760_v4  ;;  %v3743_v4 = vld [vmem:[%s6890_s5 + $0x90] sm:$0xff] }
 0x47d   :  { %v6564_v3 = vadd.f32 %v2362_v48, %v6499_v10  ;;  %v2701_v57 = vadd.f32 %v2700_v52, %v2659_v35  ;;  %v2818_v48 = vld [vmem:[%s6890_s5 + $0x80] sm:$0xff] }
 0x47f   :  { %v2718_v51 = vadd.f32 %v2701_v57, %v2470_v56 }
 0x481   :  { %v2740_v42 = vadd.f32 %v6517_v25, %v2718_v51  ;;  %v2364_v59 = vpop.f32.mrf.mxu3  ;;  %v2105_v25 = vadd.f32 %v6464_v41, %v6466_v23  ;;  %v2359_v41 = vadd.f32 %v2358_v9, %v2317_v27  ;;  %v2819_v27 = vld [vmem:[%s6890_s5 + $0x88] sm:$0xf] }
 0x482   :  { %v2323_v24 = vpop.f32.mrf.mxu2 }
 0x483   :  { %v6568_v15 = vmax.f32 %v2738_v40, %v2740_v42  ;;  %v2209_v22 = vadd.f32 %v2105_v25, %v6344_v20  ;;  %v2111_v20 = vadd.f32 %v6486_v28, %v6488_v2  ;;  %v2365_v2 = vadd.f32 %v2364_v59, %v2323_v24 }
 0x485   :  { %2771 = vrot.lane.b32.xlu0 %v6568_v15, %s3821_s4  ;;  %v2457_v16 = vadd.f32 %v2353_v50, %v2209_v22  ;;  %v2465_v52 = vadd.f32 %v2365_v2, %v6505_v5  ;;  %v2815_v2 = vld [vmem:[%s6890_s5 + $0x68] sm:$0xff] }
 0x489   :  { %v2367_v33 = vpop.f32.mrf.mxu3 }
 0x48a   :  { %v2326_v19 = vpop.f32.mrf.mxu2 }
 0x48b   :  { %v2368_v32 = vadd.f32 %v2367_v33, %v2326_v19 }
 0x48d   :  { %v6573_v26 = vadd.f32 %v2368_v32, %v6520_v53  ;;  %v2721_v53 = vperm.slane %v6513_v37, 0 }
 0x491   :  { %v6575_v10 = vpop.f32.mrf.mxu3 }
 0x492   :  { %v2329_v38 = vpop.f32.mrf.mxu2 }
 0x493   :  { %v2371_v5 = vadd.f32 %v6575_v10, %v2329_v38  ;;  %v3757_v38 = vld [vmem:[%s6890_s5 + $0x100] sm:$0xff] }
 0x494   :  { %2847 = vmatpush.msrb.mxu2 %v3757_v38  ;;  %v3791_v38 = vld [vmem:[%s6890_s5 + $0x1e0] sm:$0xff] }
 0x495   :  { %v2469_v32 = vadd.f32 %v2371_v5, %v6531_v47  ;;  %v3756_v47 = vld [vmem:[%s6890_s5 + $0xf8] sm:$0xff]  ;;  %v2807_v5 = vld [vmem:[%s6890_s5 + $0x28] sm:$0xff] }
 0x496   :  { %2848 = vmatpush.msrb.mxu2 %v3756_v47  ;;  %v2802_v47 = vld [vmem:[%s6890_s5] sm:$0xff] }
 0x499   :  { %v2597_v36 = vpop.f32.mrf.mxu3 }
 0x49a   :  { %v2556_v31 = vpop.f32.mrf.mxu2 }
 0x49b   :  { %v2598_v45 = vadd.f32 %v2597_v36, %v2556_v31 }
 0x49d   :  { %v2703_v11 = vadd.f32 %v2598_v45, %v6540_v55  ;;  %v2213_v55 = vadd.f32 %v2111_v20, %v6394_v34  ;;  %v3759_v34 = vld [vmem:[%s6890_s5 + $0x110] sm:$0xff]  ;;  %v3798_v20 = vld [vmem:[%s6890_s5 + $0x218] sm:$0xff] }
 0x49e   :  { %2881 = vmatpush.msra.mxu3 %v3759_v34  ;;  %v2816_v34 = vld [vmem:[%s6890_s5 + $0x70] sm:$0xff] }
 0x49f   :  { %v2725_v39 = vadd.f32 %v2721_v53, %v2703_v11  ;;  %v2461_v29 = vadd.f32 %v2359_v41, %v2213_v55  ;;  %v3780_v41 = vld [vmem:[%s6890_s5 + $0x198] sm:$0xff] }
 0x4a0   :  { %3763 = vmatpush.msk.msrb.mxu3 %vm150_vm0, %v2819_v27  ;;  %v3748_v55 = vld [vmem:[%s6890_s5 + $0xb8] sm:$0xff]  ;;  %v2812_v27 = vld [vmem:[%s6890_s5 + $0x50] sm:$0xff] }
 0x4a1   :  { %v2600_v43 = vpop.f32.mrf.mxu3 }
 0x4a2   :  { %v2559_v49 = vpop.f32.mrf.mxu2  ;;  %2927 = vmatpush.msrb.mxu3 %v2818_v48  ;;  %v3795_v48 = vld [vmem:[%s6890_s5 + $0x200] sm:$0xff] }
 0x4a3   :  { %v2601_v0 = vadd.f32 %v2600_v43, %v2559_v49 }
 0x4a5   :  { %v2705_v8 = vadd.f32 %v2601_v0, %v2457_v16  ;;  %v3753_v0 = vld [vmem:[%s6890_s5 + $0xe0] sm:$0xff] }
 0x4a7   :  { %v2727_v54 = vadd.f32 %v2721_v53, %v2705_v8  ;;  %v3752_v8 = vld [vmem:[%s6890_s5 + $0xd8] sm:$0xff] }
 0x4a9   :  { %v2603_v60 = vpop.f32.mrf.mxu3  ;;  %v6582_v62 = vmax.f32 %v2725_v39, %v2727_v54  ;;  %v3751_v39 = vld [vmem:[%s6890_s5 + $0xd0] sm:$0xff]  ;;  %v3800_v54 = vld [vmem:[%s6890_s5 + $0x228] sm:$0xff] }
 0x4aa   :  { %v2562_v1 = vpop.f32.mrf.mxu2  ;;  %3023 = vmatpush.msrb.mxu0 %v3800_v54 }
 0x4ab   :  { %2757 = vrot.lane.b32.xlu2 %v6582_v62, %s3821_s4  ;;  %v2604_v23 = vadd.f32 %v2603_v60, %v2562_v1  ;;  %v3799_v60 = vld [vmem:[%s6890_s5 + $0x220] sm:$0xff] }
 0x4ac   :  { %v3749_v1 = vld [vmem:[%s6890_s5 + $0xc0] sm:$0xff]  ;;  %3024 = vmatpush.msrb.mxu0 %v3799_v60 }
 0x4ad   :  { %v2707_v61 = vadd.f32 %v2604_v23, %v2459_v63  ;;  %v3779_v23 = vld [vmem:[%s6890_s5 + $0x190] sm:$0xff] }
 0x4ae   :  { %3025 = vmatpush.msrb.mxu0 %v3798_v20  ;;  %v3782_v20 = vld [vmem:[%s6890_s5 + $0x1a8] sm:$0xf] }
 0x4af   :  { %v2729_v12 = vadd.f32 %v2721_v53, %v2707_v61  ;;  %v3796_v61 = vld [vmem:[%s6890_s5 + $0x208] sm:$0xff] }
 0x4b1   :  { %v2606_v17 = vpop.f32.mrf.mxu3 }
 0x4b2   :  { %v2565_v37 = vpop.f32.mrf.mxu2 }
 0x4b3   :  { %v2607_v46 = vadd.f32 %v2606_v17, %v2565_v37  ;;  %v3797_v17 = vld [vmem:[%s6890_s5 + $0x210] sm:$0xff]  ;;  %v3778_v37 = vld [vmem:[%s6890_s5 + $0x188] sm:$0xff] }
 0x4b4   :  { %3026 = vmatpush.msrb.mxu0 %v3797_v17 }
 0x4b5   :  { %v2709_v6 = vadd.f32 %v2607_v46, %v2461_v29  ;;  %v3747_v29 = vld [vmem:[%s6890_s5 + $0xb0] sm:$0xff]  ;;  %v3777_v46 = vld [vmem:[%s6890_s5 + $0x180] sm:$0xff] }
 0x4b6   :  { %3027 = vmatpush.msrb.mxu0 %v3796_v61 }
 0x4b7   :  { %v2731_v44 = vadd.f32 %v2721_v53, %v2709_v6  ;;  %v3746_v6 = vld [vmem:[%s6890_s5 + $0xa8] sm:$0xff] }
 0x4b8   :  { %3028 = vmatpush.msrb.mxu0 %v3795_v48  ;;  %v3070_v48 = vld [vmem:[%s6893_s7] sm:$0xff] }
 0x4b9   :  { %v2609_v14 = vpop.f32.mrf.mxu3  ;;  %v6589_v18 = vmax.f32 %v2729_v12, %v2731_v44  ;;  %v3776_v12 = vld [vmem:[%s6890_s5 + $0x178] sm:$0xff]  ;;  %v3745_v44 = vld [vmem:[%s6890_s5 + $0xa0] sm:$0xff] }
 0x4ba   :  { %v2568_v28 = vpop.f32.mrf.mxu2  ;;  %3029 = vmatpush.msrb.mxu0 %v3794_v13 }
 0x4bb   :  { %2761 = vrot.lane.b32.xlu1 %v6589_v18, %s3821_s4  ;;  %v2610_v63 = vadd.f32 %v2609_v14, %v2568_v28  ;;  %v3744_v14 = vld [vmem:[%s6890_s5 + $0x98] sm:$0xff] }
 0x4bc   :  { %v2817_v28 = vld [vmem:[%s6890_s5 + $0x78] sm:$0xff] }
 0x4bd   :  { %v2711_v35 = vadd.f32 %v2610_v63, %v6564_v3  ;;  %v2814_v63 = vld [vmem:[%s6890_s5 + $0x60] sm:$0xff] }
 0x4bf   :  { %v2733_v51 = vadd.f32 %v2721_v53, %v2711_v35  ;;  %v3774_v35 = vld [vmem:[%s6890_s5 + $0x168] sm:$0xff] }
 0x4c1   :  { %v2612_v9 = vpop.f32.mrf.mxu3 }
 0x4c2   :  { %v2571_v7 = vpop.f32.mrf.mxu2 }
 0x4c3   :  { %v2613_v56 = vadd.f32 %v2612_v9, %v2571_v7  ;;  %2767 = vrot.lane.b32.xlu1 %v6557_v58, %s3821_s4  ;;  %v2813_v9 = vld [vmem:[%s6890_s5 + $0x58] sm:$0xff]  ;;  %v3775_v7 = vld [vmem:[%s6890_s5 + $0x170] sm:$0xff] }
 0x4c5   :  { %v2713_v57 = vadd.f32 %v2613_v56, %v2465_v52  ;;  %v2811_v52 = vld [vmem:[%s6890_s5 + $0x48] sm:$0xff]  ;;  %v3773_v56 = vld [vmem:[%s6890_s5 + $0x160] sm:$0xff] }
 0x4c7   :  { %v2735_v40 = vadd.f32 %v2721_v53, %v2713_v57  ;;  %v2810_v57 = vld [vmem:[%s6890_s5 + $0x40] sm:$0xff] }
 0x4c9   :  { %v2615_v42 = vpop.f32.mrf.mxu3  ;;  %v6614_v59 = vmax.f32 %v2733_v51, %v2735_v40  ;;  %v3772_v51 = vld [vmem:[%s6890_s5 + $0x158] sm:$0xff] }
 0x4ca   :  { %v2574_v24 = vpop.f32.mrf.mxu2  ;;  %v2809_v40 = vld [vmem:[%s6890_s5 + $0x38] sm:$0xff] }
 0x4cb   :  { %2765 = vrot.lane.b32.xlu2 %v6614_v59, %s3821_s4  ;;  %v2616_v3 = vadd.f32 %v2615_v42, %v2574_v24  ;;  %v2808_v42 = vld [vmem:[%s6890_s5 + $0x30] sm:$0xff] }
 0x4cc   :  { %v3771_v24 = vld [vmem:[%s6890_s5 + $0x150] sm:$0xff] }
 0x4cd   :  { %v2715_v36 = vadd.f32 %v2616_v3, %v6573_v26  ;;  %v3754_v26 = vld [vmem:[%s6890_s5 + $0xe8] sm:$0xff] }
 0x4ce   :  { %v3770_v3 = vld [vmem:[%s6890_s5 + $0x148] sm:$0xff] }
 0x4cf   :  { %v2737_v50 = vadd.f32 %v2721_v53, %v2715_v36  ;;  %v3792_v36 = vld [vmem:[%s6890_s5 + $0x1e8] sm:$0xff] }
 0x4d1   :  { %v2618_v33 = vpop.f32.mrf.mxu3 }
 0x4d2   :  { %v2577_v19 = vpop.f32.mrf.mxu2 }
 0x4d3   :  { %v2619_v31 = vadd.f32 %v2618_v33, %v2577_v19  ;;  %v3793_v33 = vld [vmem:[%s6890_s5 + $0x1f0] sm:$0xff]  ;;  %v2806_v19 = vld [vmem:[%s6890_s5 + $0x20] sm:$0xff] }
 0x4d4   :  { %3030 = vmatpush.msrb.mxu0 %v3793_v33 }
 0x4d5   :  { %v2717_v25 = vadd.f32 %v2619_v31, %v2469_v32  ;;  %v3769_v32 = vld [vmem:[%s6890_s5 + $0x140] sm:$0xff]  ;;  %v2805_v31 = vld [vmem:[%s6890_s5 + $0x18] sm:$0xff] }
 0x4d6   :  { %3031 = vmatpush.msrb.mxu0 %v3792_v36 }
 0x4d7   :  { %v2739_v45 = vadd.f32 %v2721_v53, %v2717_v25  ;;  %v6621_v22 = vpop.permute.xlu0 %2763  ;;  %v3768_v25 = vld [vmem:[%s6890_s5 + $0x138] sm:$0xff] }
 0x4d8   :  { %v2789_v43 = vmax.f32 %v6544_v30, %v6621_v22  ;;  %v3755_v30 = vld [vmem:[%s6890_s5 + $0xf0] sm:$0xff]  ;;  %3032 = vmatpush.msrb.mxu0 %v3791_v38 }
 0x4d9   :  { %v6625_v49 = vmax.f32 %v2737_v50, %v2739_v45  ;;  %2849 = vmatpush.msrb.mxu2 %v3755_v30  ;;  %v2804_v50 = vld [vmem:[%s6890_s5 + $0x10] sm:$0xff]  ;;  %v3765_v30 = vld [vmem:[%s6890_s5 + $0x120] sm:$0xff] }
 0x4da   :  { %v2797_v10 = vmax.f32 %v2789_v43, 0.0  ;;  %v3767_v45 = vld [vmem:[%s6890_s5 + $0x130] sm:$0xff]  ;;  %v2803_v43 = vld [vmem:[%s6890_s5 + $0x8] sm:$0xff] }
 0x4db   :  { %2769 = vrot.lane.b32.xlu1 %v6625_v49, %s3821_s4  ;;  %2850 = vmatpush.msrb.mxu2 %v3754_v26  ;;  %v3790_v26 = vld [vmem:[%s6890_s5 + $0x1d8] sm:$0xff] }
 0x4dc   :  { %3762 = vmatmul.msk.f32.vlgmr.msra.gmra.mxu3 %vm2839_vm5, %v2797_v10  ;;  %v3766_v10 = vld [vmem:[%s6890_s5 + $0x128] sm:$0xff]  ;;  %3033 = vmatpush.msrb.mxu0 %v3790_v26 }
 0x4dd   :  { %2851 = vmatpush.msrb.mxu2 %v3753_v0  ;;  %2957 = vmatpush.msra.mxu3 %v3780_v41  ;;  %v3787_v0 = vld [vmem:[%s6890_s5 + $0x1c0] sm:$0xff]  ;;  %v3785_v41 = vld [vmem:[%s6890_s5 + $0x1b0] sm:$0xff] }
 0x4df   :  { %v6642_v16 = vpop.permute.xlu0 %2759  ;;  %2852 = vmatpush.msrb.mxu2 %v3752_v8  ;;  %2958 = vmatpush.msra.mxu3 %v3779_v23  ;;  %v3786_v8 = vld [vmem:[%s6890_s5 + $0x1b8] sm:$0xff] }
 0x4e0   :  { %v2787_v11 = vmax.f32 %v6528_v21, %v6642_v16  ;;  %v3750_v21 = vld [vmem:[%s6890_s5 + $0xc8] sm:$0xff] }
 0x4e1   :  { %2853 = vmatpush.msrb.mxu2 %v3751_v39  ;;  %2959 = vmatpush.msra.mxu3 %v3778_v37 }
 0x4e2   :  { %v2795_v53 = vmax.f32 %v2787_v11, 0.0  ;;  %v3789_v11 = vld [vmem:[%s6890_s5 + $0x1d0] sm:$0xff] }
 0x4e3   :  { %2854 = vmatpush.msrb.mxu2 %v3750_v21  ;;  %2960 = vmatpush.msra.mxu3 %v3777_v46 }
 0x4e4   :  { %3764 = vmatmul.msk.f32.vlgmr.msrb.gmra.mxu3 %vm2839_vm5, %v2795_v53  ;;  %3034 = vmatpush.msrb.mxu0 %v3789_v11  ;;  %v3788_v53 = vld [vmem:[%s6890_s5 + $0x1c8] sm:$0xff] }
 0x4e5   :  { %2855 = vmatpush.msrb.mxu2 %v3749_v1  ;;  %2961 = vmatpush.msra.mxu3 %v3776_v12 }
 0x4e6   :  { %3035 = vmatpush.msrb.mxu0 %v3788_v53 }
 0x4e7   :  { %2856 = vmatpush.msrb.mxu2 %v3748_v55  ;;  %2962 = vmatpush.msra.mxu3 %v3775_v7  ;;  %v3071_v7 = vld [vmem:[%s6893_s7 + $0x8] sm:$0xff] }
 0x4e8   :  { %3036 = vmatpush.msrb.mxu0 %v3787_v0 }
 0x4e9   :  { %2857 = vmatpush.msrb.mxu2 %v3747_v29  ;;  %2963 = vmatpush.msra.mxu3 %v3774_v35 }
 0x4ea   :  { %3037 = vmatpush.msrb.mxu0 %v3786_v8 }
 0x4eb   :  { %2858 = vmatpush.msrb.mxu2 %v3746_v6  ;;  %2964 = vmatpush.msra.mxu3 %v3773_v56  ;;  %v3801_v6 = vld [vmem:[%s6890_s5 + $0x230] sm:$0xff] }
 0x4ec   :  { %3038 = vmatpush.msrb.mxu0 %v3785_v41 }
 0x4ed   :  { %2859 = vmatpush.msrb.mxu2 %v3745_v44  ;;  %2965 = vmatpush.msra.mxu3 %v3772_v51 }
 0x4ef   :  { %2860 = vmatpush.msrb.mxu2 %v3744_v14  ;;  %2966 = vmatpush.msra.mxu3 %v3771_v24 }
 0x4f1   :  { %2861 = vmatpush.msrb.mxu2 %v3743_v4  ;;  %2967 = vmatpush.msra.mxu3 %v3770_v3 }
 0x4f3   :  { %2892 = vmatpush.msra.mxu2 %v2817_v28  ;;  %2968 = vmatpush.msra.mxu3 %v3769_v32  ;;  %v3813_v32 = vld [vmem:[%s6891_s6] ss:$0 sm:$0xff] }
 0x4f5   :  { %2893 = vmatpush.msra.mxu2 %v2816_v34  ;;  %2969 = vmatpush.msra.mxu3 %v3768_v25 }
 0x4f7   :  { %2894 = vmatpush.msra.mxu2 %v2815_v2  ;;  %2970 = vmatpush.msra.mxu3 %v3767_v45  ;;  %v2772_v44 = vpop.permute.xlu0 %2771 }
 0x4f9   :  { %2895 = vmatpush.msra.mxu2 %v2814_v63  ;;  %2971 = vmatpush.msra.mxu3 %v3766_v10  ;;  %v3074_v63 = vld [vmem:[%s6893_s7 + $0x20] sm:$0xff] }
 0x4fb   :  { %2896 = vmatpush.msra.mxu2 %v2813_v9  ;;  %2972 = vmatpush.msra.mxu3 %v3765_v30  ;;  %v3072_v9 = vld [vmem:[%s6893_s7 + $0x10] sm:$0xff] }
 0x4fd   :  { %2897 = vmatpush.msra.mxu2 %v2812_v27 }
 0x4ff   :  { %2898 = vmatpush.msra.mxu2 %v2811_v52 }
 0x501   :  { %2899 = vmatpush.msra.mxu2 %v2810_v57 }
 0x503   :  { %2900 = vmatpush.msra.mxu2 %v2809_v40 }
 0x505   :  { %2901 = vmatpush.msra.mxu2 %v2808_v42  ;;  %v2758_v39 = vpop.permute.xlu2 %2757 }
 0x506   :  { %v2774_v23 = vsel %vm2773_vm6, %v2758_v39, %v6642_v16  ;;  %v3802_v16 = vld [vmem:[%s6890_s5 + $0x238] sm:$0xf] }
 0x507   :  { %2902 = vmatpush.msra.mxu2 %v2807_v5 }
 0x509   :  { %2903 = vmatpush.msra.mxu2 %v2806_v19 }
 0x50b   :  { %2904 = vmatpush.msra.mxu2 %v2805_v31 }
 0x50d   :  { %2905 = vmatpush.msra.mxu2 %v2804_v50  ;;  %v3814_v50 = vld [vmem:[%s6892_s8] ss:$0 sm:$0xff] }
 0x50f   :  { %2906 = vmatpush.msra.mxu2 %v2803_v43 }
 0x511   :  { %2907 = vmatpush.msra.mxu2 %v2802_v47 }
 0x525   :  { %v2766_v55 = vpop.permute.xlu2 %2765 }
 0x52d   :  { %v2762_v21 = vpop.permute.xlu1 %2761 }
 0x52e   :  { %v2775_v54 = vsel %vm2773_vm6, %v2762_v21, %v6621_v22  ;;  %v3781_v22 = vld [vmem:[%s6890_s5 + $0x1a0] sm:$0xff] }
 0x52f   :  { %v2788_v60 = vmax.f32 %v6589_v18, %v2775_v54  ;;  %v2786_v18 = vmax.f32 %v6582_v62, %v2774_v23 }
 0x531   :  { %v2796_v1 = vmax.f32 %v2788_v60, 0.0  ;;  %v2794_v61 = vmax.f32 %v2786_v18, 0.0 }
 0x533   :  { %2862 = vmatmul.f32.vlgmr.msrb.gmra.mxu2 %v2796_v1 }
 0x534   :  { %3783 = vmatpush.msk.msrb.mxu2 %vm150_vm0, %v3782_v20 }
 0x535   :  { %v2768_v17 = vpop.permute.xlu1 %2767 }
 0x536   :  { %v2776_v37 = vsel %vm2773_vm6, %v2766_v55, %v2768_v17  ;;  %2992 = vmatpush.msrb.mxu2 %v3781_v22  ;;  %v2791_v62 = vmax.f32 %v6557_v58, %v2768_v17  ;;  %v3076_v58 = vld [vmem:[%s6893_s7 + $0x30] sm:$0x3] }
 0x537   :  { %v2790_v29 = vmax.f32 %v6614_v59, %v2776_v37  ;;  %v2793_v59 = vmax.f32 %v6568_v15, %v2772_v44  ;;  %3805 = vmatpush.msk.msrb.mxu3 %vm3085_vm7, %v3076_v58  ;;  %v3075_v15 = vld [vmem:[%s6893_s7 + $0x28] sm:$0xff] }
 0x538   :  { %v2799_v12 = vmax.f32 %v2791_v62, 0.0 }
 0x539   :  { %v2798_v46 = vmax.f32 %v2790_v29, 0.0  ;;  %v2801_v14 = vmax.f32 %v2793_v59, 0.0  ;;  %3099 = vmatpush.msrb.mxu3 %v3075_v15 }
 0x53b   :  { %2908 = vmatmul.f32.vlgmr.msra.gmra.mxu2 %v2794_v61  ;;  %2973 = vmatmul.f32.vlgmr.msra.gmra.mxu3 %v2798_v46 }
 0x53c   :  { %3803 = vmatpush.msk.msra.mxu2 %vm150_vm0, %v3802_v16  ;;  %3100 = vmatpush.msrb.mxu3 %v3074_v63 }
 0x53e   :  { %3058 = vmatpush.msra.mxu2 %v3801_v6 }
 0x543   :  { %3784 = vmatmul.msk.f32.vlgmr.msrb.gmra.mxu2 %vm2839_vm5, %v2799_v12 }
 0x54b   :  { %3804 = vmatmul.msk.f32.vlgmr.msra.gmra.mxu2 %vm2839_vm5, %v2801_v14 }
 0x54d   :  { %v2770_v4 = vpop.permute.xlu1 %2769 }
 0x54e   :  { %v2777_v28 = vsel %vm2773_vm6, %v2770_v4, %v2772_v44 }
 0x54f   :  { %v2792_v34 = vmax.f32 %v6625_v49, %v2777_v28  ;;  %v3073_v49 = vld [vmem:[%s6893_s7 + $0x18] sm:$0xff] }
 0x550   :  { %3101 = vmatpush.msrb.mxu3 %v3073_v49 }
 0x551   :  { %v2800_v2 = vmax.f32 %v2792_v34, 0.0 }
 0x552   :  { %3102 = vmatpush.msrb.mxu3 %v3072_v9 }
 0x553   :  { %3039 = vmatmul.f32.vlgmr.msrb.gmra.mxu0 %v2800_v2 }
 0x554   :  { %3103 = vmatpush.msrb.mxu3 %v3071_v7 }
 0x556   :  { %3104 = vmatpush.msrb.mxu3 %v3070_v48 }
 0x55f   :  { %v2883_v52 = vpop.f32.mrf.mxu3 }
 0x567   :  { %v2929_v56 = vpop.f32.mrf.mxu3 }
 0x5b6   :  { %v2863_v27 = vpop.f32.mrf.mxu2 }
 0x5b7   :  { %v2884_v57 = vadd.f32 %v2883_v52, %v2863_v27 }
 0x5be   :  { %v2909_v35 = vpop.f32.mrf.mxu2  ;;  %v2974_v40 = vpop.f32.mrf.mxu3 }
 0x5bf   :  { %v2910_v51 = vadd.f32 %v2909_v35, %v2884_v57 }
 0x5c1   :  { %v2930_v24 = vadd.f32 %v2929_v56, %v2910_v51 }
 0x5c6   :  { %v2994_v13 = vpop.f32.mrf.mxu2 }
 0x5c7   :  { %v2995_v42 = vadd.f32 %v2994_v13, %v2974_v40 }
 0x5c9   :  { %v2997_v33 = vadd.f32 %v2995_v42, %v2930_v24 }
 0x5ce   :  { %v3060_v5 = vpop.f32.mrf.mxu2 }
 0x5d0   :  { %v3040_v3 = vpop.f32.mrf.mxu0 }
 0x5d1   :  { %v3061_v19 = vadd.f32 %v3060_v5, %v3040_v3 }
 0x5d3   :  { %v3063_v36 = vadd.f32 %v3061_v19, %v2997_v33 }
 0x5d5   :  { %v3068_v31 = vadd.f32 %v3813_v32, %v3063_v36 }
 0x5d7   :  { %v3069_v25 = vmax.f32 %v3068_v31, 0.0 }
 0x5d9   :  { %3806 = vmatmul.msk.f32.vlgmr.msrb.gmra.mxu3 %vm3081_vm8, %v3069_v25 }
 0x65c   :  { %v3106_v45 = vpop.f32.mrf.mxu3 }
 0x65d   :  { %v3107_v43 = vadd.f32 %v3814_v50, %v3106_v45 }
 0x65f   :  { %v3110_v10 = vsel %vm3109_vm9, %v3107_v43, -inf }
 0x660   :  { %3111 = vmax.xlane.f32.xlu2 %v3110_v10 }
 0x6d3   :  { %v3112_v38 = vpop.xlane.xlu2 %3111 }
 0x6d4   :  { %v3113_v47 = vsub.f32 %v3107_v43, %v3112_v38 }
 0x6d6   :  { %v3114_v30 = vmul.f32 1.442695, %v3113_v47 }
 0x6d8   :  { %3815 = vpow2.f32 %v3114_v30 }
 0x6de   :  { %v3816_v26 = vpop.eup %3815 }
 0x6df   :  { %v3116_v11 = vsel %vm3109_vm9, %v3816_v26, 0.0 }
 0x6e0   :  { %3117 = vadd.xlane.f32.xlu0 %v3116_v11 }
 0x753   :  { %v3118_v53 = vpop.xlane.xlu0 %3117 }
 0x754   :  { %3817 = vrcp.f32 %v3118_v53  ;;  %v3130_v21 = vand.u32 2147483648, %v3118_v53  ;;  %v3128_v60 = vand.u32 2147483647, %v3118_v53  ;;  %vm3124_vm11 = vweird.f32 %v3118_v53 }
 0x756   :  { %v3131_v20 = vor.u32 1.1754944e-38, %v3130_v21  ;;  %vm3129_vm13 = vcmp.eq.f32.partialorder %v3128_v60, 8.507059e+37 }
 0x75a   :  { %v3818_v0 = vpop.eup %3817 }
 0x75b   :  { %v3120_v8 = vmul.f32 %v3818_v0, %v3118_v53  ;;  %vm3125_vm10 = vweird.f32 %v3818_v0 }
 0x75c   :  { %vm3126_vm12 = vmor %vm3124_vm11, %vm3125_vm10 }
 0x75d   :  { %v3121_v39 = vsub.f32 1.0, %v3120_v8 }
 0x75f   :  { %v3122_v54 = vmul.f32 %v3818_v0, %v3121_v39 }
 0x761   :  { %v3123_v1 = vadd.f32 %v3818_v0, %v3122_v54 }
 0x763   :  { %v3127_v41 = vsel %vm3126_vm12, %v3818_v0, %v3123_v1 }
 0x764   :  { %v3132_v23 = vsel %vm3129_vm13, %v3131_v20, %v3127_v41 }
 0x765   :  { %v3133_v22 = vmul.f32 %v3816_v26, %v3132_v23 }
 0x767   :  { %3134 = vst.msk [vmem:[%s6894_s9] sm:$0xff] %vm3109_vm9, %v3133_v22 }

</bundles_post_ra>
